<compile_context>
chip_gen: v7x
topology: tpu7x:2x2x1
jax: 0.10.0
libtpu: 0.0.40
codegen_flags: <defaults>
</compile_context>

<pallas_src>
from functools import partial

import jax
import jax.numpy as jnp
from jax import lax
from jax.experimental import pallas as pl
from jax.experimental.pallas import tpu as pltpu

# ---- config (mirrors the PyTorch module globals, at small demo scale) ------
WORD_TO_INDEX = {'<PAD>': 0, '<SOS>': 1, '<EOS>': 2}
VOCAB_SIZE = len(WORD_TO_INDEX)        # 3
EMB_ROWS = 8                           # vocab rows padded to one sublane tile
VOCAB_PAD = 128                        # lane-dense padded logits width
EMBEDDING_DIM = 128
NUM_LAYERS = 2
MAX_SEQ_LEN = 6                        # small demo value (module default: 20)
LN_EPS = 1e-5                          # nn.LayerNorm default eps


# ---------------------------- in-kernel helpers ------------------------------
def _layer_norm(v, g, b):
    mu = jnp.mean(v, axis=-1, keepdims=True)
    var = jnp.mean((v - mu) ** 2, axis=-1, keepdims=True)
    return (v - mu) * lax.rsqrt(var + LN_EPS) * g + b


def _attention_stream_block(x, ctx_add, vecs, w_rv):
    """One AttentionStreamBlock (Shift with x_prev=None => shifted == x).

    x:       [B, S, D] f32
    ctx_add: [B, D] f32 or None   (precomputed sigmoid(ctx*cm)*ctx)
    vecs:    [8, D] f32  rows: tm, cm, ln1_g, ln1_b, ln2_g, ln2_b, br, bv
    w_rv:    [D, 2D] bf16 fused [Wr.T | Wv.T]
    """
    B, S, D = x.shape
    tm = vecs[0:1]                                       # [1, D]
    g1, b1 = vecs[2:3], vecs[3:4]
    g2, b2 = vecs[4:5], vecs[5:6]
    br, bv = vecs[6:7], vecs[7:8]

    # --- SequenceMergingSeq: batched pre-pass (EUP/XLU off the serial chain)
    decay = jax.nn.sigmoid(x * tm)                       # [B,S,D]
    et = jnp.exp(x)                                      # [B,S,D]
    u = et * x                                           # exp(C_t) * V_t
    if ctx_add is not None:
        u = u + ctx_add[:, None, :]                      # hoisted context add
    m = jnp.mean(decay, axis=-1, keepdims=True)          # [B,S,1]
    s = jnp.sum(et, axis=-1, keepdims=True)              # [B,S,1]

    # --- recurrence: two VPU FMAs per step on the carries (S is static)
    a = jnp.zeros((B, 1), jnp.float32)
    b = jnp.zeros((B, D), jnp.float32)
    a_rows, b_rows = [], []
    for t in range(S):
        a = m[:, t] * a + s[:, t]
        b = decay[:, t] * b + u[:, t]
        a_rows.append(a)
        b_rows.append(b)
    a_all = jnp.stack(a_rows, axis=1)                    # [B,S,1]
    b_all = jnp.stack(b_rows, axis=1)                    # [B,S,D]

    merged = b_all / (a_all + 1e-8)                      # exact, matches torch
    normed = _layer_norm(merged, g1, b1)

    # --- StateCoupling: one fused bf16 [B*S,128]x[128,256] MXU matmul
    h = normed.reshape(B * S, D).astype(jnp.bfloat16)
    rv = jnp.dot(h, w_rv, preferred_element_type=jnp.float32)   # [B*S, 2D]
    gate = jax.nn.sigmoid(rv[:, :D] + br)
    value = rv[:, D:] + bv
    coupled = _layer_norm(gate * value, g2, b2).reshape(B, S, D)

    return x + coupled                                   # residual


# ---------------------------- encoder kernel ---------------------------------
def _encoder_kernel(seq_ref, emb_ref, vecs_ref, wrv_ref, out_ref, *, B, S, L):
    """Embedding gather (one-hot matmul) + NUM_LAYERS blocks + seq-mean."""
    V8 = emb_ref.shape[0]
    D = emb_ref.shape[1]
    # in-VMEM "gather": exact one-hot (f32) x f32 table matmul
    seq_f = seq_ref[...].astype(jnp.float32)             # [B*S, 1]
    v_iota = lax.broadcasted_iota(jnp.int32, (B * S, V8), 1).astype(jnp.float32)
    onehot = jnp.where(v_iota == seq_f, 1.0, 0.0)        # [B*S, V8]
    x = jnp.dot(onehot, emb_ref[...],
                preferred_element_type=jnp.float32)      # [B*S, D]
    x = x.reshape(B, S, D)
    for l in range(L):                                   # static layer unroll
        x = _attention_stream_block(x, None, vecs_ref[l], wrv_ref[l])
    out_ref[...] = jnp.mean(x, axis=1)                   # [B, D]


# ---------------------------- fused decoder kernel ---------------------------
def _decoder_kernel(tf_ref,                              # scalar prefetch (SMEM)
                    tgt_oh_ref, ctx_ref, emb_ref, vecs_ref, wrv_ref,
                    fcw_ref, fcb_ref,                    # inputs (resident)
                    out_ref,                             # [1, B, VOCAB_PAD]
                    tok_oh_ref, ctx_add_ref,             # VMEM scratch
                    *, B, L):
    """One autoregressive decode step per grid index t; state in scratch."""
    t = pl.program_id(0)
    V8 = emb_ref.shape[0]
    D = emb_ref.shape[1]

    @pl.when(t == 0)
    def _init():
        v_iota = lax.broadcasted_iota(jnp.int32, (B, V8), 1).astype(jnp.float32)
        tok_oh_ref[...] = jnp.where(
            v_iota == float(WORD_TO_INDEX['<SOS>']), 1.0, 0.0)
        ctx = ctx_ref[...]                               # [B, D]
        for l in range(L):                               # hoisted context gate
            vl = vecs_ref[l]
            cm = vl[1:2]                                 # [1, D]
            ctx_add_ref[l] = jax.nn.sigmoid(ctx * cm) * ctx

    # embed current token: exact gather via one-hot matmul, all in VMEM
    x = jnp.dot(tok_oh_ref[...], emb_ref[...],
                preferred_element_type=jnp.float32)      # [B, D]
    x = x.reshape(B, 1, D)

    for l in range(L):
        x = _attention_stream_block(x, ctx_add_ref[l], vecs_ref[l], wrv_ref[l])

    # padded lane-dense vocab projection (bf16 MXU, f32 accumulate)
    h = x[:, 0, :]                                       # [B, D] last timestep
    logits = (jnp.dot(h.astype(jnp.bfloat16), fcw_ref[...],
                      preferred_element_type=jnp.float32)
              + fcb_ref[...])                            # [B, VOCAB_PAD]
    out_ref[0] = logits

    # ---- in-kernel greedy argmax over real vocab + teacher-forcing select
    lane = lax.broadcasted_iota(jnp.int32, (B, VOCAB_PAD), 1)
    lane_f = lane.astype(jnp.float32)
    valid = lane < VOCAB_SIZE
    masked = jnp.where(valid, logits, -1e30)
    mx = jnp.max(masked, axis=-1, keepdims=True)         # [B, 1]
    first = jnp.min(jnp.where((masked >= mx) & valid, lane_f, float(VOCAB_PAD)),
                    axis=-1, keepdims=True)              # [B, 1] first argmax
    v_iota = lax.broadcasted_iota(jnp.int32, (B, V8), 1).astype(jnp.float32)
    top1_oh = jnp.where(v_iota == first, 1.0, 0.0)       # [B, V8]

    tf_w = (tf_ref[t] == 1).astype(jnp.float32)          # scalar coin flip
    tok_oh_ref[...] = tf_w * tgt_oh_ref[0] + (1.0 - tf_w) * top1_oh


# ---------------------------- pallas wrappers ---------------------------------
def _fullspec(shape):
    n = len(shape)
    return pl.BlockSpec(shape, lambda i, _n=n: (0,) * _n)


@jax.jit
def _seq2seq_jit(params, input_seq, target_seq, tf_ratio, key):
    B, S = input_seq.shape
    D = EMBEDDING_DIM
    L = NUM_LAYERS
    T = MAX_SEQ_LEN + 1
    enc_p, dec_p = params['enc'], params['dec']

    # ---------- encoder: ONE fused pallas_call ----------
    seq2d = input_seq.reshape(B * S, 1)
    enc_out = pl.pallas_call(
        partial(_encoder_kernel, B=B, S=S, L=L),
        grid=(1,),
        out_shape=jax.ShapeDtypeStruct((B, D), jnp.float32),
        in_specs=[_fullspec((B * S, 1)),
                  _fullspec((EMB_ROWS, D)),
                  _fullspec((L, 8, D)),
                  _fullspec((L, D, 2 * D))],
        out_specs=_fullspec((B, D)),
        compiler_params=pltpu.CompilerParams(dimension_semantics=("arbitrary",)),
    )(seq2d, params['enc_emb'], enc_p['vecs'], enc_p['w_rv'])

    # ---------- teacher-forcing flags + target one-hots (tiny, same jit) -----
    S_tgt = target_seq.shape[1]
    u = jax.random.uniform(key, (T,))
    tf_flags = ((u < tf_ratio) & (jnp.arange(T) < S_tgt)).astype(jnp.int32)
    n = min(S_tgt, T)
    tgt_oh = jnp.zeros((T, B, EMB_ROWS), jnp.float32)
    tgt_oh = tgt_oh.at[:n].set(
        jax.nn.one_hot(target_seq[:, :n].T, EMB_ROWS, dtype=jnp.float32))

    # ---------- decoder: ALL T steps in ONE pallas_call ----------
    grid_spec = pltpu.PrefetchScalarGridSpec(
        num_scalar_prefetch=1,
        grid=(T,),
        in_specs=[
            pl.BlockSpec((1, B, EMB_ROWS), lambda t, tf: (t, 0, 0)),   # tgt one-hot
            pl.BlockSpec((B, D), lambda t, tf: (0, 0)),                # enc context
            pl.BlockSpec((EMB_ROWS, D), lambda t, tf: (0, 0)),         # dec embedding
            pl.BlockSpec((L, 8, D), lambda t, tf: (0, 0, 0)),          # packed vecs
            pl.BlockSpec((L, D, 2 * D), lambda t, tf: (0, 0, 0)),      # fused Wr|Wv
            pl.BlockSpec((D, VOCAB_PAD), lambda t, tf: (0, 0)),        # fc weight
            pl.BlockSpec((1, VOCAB_PAD), lambda t, tf: (0, 0)),        # fc bias
        ],
        out_specs=pl.BlockSpec((1, B, VOCAB_PAD), lambda t, tf: (t, 0, 0)),
        scratch_shapes=[pltpu.VMEM((B, EMB_ROWS), jnp.float32),        # token one-hot
                        pltpu.VMEM((L, B, D), jnp.float32)],           # hoisted ctx gate
    )
    logits_pad = pl.pallas_call(
        partial(_decoder_kernel, B=B, L=L),
        grid_spec=grid_spec,
        out_shape=jax.ShapeDtypeStruct((T, B, VOCAB_PAD), jnp.float32),
        compiler_params=pltpu.CompilerParams(dimension_semantics=("arbitrary",)),
    )(tf_flags, tgt_oh, enc_out, params['dec_emb'], dec_p['vecs'], dec_p['w_rv'],
      params['fc_w_pad'], params['fc_b_pad'])

    # real logits, stacked like torch.stack(outputs, dim=1): [B, T, V]
    return jnp.transpose(logits_pad[:, :, :VOCAB_SIZE], (1, 0, 2))


def seq2seq_forward(params, input_seq, target_seq, teacher_forcing_ratio=0.5,
                    key=None):
    if key is None:
        key = jax.random.PRNGKey(1234)
    return _seq2seq_jit(params, input_seq.astype(jnp.int32),
                        target_seq.astype(jnp.int32),
                        jnp.float32(teacher_forcing_ratio), key)


# ---------------------------- parameters --------------------------------------
def init_params(key):
    D, V, L, V8 = EMBEDDING_DIM, VOCAB_SIZE, NUM_LAYERS, EMB_ROWS
    k_ee, k_de, k_enc, k_dec, k_fw, k_fb = jax.random.split(key, 6)
    bound = 1.0 / (D ** 0.5)

    def stacked_blocks(k):
        ks = jax.random.split(k, 4 * L)
        w_rv_l, vecs_l = [], []
        for l in range(L):
            wr = jax.random.uniform(ks[4 * l + 0], (D, D), jnp.float32, -bound, bound)
            br = jax.random.uniform(ks[4 * l + 1], (D,), jnp.float32, -bound, bound)
            wv = jax.random.uniform(ks[4 * l + 2], (D, D), jnp.float32, -bound, bound)
            bv = jax.random.uniform(ks[4 * l + 3], (D,), jnp.float32, -bound, bound)
            # fused coupling weights (x @ W.T layout): cols 0:D gate, D:2D value
            w_rv_l.append(jnp.concatenate([wr.T, wv.T], axis=1))       # [D, 2D]
            # packed per-layer vectors: one [8, D] slab -> one DMA
            vecs_l.append(jnp.stack([
                jnp.full((D,), 0.5, jnp.float32),    # 0: time_modulation
                jnp.full((D,), 0.5, jnp.float32),    # 1: context_modulation
                jnp.ones((D,), jnp.float32),         # 2: seq-merging LN gamma
                jnp.zeros((D,), jnp.float32),        # 3: seq-merging LN beta
                jnp.ones((D,), jnp.float32),         # 4: coupling LN gamma
                jnp.zeros((D,), jnp.float32),        # 5: coupling LN beta
                br,                                  # 6: Wr bias
                bv,                                  # 7: Wv bias
            ], axis=0))                              # [8, D]
        return dict(w_rv=jnp.stack(w_rv_l).astype(jnp.bfloat16),       # [L, D, 2D]
                    vecs=jnp.stack(vecs_l))                            # [L, 8, D]

    def padded_embedding(k):
        e = jax.random.normal(k, (V, D), jnp.float32)
        return jnp.zeros((V8, D), jnp.float32).at[:V].set(e)

    fc_w = jax.random.uniform(k_fw, (V, D), jnp.float32, -bound, bound)
    fc_b = jax.random.uniform(k_fb, (V,), jnp.float32, -bound, bound)
    # zero-padded, lane-dense vocab projection (bf16 weights for the MXU)
    fc_w_pad = (jnp.zeros((D, VOCAB_PAD), jnp.float32)
                .at[:, :V].set(fc_w.T).astype(jnp.bfloat16))
    fc_b_pad = jnp.zeros((1, VOCAB_PAD), jnp.float32).at[0, :V].set(fc_b)

    # NOTE: Shift.mu is omitted -- the module always calls blocks with
    # x_prev=None so Shift is the identity.
    return dict(enc_emb=padded_embedding(k_ee),
                dec_emb=padded_embedding(k_de),
                enc=stacked_blocks(k_enc),
                dec=stacked_blocks(k_dec),
                fc_w_pad=fc_w_pad, fc_b_pad=fc_b_pad)


# ---------------------------- demo ---------------------------------------------
if __name__ == "__main__":
    key = jax.random.PRNGKey(0)
    kp, ki, kt, ktf = jax.random.split(key, 4)
    params = init_params(kp)

    B, S_in, S_tgt = 2, 8, MAX_SEQ_LEN
    input_seq = jax.random.randint(ki, (B, S_in), 0, VOCAB_SIZE, dtype=jnp.int32)
    target_seq = jax.random.randint(kt, (B, S_tgt), 0, VOCAB_SIZE, dtype=jnp.int32)

    out = seq2seq_forward(params, input_seq, target_seq,
                          teacher_forcing_ratio=0.5, key=ktf)
    out = jax.block_until_ready(out)

    assert out.shape == (B, MAX_SEQ_LEN + 1, VOCAB_SIZE), out.shape
    assert bool(jnp.all(jnp.isfinite(out)))
    print("KERNEL_OK")
</pallas_src>

<mosaic_0001>
module attributes {stable_mosaic.version = 11 : i64} {
  func.func @_encoder_kernel(%arg0: i32, %arg1: memref<16x1xi32, #tpu.memory_space<vmem>>, %arg2: memref<8x128xf32, #tpu.memory_space<vmem>>, %arg3: memref<2x8x128xf32, #tpu.memory_space<vmem>>, %arg4: memref<2x128x256xbf16, #tpu.memory_space<vmem>>, %arg5: memref<2x128xf32, #tpu.memory_space<vmem>>) attributes {dimension_semantics = [#tpu.dimension_semantics<arbitrary>], iteration_bounds = array<i64: 1>, scalar_prefetch = 0 : i64, scratch_operands = 0 : i64, tpu.core_type = #tpu.core_type<tc>, window_params = [{pipeline_mode = #tpu.pipeline_mode<synchronous>, transform_indices = @transform_0, window_bounds = array<i64: 16, 1>}, {pipeline_mode = #tpu.pipeline_mode<synchronous>, transform_indices = @transform_1, window_bounds = array<i64: 8, 128>}, {pipeline_mode = #tpu.pipeline_mode<synchronous>, transform_indices = @transform_2, window_bounds = array<i64: 2, 8, 128>}, {pipeline_mode = #tpu.pipeline_mode<synchronous>, transform_indices = @transform_3, window_bounds = array<i64: 2, 128, 256>}, {pipeline_mode = #tpu.pipeline_mode<synchronous>, transform_indices = @transform_4, window_bounds = array<i64: 2, 128>}]} {
    %c0 = arith.constant 0 : index
    %c0_0 = arith.constant 0 : index
    %0 = vector.load %arg1[%c0, %c0_0] : memref<16x1xi32, #tpu.memory_space<vmem>>, vector<16x1xi32>
    %1 = arith.sitofp %0 : vector<16x1xi32> to vector<16x1xf32>
    %2 = tpu.iota {dimensions = array<i32: 1>} : vector<16x8xi32>
    %3 = arith.sitofp %2 : vector<16x8xi32> to vector<16x8xf32>
    %4 = vector.broadcast %1 : vector<16x1xf32> to vector<16x8xf32>
    %5 = arith.cmpf oeq, %3, %4 : vector<16x8xf32>
    %cst = arith.constant 1.000000e+00 : f32
    %cst_1 = arith.constant 0.000000e+00 : f32
    %6 = vector.broadcast %cst : f32 to vector<16x8xf32>
    %7 = vector.broadcast %cst_1 : f32 to vector<16x8xf32>
    %8 = arith.select %5, %6, %7 : vector<16x8xi1>, vector<16x8xf32>
    %c0_2 = arith.constant 0 : index
    %c0_3 = arith.constant 0 : index
    %9 = vector.load %arg2[%c0_2, %c0_3] : memref<8x128xf32, #tpu.memory_space<vmem>>, vector<8x128xf32>
    %cst_4 = arith.constant dense<0.000000e+00> : vector<16x128xf32>
    %10 = tpu.matmul %8, %9, %cst_4 {dimension_numbers = #tpu.dot_dimension_numbers<[1], [0], [0], [1], [0, 0, 1, 1], [], []>} : vector<16x8xf32>, vector<8x128xf32>, vector<16x128xf32> -> vector<16x128xf32>
    %11 = vector.shape_cast %10 : vector<16x128xf32> to vector<2x8x128xf32>
    %c0_5 = arith.constant 0 : index
    %c0_6 = arith.constant 0 : index
    %c0_7 = arith.constant 0 : index
    %12 = vector.load %arg3[%c0_5, %c0_6, %c0_7] : memref<2x8x128xf32, #tpu.memory_space<vmem>>, vector<1x8x128xf32>
    %13 = vector.shape_cast %12 : vector<1x8x128xf32> to vector<8x128xf32>
    %c0_8 = arith.constant 0 : index
    %c0_9 = arith.constant 0 : index
    %c0_10 = arith.constant 0 : index
    %14 = vector.load %arg4[%c0_8, %c0_9, %c0_10] : memref<2x128x256xbf16, #tpu.memory_space<vmem>>, vector<1x128x256xbf16>
    %15 = vector.shape_cast %14 : vector<1x128x256xbf16> to vector<128x256xbf16>
    %16 = vector.extract_strided_slice %13 {offsets = [0, 0], sizes = [1, 128], strides = [1, 1]} : vector<8x128xf32> to vector<1x128xf32>
    %17 = vector.extract_strided_slice %13 {offsets = [2, 0], sizes = [1, 128], strides = [1, 1]} : vector<8x128xf32> to vector<1x128xf32>
    %18 = vector.extract_strided_slice %13 {offsets = [3, 0], sizes = [1, 128], strides = [1, 1]} : vector<8x128xf32> to vector<1x128xf32>
    %19 = vector.extract_strided_slice %13 {offsets = [4, 0], sizes = [1, 128], strides = [1, 1]} : vector<8x128xf32> to vector<1x128xf32>
    %20 = vector.extract_strided_slice %13 {offsets = [5, 0], sizes = [1, 128], strides = [1, 1]} : vector<8x128xf32> to vector<1x128xf32>
    %21 = vector.extract_strided_slice %13 {offsets = [6, 0], sizes = [1, 128], strides = [1, 1]} : vector<8x128xf32> to vector<1x128xf32>
    %22 = vector.extract_strided_slice %13 {offsets = [7, 0], sizes = [1, 128], strides = [1, 1]} : vector<8x128xf32> to vector<1x128xf32>
    %23 = vector.shape_cast %16 : vector<1x128xf32> to vector<1x1x128xf32>
    %24 = vector.broadcast %23 : vector<1x1x128xf32> to vector<2x8x128xf32>
    %25 = arith.mulf %11, %24 : vector<2x8x128xf32>
    %26 = arith.negf %25 : vector<2x8x128xf32>
    %27 = math.exp %26 : vector<2x8x128xf32>
    %cst_11 = arith.constant 1.000000e+00 : f32
    %28 = vector.broadcast %cst_11 : f32 to vector<2x8x128xf32>
    %29 = arith.addf %28, %27 : vector<2x8x128xf32>
    %30 = arith.divf %28, %29 : vector<2x8x128xf32>
    %31 = math.exp %11 : vector<2x8x128xf32>
    %32 = arith.mulf %31, %11 : vector<2x8x128xf32>
    %cst_12 = arith.constant dense<0.000000e+00> : vector<2x8xf32>
    %33 = vector.multi_reduction <add>, %30, %cst_12 [2] : vector<2x8x128xf32> to vector<2x8xf32>
    %34 = vector.shape_cast %33 : vector<2x8xf32> to vector<2x8x1xf32>
    %cst_13 = arith.constant 1.280000e+02 : f32
    %35 = vector.broadcast %cst_13 : f32 to vector<2x8x1xf32>
    %36 = arith.divf %34, %35 : vector<2x8x1xf32>
    %cst_14 = arith.constant dense<0.000000e+00> : vector<2x8xf32>
    %37 = vector.multi_reduction <add>, %31, %cst_14 [2] : vector<2x8x128xf32> to vector<2x8xf32>
    %38 = vector.shape_cast %37 : vector<2x8xf32> to vector<2x8x1xf32>
    %cst_15 = arith.constant 0.000000e+00 : f32
    %39 = vector.broadcast %cst_15 : f32 to vector<2x1xf32>
    %cst_16 = arith.constant 0.000000e+00 : f32
    %40 = vector.broadcast %cst_16 : f32 to vector<2x128xf32>
    %41 = vector.extract_strided_slice %36 {offsets = [0, 0, 0], sizes = [2, 1, 1], strides = [1, 1, 1]} : vector<2x8x1xf32> to vector<2x1x1xf32>
    %42 = vector.shape_cast %41 : vector<2x1x1xf32> to vector<2x1xf32>
    %43 = arith.mulf %42, %39 : vector<2x1xf32>
    %44 = vector.extract_strided_slice %38 {offsets = [0, 0, 0], sizes = [2, 1, 1], strides = [1, 1, 1]} : vector<2x8x1xf32> to vector<2x1x1xf32>
    %45 = vector.shape_cast %44 : vector<2x1x1xf32> to vector<2x1xf32>
    %46 = arith.addf %43, %45 : vector<2x1xf32>
    %47 = vector.extract_strided_slice %30 {offsets = [0, 0, 0], sizes = [2, 1, 128], strides = [1, 1, 1]} : vector<2x8x128xf32> to vector<2x1x128xf32>
    %48 = vector.shape_cast %47 : vector<2x1x128xf32> to vector<2x128xf32>
    %49 = arith.mulf %48, %40 : vector<2x128xf32>
    %50 = vector.extract_strided_slice %32 {offsets = [0, 0, 0], sizes = [2, 1, 128], strides = [1, 1, 1]} : vector<2x8x128xf32> to vector<2x1x128xf32>
    %51 = vector.shape_cast %50 : vector<2x1x128xf32> to vector<2x128xf32>
    %52 = arith.addf %49, %51 : vector<2x128xf32>
    %53 = vector.extract_strided_slice %36 {offsets = [0, 1, 0], sizes = [2, 1, 1], strides = [1, 1, 1]} : vector<2x8x1xf32> to vector<2x1x1xf32>
    %54 = vector.shape_cast %53 : vector<2x1x1xf32> to vector<2x1xf32>
    %55 = arith.mulf %54, %46 : vector<2x1xf32>
    %56 = vector.extract_strided_slice %38 {offsets = [0, 1, 0], sizes = [2, 1, 1], strides = [1, 1, 1]} : vector<2x8x1xf32> to vector<2x1x1xf32>
    %57 = vector.shape_cast %56 : vector<2x1x1xf32> to vector<2x1xf32>
    %58 = arith.addf %55, %57 : vector<2x1xf32>
    %59 = vector.extract_strided_slice %30 {offsets = [0, 1, 0], sizes = [2, 1, 128], strides = [1, 1, 1]} : vector<2x8x128xf32> to vector<2x1x128xf32>
    %60 = vector.shape_cast %59 : vector<2x1x128xf32> to vector<2x128xf32>
    %61 = arith.mulf %60, %52 : vector<2x128xf32>
    %62 = vector.extract_strided_slice %32 {offsets = [0, 1, 0], sizes = [2, 1, 128], strides = [1, 1, 1]} : vector<2x8x128xf32> to vector<2x1x128xf32>
    %63 = vector.shape_cast %62 : vector<2x1x128xf32> to vector<2x128xf32>
    %64 = arith.addf %61, %63 : vector<2x128xf32>
    %65 = vector.extract_strided_slice %36 {offsets = [0, 2, 0], sizes = [2, 1, 1], strides = [1, 1, 1]} : vector<2x8x1xf32> to vector<2x1x1xf32>
    %66 = vector.shape_cast %65 : vector<2x1x1xf32> to vector<2x1xf32>
    %67 = arith.mulf %66, %58 : vector<2x1xf32>
    %68 = vector.extract_strided_slice %38 {offsets = [0, 2, 0], sizes = [2, 1, 1], strides = [1, 1, 1]} : vector<2x8x1xf32> to vector<2x1x1xf32>
    %69 = vector.shape_cast %68 : vector<2x1x1xf32> to vector<2x1xf32>
    %70 = arith.addf %67, %69 : vector<2x1xf32>
    %71 = vector.extract_strided_slice %30 {offsets = [0, 2, 0], sizes = [2, 1, 128], strides = [1, 1, 1]} : vector<2x8x128xf32> to vector<2x1x128xf32>
    %72 = vector.shape_cast %71 : vector<2x1x128xf32> to vector<2x128xf32>
    %73 = arith.mulf %72, %64 : vector<2x128xf32>
    %74 = vector.extract_strided_slice %32 {offsets = [0, 2, 0], sizes = [2, 1, 128], strides = [1, 1, 1]} : vector<2x8x128xf32> to vector<2x1x128xf32>
    %75 = vector.shape_cast %74 : vector<2x1x128xf32> to vector<2x128xf32>
    %76 = arith.addf %73, %75 : vector<2x128xf32>
    %77 = vector.extract_strided_slice %36 {offsets = [0, 3, 0], sizes = [2, 1, 1], strides = [1, 1, 1]} : vector<2x8x1xf32> to vector<2x1x1xf32>
    %78 = vector.shape_cast %77 : vector<2x1x1xf32> to vector<2x1xf32>
    %79 = arith.mulf %78, %70 : vector<2x1xf32>
    %80 = vector.extract_strided_slice %38 {offsets = [0, 3, 0], sizes = [2, 1, 1], strides = [1, 1, 1]} : vector<2x8x1xf32> to vector<2x1x1xf32>
    %81 = vector.shape_cast %80 : vector<2x1x1xf32> to vector<2x1xf32>
    %82 = arith.addf %79, %81 : vector<2x1xf32>
    %83 = vector.extract_strided_slice %30 {offsets = [0, 3, 0], sizes = [2, 1, 128], strides = [1, 1, 1]} : vector<2x8x128xf32> to vector<2x1x128xf32>
    %84 = vector.shape_cast %83 : vector<2x1x128xf32> to vector<2x128xf32>
    %85 = arith.mulf %84, %76 : vector<2x128xf32>
    %86 = vector.extract_strided_slice %32 {offsets = [0, 3, 0], sizes = [2, 1, 128], strides = [1, 1, 1]} : vector<2x8x128xf32> to vector<2x1x128xf32>
    %87 = vector.shape_cast %86 : vector<2x1x128xf32> to vector<2x128xf32>
    %88 = arith.addf %85, %87 : vector<2x128xf32>
    %89 = vector.extract_strided_slice %36 {offsets = [0, 4, 0], sizes = [2, 1, 1], strides = [1, 1, 1]} : vector<2x8x1xf32> to vector<2x1x1xf32>
    %90 = vector.shape_cast %89 : vector<2x1x1xf32> to vector<2x1xf32>
    %91 = arith.mulf %90, %82 : vector<2x1xf32>
    %92 = vector.extract_strided_slice %38 {offsets = [0, 4, 0], sizes = [2, 1, 1], strides = [1, 1, 1]} : vector<2x8x1xf32> to vector<2x1x1xf32>
    %93 = vector.shape_cast %92 : vector<2x1x1xf32> to vector<2x1xf32>
    %94 = arith.addf %91, %93 : vector<2x1xf32>
    %95 = vector.extract_strided_slice %30 {offsets = [0, 4, 0], sizes = [2, 1, 128], strides = [1, 1, 1]} : vector<2x8x128xf32> to vector<2x1x128xf32>
    %96 = vector.shape_cast %95 : vector<2x1x128xf32> to vector<2x128xf32>
    %97 = arith.mulf %96, %88 : vector<2x128xf32>
    %98 = vector.extract_strided_slice %32 {offsets = [0, 4, 0], sizes = [2, 1, 128], strides = [1, 1, 1]} : vector<2x8x128xf32> to vector<2x1x128xf32>
    %99 = vector.shape_cast %98 : vector<2x1x128xf32> to vector<2x128xf32>
    %100 = arith.addf %97, %99 : vector<2x128xf32>
    %101 = vector.extract_strided_slice %36 {offsets = [0, 5, 0], sizes = [2, 1, 1], strides = [1, 1, 1]} : vector<2x8x1xf32> to vector<2x1x1xf32>
    %102 = vector.shape_cast %101 : vector<2x1x1xf32> to vector<2x1xf32>
    %103 = arith.mulf %102, %94 : vector<2x1xf32>
    %104 = vector.extract_strided_slice %38 {offsets = [0, 5, 0], sizes = [2, 1, 1], strides = [1, 1, 1]} : vector<2x8x1xf32> to vector<2x1x1xf32>
    %105 = vector.shape_cast %104 : vector<2x1x1xf32> to vector<2x1xf32>
    %106 = arith.addf %103, %105 : vector<2x1xf32>
    %107 = vector.extract_strided_slice %30 {offsets = [0, 5, 0], sizes = [2, 1, 128], strides = [1, 1, 1]} : vector<2x8x128xf32> to vector<2x1x128xf32>
    %108 = vector.shape_cast %107 : vector<2x1x128xf32> to vector<2x128xf32>
    %109 = arith.mulf %108, %100 : vector<2x128xf32>
    %110 = vector.extract_strided_slice %32 {offsets = [0, 5, 0], sizes = [2, 1, 128], strides = [1, 1, 1]} : vector<2x8x128xf32> to vector<2x1x128xf32>
    %111 = vector.shape_cast %110 : vector<2x1x128xf32> to vector<2x128xf32>
    %112 = arith.addf %109, %111 : vector<2x128xf32>
    %113 = vector.extract_strided_slice %36 {offsets = [0, 6, 0], sizes = [2, 1, 1], strides = [1, 1, 1]} : vector<2x8x1xf32> to vector<2x1x1xf32>
    %114 = vector.shape_cast %113 : vector<2x1x1xf32> to vector<2x1xf32>
    %115 = arith.mulf %114, %106 : vector<2x1xf32>
    %116 = vector.extract_strided_slice %38 {offsets = [0, 6, 0], sizes = [2, 1, 1], strides = [1, 1, 1]} : vector<2x8x1xf32> to vector<2x1x1xf32>
    %117 = vector.shape_cast %116 : vector<2x1x1xf32> to vector<2x1xf32>
    %118 = arith.addf %115, %117 : vector<2x1xf32>
    %119 = vector.extract_strided_slice %30 {offsets = [0, 6, 0], sizes = [2, 1, 128], strides = [1, 1, 1]} : vector<2x8x128xf32> to vector<2x1x128xf32>
    %120 = vector.shape_cast %119 : vector<2x1x128xf32> to vector<2x128xf32>
    %121 = arith.mulf %120, %112 : vector<2x128xf32>
    %122 = vector.extract_strided_slice %32 {offsets = [0, 6, 0], sizes = [2, 1, 128], strides = [1, 1, 1]} : vector<2x8x128xf32> to vector<2x1x128xf32>
    %123 = vector.shape_cast %122 : vector<2x1x128xf32> to vector<2x128xf32>
    %124 = arith.addf %121, %123 : vector<2x128xf32>
    %125 = vector.extract_strided_slice %36 {offsets = [0, 7, 0], sizes = [2, 1, 1], strides = [1, 1, 1]} : vector<2x8x1xf32> to vector<2x1x1xf32>
    %126 = vector.shape_cast %125 : vector<2x1x1xf32> to vector<2x1xf32>
    %127 = arith.mulf %126, %118 : vector<2x1xf32>
    %128 = vector.extract_strided_slice %38 {offsets = [0, 7, 0], sizes = [2, 1, 1], strides = [1, 1, 1]} : vector<2x8x1xf32> to vector<2x1x1xf32>
    %129 = vector.shape_cast %128 : vector<2x1x1xf32> to vector<2x1xf32>
    %130 = arith.addf %127, %129 : vector<2x1xf32>
    %131 = vector.extract_strided_slice %30 {offsets = [0, 7, 0], sizes = [2, 1, 128], strides = [1, 1, 1]} : vector<2x8x128xf32> to vector<2x1x128xf32>
    %132 = vector.shape_cast %131 : vector<2x1x128xf32> to vector<2x128xf32>
    %133 = arith.mulf %132, %124 : vector<2x128xf32>
    %134 = vector.extract_strided_slice %32 {offsets = [0, 7, 0], sizes = [2, 1, 128], strides = [1, 1, 1]} : vector<2x8x128xf32> to vector<2x1x128xf32>
    %135 = vector.shape_cast %134 : vector<2x1x128xf32> to vector<2x128xf32>
    %136 = arith.addf %133, %135 : vector<2x128xf32>
    %137 = vector.shape_cast %46 : vector<2x1xf32> to vector<2x1x1xf32>
    %138 = vector.shape_cast %58 : vector<2x1xf32> to vector<2x1x1xf32>
    %139 = vector.shape_cast %70 : vector<2x1xf32> to vector<2x1x1xf32>
    %140 = vector.shape_cast %82 : vector<2x1xf32> to vector<2x1x1xf32>
    %141 = vector.shape_cast %94 : vector<2x1xf32> to vector<2x1x1xf32>
    %142 = vector.shape_cast %106 : vector<2x1xf32> to vector<2x1x1xf32>
    %143 = vector.shape_cast %118 : vector<2x1xf32> to vector<2x1x1xf32>
    %144 = vector.shape_cast %130 : vector<2x1xf32> to vector<2x1x1xf32>
    %145 = tpu.concatenate %137, %138, %139, %140, %141, %142, %143, %144 in 1 : vector<2x1x1xf32>, vector<2x1x1xf32>, vector<2x1x1xf32>, vector<2x1x1xf32>, vector<2x1x1xf32>, vector<2x1x1xf32>, vector<2x1x1xf32>, vector<2x1x1xf32> -> vector<2x8x1xf32>
    %146 = vector.shape_cast %52 : vector<2x128xf32> to vector<2x1x128xf32>
    %147 = vector.shape_cast %64 : vector<2x128xf32> to vector<2x1x128xf32>
    %148 = vector.shape_cast %76 : vector<2x128xf32> to vector<2x1x128xf32>
    %149 = vector.shape_cast %88 : vector<2x128xf32> to vector<2x1x128xf32>
    %150 = vector.shape_cast %100 : vector<2x128xf32> to vector<2x1x128xf32>
    %151 = vector.shape_cast %112 : vector<2x128xf32> to vector<2x1x128xf32>
    %152 = vector.shape_cast %124 : vector<2x128xf32> to vector<2x1x128xf32>
    %153 = vector.shape_cast %136 : vector<2x128xf32> to vector<2x1x128xf32>
    %154 = tpu.concatenate %146, %147, %148, %149, %150, %151, %152, %153 in 1 : vector<2x1x128xf32>, vector<2x1x128xf32>, vector<2x1x128xf32>, vector<2x1x128xf32>, vector<2x1x128xf32>, vector<2x1x128xf32>, vector<2x1x128xf32>, vector<2x1x128xf32> -> vector<2x8x128xf32>
    %cst_17 = arith.constant 9.99999993E-9 : f32
    %155 = vector.broadcast %cst_17 : f32 to vector<2x8x1xf32>
    %156 = arith.addf %145, %155 : vector<2x8x1xf32>
    %157 = vector.broadcast %156 : vector<2x8x1xf32> to vector<2x8x128xf32>
    %158 = arith.divf %154, %157 : vector<2x8x128xf32>
    %cst_18 = arith.constant dense<0.000000e+00> : vector<2x8xf32>
    %159 = vector.multi_reduction <add>, %158, %cst_18 [2] : vector<2x8x128xf32> to vector<2x8xf32>
    %160 = vector.shape_cast %159 : vector<2x8xf32> to vector<2x8x1xf32>
    %cst_19 = arith.constant 1.280000e+02 : f32
    %161 = vector.broadcast %cst_19 : f32 to vector<2x8x1xf32>
    %162 = arith.divf %160, %161 : vector<2x8x1xf32>
    %163 = vector.broadcast %162 : vector<2x8x1xf32> to vector<2x8x128xf32>
    %164 = arith.subf %158, %163 : vector<2x8x128xf32>
    %165 = arith.mulf %164, %164 : vector<2x8x128xf32>
    %cst_20 = arith.constant dense<0.000000e+00> : vector<2x8xf32>
    %166 = vector.multi_reduction <add>, %165, %cst_20 [2] : vector<2x8x128xf32> to vector<2x8xf32>
    %167 = vector.shape_cast %166 : vector<2x8xf32> to vector<2x8x1xf32>
    %cst_21 = arith.constant 1.280000e+02 : f32
    %168 = vector.broadcast %cst_21 : f32 to vector<2x8x1xf32>
    %169 = arith.divf %167, %168 : vector<2x8x1xf32>
    %170 = vector.broadcast %162 : vector<2x8x1xf32> to vector<2x8x128xf32>
    %171 = arith.subf %158, %170 : vector<2x8x128xf32>
    %cst_22 = arith.constant 9.99999974E-6 : f32
    %172 = vector.broadcast %cst_22 : f32 to vector<2x8x1xf32>
    %173 = arith.addf %169, %172 : vector<2x8x1xf32>
    %174 = math.rsqrt %173 : vector<2x8x1xf32>
    %175 = vector.broadcast %174 : vector<2x8x1xf32> to vector<2x8x128xf32>
    %176 = arith.mulf %171, %175 : vector<2x8x128xf32>
    %177 = vector.shape_cast %17 : vector<1x128xf32> to vector<1x1x128xf32>
    %178 = vector.broadcast %177 : vector<1x1x128xf32> to vector<2x8x128xf32>
    %179 = arith.mulf %176, %178 : vector<2x8x128xf32>
    %180 = vector.shape_cast %18 : vector<1x128xf32> to vector<1x1x128xf32>
    %181 = vector.broadcast %180 : vector<1x1x128xf32> to vector<2x8x128xf32>
    %182 = arith.addf %179, %181 : vector<2x8x128xf32>
    %183 = vector.shape_cast %182 : vector<2x8x128xf32> to vector<16x128xf32>
    %184 = arith.truncf %183 : vector<16x128xf32> to vector<16x128xbf16>
    %cst_23 = arith.constant dense<0.000000e+00> : vector<16x256xf32>
    %185 = tpu.matmul %184, %15, %cst_23 {dimension_numbers = #tpu.dot_dimension_numbers<[1], [0], [0], [1], [0, 0, 1, 1], [], []>} : vector<16x128xbf16>, vector<128x256xbf16>, vector<16x256xf32> -> vector<16x256xf32>
    %186 = vector.extract_strided_slice %185 {offsets = [0, 0], sizes = [16, 128], strides = [1, 1]} : vector<16x256xf32> to vector<16x128xf32>
    %187 = vector.broadcast %21 : vector<1x128xf32> to vector<16x128xf32>
    %188 = arith.addf %186, %187 : vector<16x128xf32>
    %189 = arith.negf %188 : vector<16x128xf32>
    %190 = math.exp %189 : vector<16x128xf32>
    %cst_24 = arith.constant 1.000000e+00 : f32
    %191 = vector.broadcast %cst_24 : f32 to vector<16x128xf32>
    %192 = arith.addf %191, %190 : vector<16x128xf32>
    %193 = arith.divf %191, %192 : vector<16x128xf32>
    %194 = vector.extract_strided_slice %185 {offsets = [0, 128], sizes = [16, 128], strides = [1, 1]} : vector<16x256xf32> to vector<16x128xf32>
    %195 = vector.broadcast %22 : vector<1x128xf32> to vector<16x128xf32>
    %196 = arith.addf %194, %195 : vector<16x128xf32>
    %197 = arith.mulf %193, %196 : vector<16x128xf32>
    %cst_25 = arith.constant dense<0.000000e+00> : vector<16xf32>
    %198 = vector.multi_reduction <add>, %197, %cst_25 [1] : vector<16x128xf32> to vector<16xf32>
    %199 = vector.shape_cast %198 : vector<16xf32> to vector<16x1xf32>
    %cst_26 = arith.constant 1.280000e+02 : f32
    %200 = vector.broadcast %cst_26 : f32 to vector<16x1xf32>
    %201 = arith.divf %199, %200 : vector<16x1xf32>
    %202 = vector.broadcast %201 : vector<16x1xf32> to vector<16x128xf32>
    %203 = arith.subf %197, %202 : vector<16x128xf32>
    %204 = arith.mulf %203, %203 : vector<16x128xf32>
    %cst_27 = arith.constant dense<0.000000e+00> : vector<16xf32>
    %205 = vector.multi_reduction <add>, %204, %cst_27 [1] : vector<16x128xf32> to vector<16xf32>
    %206 = vector.shape_cast %205 : vector<16xf32> to vector<16x1xf32>
    %cst_28 = arith.constant 1.280000e+02 : f32
    %207 = vector.broadcast %cst_28 : f32 to vector<16x1xf32>
    %208 = arith.divf %206, %207 : vector<16x1xf32>
    %209 = vector.broadcast %201 : vector<16x1xf32> to vector<16x128xf32>
    %210 = arith.subf %197, %209 : vector<16x128xf32>
    %cst_29 = arith.constant 9.99999974E-6 : f32
    %211 = vector.broadcast %cst_29 : f32 to vector<16x1xf32>
    %212 = arith.addf %208, %211 : vector<16x1xf32>
    %213 = math.rsqrt %212 : vector<16x1xf32>
    %214 = vector.broadcast %213 : vector<16x1xf32> to vector<16x128xf32>
    %215 = arith.mulf %210, %214 : vector<16x128xf32>
    %216 = vector.broadcast %19 : vector<1x128xf32> to vector<16x128xf32>
    %217 = arith.mulf %215, %216 : vector<16x128xf32>
    %218 = vector.broadcast %20 : vector<1x128xf32> to vector<16x128xf32>
    %219 = arith.addf %217, %218 : vector<16x128xf32>
    %220 = vector.shape_cast %219 : vector<16x128xf32> to vector<2x8x128xf32>
    %221 = arith.addf %11, %220 : vector<2x8x128xf32>
    %c1 = arith.constant 1 : index
    %c0_30 = arith.constant 0 : index
    %c0_31 = arith.constant 0 : index
    %222 = vector.load %arg3[%c1, %c0_30, %c0_31] : memref<2x8x128xf32, #tpu.memory_space<vmem>>, vector<1x8x128xf32>
    %223 = vector.shape_cast %222 : vector<1x8x128xf32> to vector<8x128xf32>
    %c1_32 = arith.constant 1 : index
    %c0_33 = arith.constant 0 : index
    %c0_34 = arith.constant 0 : index
    %224 = vector.load %arg4[%c1_32, %c0_33, %c0_34] : memref<2x128x256xbf16, #tpu.memory_space<vmem>>, vector<1x128x256xbf16>
    %225 = vector.shape_cast %224 : vector<1x128x256xbf16> to vector<128x256xbf16>
    %226 = vector.extract_strided_slice %223 {offsets = [0, 0], sizes = [1, 128], strides = [1, 1]} : vector<8x128xf32> to vector<1x128xf32>
    %227 = vector.extract_strided_slice %223 {offsets = [2, 0], sizes = [1, 128], strides = [1, 1]} : vector<8x128xf32> to vector<1x128xf32>
    %228 = vector.extract_strided_slice %223 {offsets = [3, 0], sizes = [1, 128], strides = [1, 1]} : vector<8x128xf32> to vector<1x128xf32>
    %229 = vector.extract_strided_slice %223 {offsets = [4, 0], sizes = [1, 128], strides = [1, 1]} : vector<8x128xf32> to vector<1x128xf32>
    %230 = vector.extract_strided_slice %223 {offsets = [5, 0], sizes = [1, 128], strides = [1, 1]} : vector<8x128xf32> to vector<1x128xf32>
    %231 = vector.extract_strided_slice %223 {offsets = [6, 0], sizes = [1, 128], strides = [1, 1]} : vector<8x128xf32> to vector<1x128xf32>
    %232 = vector.extract_strided_slice %223 {offsets = [7, 0], sizes = [1, 128], strides = [1, 1]} : vector<8x128xf32> to vector<1x128xf32>
    %233 = vector.shape_cast %226 : vector<1x128xf32> to vector<1x1x128xf32>
    %234 = vector.broadcast %233 : vector<1x1x128xf32> to vector<2x8x128xf32>
    %235 = arith.mulf %221, %234 : vector<2x8x128xf32>
    %236 = arith.negf %235 : vector<2x8x128xf32>
    %237 = math.exp %236 : vector<2x8x128xf32>
    %cst_35 = arith.constant 1.000000e+00 : f32
    %238 = vector.broadcast %cst_35 : f32 to vector<2x8x128xf32>
    %239 = arith.addf %238, %237 : vector<2x8x128xf32>
    %240 = arith.divf %238, %239 : vector<2x8x128xf32>
    %241 = math.exp %221 : vector<2x8x128xf32>
    %242 = arith.mulf %241, %221 : vector<2x8x128xf32>
    %cst_36 = arith.constant dense<0.000000e+00> : vector<2x8xf32>
    %243 = vector.multi_reduction <add>, %240, %cst_36 [2] : vector<2x8x128xf32> to vector<2x8xf32>
    %244 = vector.shape_cast %243 : vector<2x8xf32> to vector<2x8x1xf32>
    %cst_37 = arith.constant 1.280000e+02 : f32
    %245 = vector.broadcast %cst_37 : f32 to vector<2x8x1xf32>
    %246 = arith.divf %244, %245 : vector<2x8x1xf32>
    %cst_38 = arith.constant dense<0.000000e+00> : vector<2x8xf32>
    %247 = vector.multi_reduction <add>, %241, %cst_38 [2] : vector<2x8x128xf32> to vector<2x8xf32>
    %248 = vector.shape_cast %247 : vector<2x8xf32> to vector<2x8x1xf32>
    %cst_39 = arith.constant 0.000000e+00 : f32
    %249 = vector.broadcast %cst_39 : f32 to vector<2x1xf32>
    %cst_40 = arith.constant 0.000000e+00 : f32
    %250 = vector.broadcast %cst_40 : f32 to vector<2x128xf32>
    %251 = vector.extract_strided_slice %246 {offsets = [0, 0, 0], sizes = [2, 1, 1], strides = [1, 1, 1]} : vector<2x8x1xf32> to vector<2x1x1xf32>
    %252 = vector.shape_cast %251 : vector<2x1x1xf32> to vector<2x1xf32>
    %253 = arith.mulf %252, %249 : vector<2x1xf32>
    %254 = vector.extract_strided_slice %248 {offsets = [0, 0, 0], sizes = [2, 1, 1], strides = [1, 1, 1]} : vector<2x8x1xf32> to vector<2x1x1xf32>
    %255 = vector.shape_cast %254 : vector<2x1x1xf32> to vector<2x1xf32>
    %256 = arith.addf %253, %255 : vector<2x1xf32>
    %257 = vector.extract_strided_slice %240 {offsets = [0, 0, 0], sizes = [2, 1, 128], strides = [1, 1, 1]} : vector<2x8x128xf32> to vector<2x1x128xf32>
    %258 = vector.shape_cast %257 : vector<2x1x128xf32> to vector<2x128xf32>
    %259 = arith.mulf %258, %250 : vector<2x128xf32>
    %260 = vector.extract_strided_slice %242 {offsets = [0, 0, 0], sizes = [2, 1, 128], strides = [1, 1, 1]} : vector<2x8x128xf32> to vector<2x1x128xf32>
    %261 = vector.shape_cast %260 : vector<2x1x128xf32> to vector<2x128xf32>
    %262 = arith.addf %259, %261 : vector<2x128xf32>
    %263 = vector.extract_strided_slice %246 {offsets = [0, 1, 0], sizes = [2, 1, 1], strides = [1, 1, 1]} : vector<2x8x1xf32> to vector<2x1x1xf32>
    %264 = vector.shape_cast %263 : vector<2x1x1xf32> to vector<2x1xf32>
    %265 = arith.mulf %264, %256 : vector<2x1xf32>
    %266 = vector.extract_strided_slice %248 {offsets = [0, 1, 0], sizes = [2, 1, 1], strides = [1, 1, 1]} : vector<2x8x1xf32> to vector<2x1x1xf32>
    %267 = vector.shape_cast %266 : vector<2x1x1xf32> to vector<2x1xf32>
    %268 = arith.addf %265, %267 : vector<2x1xf32>
    %269 = vector.extract_strided_slice %240 {offsets = [0, 1, 0], sizes = [2, 1, 128], strides = [1, 1, 1]} : vector<2x8x128xf32> to vector<2x1x128xf32>
    %270 = vector.shape_cast %269 : vector<2x1x128xf32> to vector<2x128xf32>
    %271 = arith.mulf %270, %262 : vector<2x128xf32>
    %272 = vector.extract_strided_slice %242 {offsets = [0, 1, 0], sizes = [2, 1, 128], strides = [1, 1, 1]} : vector<2x8x128xf32> to vector<2x1x128xf32>
    %273 = vector.shape_cast %272 : vector<2x1x128xf32> to vector<2x128xf32>
    %274 = arith.addf %271, %273 : vector<2x128xf32>
    %275 = vector.extract_strided_slice %246 {offsets = [0, 2, 0], sizes = [2, 1, 1], strides = [1, 1, 1]} : vector<2x8x1xf32> to vector<2x1x1xf32>
    %276 = vector.shape_cast %275 : vector<2x1x1xf32> to vector<2x1xf32>
    %277 = arith.mulf %276, %268 : vector<2x1xf32>
    %278 = vector.extract_strided_slice %248 {offsets = [0, 2, 0], sizes = [2, 1, 1], strides = [1, 1, 1]} : vector<2x8x1xf32> to vector<2x1x1xf32>
    %279 = vector.shape_cast %278 : vector<2x1x1xf32> to vector<2x1xf32>
    %280 = arith.addf %277, %279 : vector<2x1xf32>
    %281 = vector.extract_strided_slice %240 {offsets = [0, 2, 0], sizes = [2, 1, 128], strides = [1, 1, 1]} : vector<2x8x128xf32> to vector<2x1x128xf32>
    %282 = vector.shape_cast %281 : vector<2x1x128xf32> to vector<2x128xf32>
    %283 = arith.mulf %282, %274 : vector<2x128xf32>
    %284 = vector.extract_strided_slice %242 {offsets = [0, 2, 0], sizes = [2, 1, 128], strides = [1, 1, 1]} : vector<2x8x128xf32> to vector<2x1x128xf32>
    %285 = vector.shape_cast %284 : vector<2x1x128xf32> to vector<2x128xf32>
    %286 = arith.addf %283, %285 : vector<2x128xf32>
    %287 = vector.extract_strided_slice %246 {offsets = [0, 3, 0], sizes = [2, 1, 1], strides = [1, 1, 1]} : vector<2x8x1xf32> to vector<2x1x1xf32>
    %288 = vector.shape_cast %287 : vector<2x1x1xf32> to vector<2x1xf32>
    %289 = arith.mulf %288, %280 : vector<2x1xf32>
    %290 = vector.extract_strided_slice %248 {offsets = [0, 3, 0], sizes = [2, 1, 1], strides = [1, 1, 1]} : vector<2x8x1xf32> to vector<2x1x1xf32>
    %291 = vector.shape_cast %290 : vector<2x1x1xf32> to vector<2x1xf32>
    %292 = arith.addf %289, %291 : vector<2x1xf32>
    %293 = vector.extract_strided_slice %240 {offsets = [0, 3, 0], sizes = [2, 1, 128], strides = [1, 1, 1]} : vector<2x8x128xf32> to vector<2x1x128xf32>
    %294 = vector.shape_cast %293 : vector<2x1x128xf32> to vector<2x128xf32>
    %295 = arith.mulf %294, %286 : vector<2x128xf32>
    %296 = vector.extract_strided_slice %242 {offsets = [0, 3, 0], sizes = [2, 1, 128], strides = [1, 1, 1]} : vector<2x8x128xf32> to vector<2x1x128xf32>
    %297 = vector.shape_cast %296 : vector<2x1x128xf32> to vector<2x128xf32>
    %298 = arith.addf %295, %297 : vector<2x128xf32>
    %299 = vector.extract_strided_slice %246 {offsets = [0, 4, 0], sizes = [2, 1, 1], strides = [1, 1, 1]} : vector<2x8x1xf32> to vector<2x1x1xf32>
    %300 = vector.shape_cast %299 : vector<2x1x1xf32> to vector<2x1xf32>
    %301 = arith.mulf %300, %292 : vector<2x1xf32>
    %302 = vector.extract_strided_slice %248 {offsets = [0, 4, 0], sizes = [2, 1, 1], strides = [1, 1, 1]} : vector<2x8x1xf32> to vector<2x1x1xf32>
    %303 = vector.shape_cast %302 : vector<2x1x1xf32> to vector<2x1xf32>
    %304 = arith.addf %301, %303 : vector<2x1xf32>
    %305 = vector.extract_strided_slice %240 {offsets = [0, 4, 0], sizes = [2, 1, 128], strides = [1, 1, 1]} : vector<2x8x128xf32> to vector<2x1x128xf32>
    %306 = vector.shape_cast %305 : vector<2x1x128xf32> to vector<2x128xf32>
    %307 = arith.mulf %306, %298 : vector<2x128xf32>
    %308 = vector.extract_strided_slice %242 {offsets = [0, 4, 0], sizes = [2, 1, 128], strides = [1, 1, 1]} : vector<2x8x128xf32> to vector<2x1x128xf32>
    %309 = vector.shape_cast %308 : vector<2x1x128xf32> to vector<2x128xf32>
    %310 = arith.addf %307, %309 : vector<2x128xf32>
    %311 = vector.extract_strided_slice %246 {offsets = [0, 5, 0], sizes = [2, 1, 1], strides = [1, 1, 1]} : vector<2x8x1xf32> to vector<2x1x1xf32>
    %312 = vector.shape_cast %311 : vector<2x1x1xf32> to vector<2x1xf32>
    %313 = arith.mulf %312, %304 : vector<2x1xf32>
    %314 = vector.extract_strided_slice %248 {offsets = [0, 5, 0], sizes = [2, 1, 1], strides = [1, 1, 1]} : vector<2x8x1xf32> to vector<2x1x1xf32>
    %315 = vector.shape_cast %314 : vector<2x1x1xf32> to vector<2x1xf32>
    %316 = arith.addf %313, %315 : vector<2x1xf32>
    %317 = vector.extract_strided_slice %240 {offsets = [0, 5, 0], sizes = [2, 1, 128], strides = [1, 1, 1]} : vector<2x8x128xf32> to vector<2x1x128xf32>
    %318 = vector.shape_cast %317 : vector<2x1x128xf32> to vector<2x128xf32>
    %319 = arith.mulf %318, %310 : vector<2x128xf32>
    %320 = vector.extract_strided_slice %242 {offsets = [0, 5, 0], sizes = [2, 1, 128], strides = [1, 1, 1]} : vector<2x8x128xf32> to vector<2x1x128xf32>
    %321 = vector.shape_cast %320 : vector<2x1x128xf32> to vector<2x128xf32>
    %322 = arith.addf %319, %321 : vector<2x128xf32>
    %323 = vector.extract_strided_slice %246 {offsets = [0, 6, 0], sizes = [2, 1, 1], strides = [1, 1, 1]} : vector<2x8x1xf32> to vector<2x1x1xf32>
    %324 = vector.shape_cast %323 : vector<2x1x1xf32> to vector<2x1xf32>
    %325 = arith.mulf %324, %316 : vector<2x1xf32>
    %326 = vector.extract_strided_slice %248 {offsets = [0, 6, 0], sizes = [2, 1, 1], strides = [1, 1, 1]} : vector<2x8x1xf32> to vector<2x1x1xf32>
    %327 = vector.shape_cast %326 : vector<2x1x1xf32> to vector<2x1xf32>
    %328 = arith.addf %325, %327 : vector<2x1xf32>
    %329 = vector.extract_strided_slice %240 {offsets = [0, 6, 0], sizes = [2, 1, 128], strides = [1, 1, 1]} : vector<2x8x128xf32> to vector<2x1x128xf32>
    %330 = vector.shape_cast %329 : vector<2x1x128xf32> to vector<2x128xf32>
    %331 = arith.mulf %330, %322 : vector<2x128xf32>
    %332 = vector.extract_strided_slice %242 {offsets = [0, 6, 0], sizes = [2, 1, 128], strides = [1, 1, 1]} : vector<2x8x128xf32> to vector<2x1x128xf32>
    %333 = vector.shape_cast %332 : vector<2x1x128xf32> to vector<2x128xf32>
    %334 = arith.addf %331, %333 : vector<2x128xf32>
    %335 = vector.extract_strided_slice %246 {offsets = [0, 7, 0], sizes = [2, 1, 1], strides = [1, 1, 1]} : vector<2x8x1xf32> to vector<2x1x1xf32>
    %336 = vector.shape_cast %335 : vector<2x1x1xf32> to vector<2x1xf32>
    %337 = arith.mulf %336, %328 : vector<2x1xf32>
    %338 = vector.extract_strided_slice %248 {offsets = [0, 7, 0], sizes = [2, 1, 1], strides = [1, 1, 1]} : vector<2x8x1xf32> to vector<2x1x1xf32>
    %339 = vector.shape_cast %338 : vector<2x1x1xf32> to vector<2x1xf32>
    %340 = arith.addf %337, %339 : vector<2x1xf32>
    %341 = vector.extract_strided_slice %240 {offsets = [0, 7, 0], sizes = [2, 1, 128], strides = [1, 1, 1]} : vector<2x8x128xf32> to vector<2x1x128xf32>
    %342 = vector.shape_cast %341 : vector<2x1x128xf32> to vector<2x128xf32>
    %343 = arith.mulf %342, %334 : vector<2x128xf32>
    %344 = vector.extract_strided_slice %242 {offsets = [0, 7, 0], sizes = [2, 1, 128], strides = [1, 1, 1]} : vector<2x8x128xf32> to vector<2x1x128xf32>
    %345 = vector.shape_cast %344 : vector<2x1x128xf32> to vector<2x128xf32>
    %346 = arith.addf %343, %345 : vector<2x128xf32>
    %347 = vector.shape_cast %256 : vector<2x1xf32> to vector<2x1x1xf32>
    %348 = vector.shape_cast %268 : vector<2x1xf32> to vector<2x1x1xf32>
    %349 = vector.shape_cast %280 : vector<2x1xf32> to vector<2x1x1xf32>
    %350 = vector.shape_cast %292 : vector<2x1xf32> to vector<2x1x1xf32>
    %351 = vector.shape_cast %304 : vector<2x1xf32> to vector<2x1x1xf32>
    %352 = vector.shape_cast %316 : vector<2x1xf32> to vector<2x1x1xf32>
    %353 = vector.shape_cast %328 : vector<2x1xf32> to vector<2x1x1xf32>
    %354 = vector.shape_cast %340 : vector<2x1xf32> to vector<2x1x1xf32>
    %355 = tpu.concatenate %347, %348, %349, %350, %351, %352, %353, %354 in 1 : vector<2x1x1xf32>, vector<2x1x1xf32>, vector<2x1x1xf32>, vector<2x1x1xf32>, vector<2x1x1xf32>, vector<2x1x1xf32>, vector<2x1x1xf32>, vector<2x1x1xf32> -> vector<2x8x1xf32>
    %356 = vector.shape_cast %262 : vector<2x128xf32> to vector<2x1x128xf32>
    %357 = vector.shape_cast %274 : vector<2x128xf32> to vector<2x1x128xf32>
    %358 = vector.shape_cast %286 : vector<2x128xf32> to vector<2x1x128xf32>
    %359 = vector.shape_cast %298 : vector<2x128xf32> to vector<2x1x128xf32>
    %360 = vector.shape_cast %310 : vector<2x128xf32> to vector<2x1x128xf32>
    %361 = vector.shape_cast %322 : vector<2x128xf32> to vector<2x1x128xf32>
    %362 = vector.shape_cast %334 : vector<2x128xf32> to vector<2x1x128xf32>
    %363 = vector.shape_cast %346 : vector<2x128xf32> to vector<2x1x128xf32>
    %364 = tpu.concatenate %356, %357, %358, %359, %360, %361, %362, %363 in 1 : vector<2x1x128xf32>, vector<2x1x128xf32>, vector<2x1x128xf32>, vector<2x1x128xf32>, vector<2x1x128xf32>, vector<2x1x128xf32>, vector<2x1x128xf32>, vector<2x1x128xf32> -> vector<2x8x128xf32>
    %cst_41 = arith.constant 9.99999993E-9 : f32
    %365 = vector.broadcast %cst_41 : f32 to vector<2x8x1xf32>
    %366 = arith.addf %355, %365 : vector<2x8x1xf32>
    %367 = vector.broadcast %366 : vector<2x8x1xf32> to vector<2x8x128xf32>
    %368 = arith.divf %364, %367 : vector<2x8x128xf32>
    %cst_42 = arith.constant dense<0.000000e+00> : vector<2x8xf32>
    %369 = vector.multi_reduction <add>, %368, %cst_42 [2] : vector<2x8x128xf32> to vector<2x8xf32>
    %370 = vector.shape_cast %369 : vector<2x8xf32> to vector<2x8x1xf32>
    %cst_43 = arith.constant 1.280000e+02 : f32
    %371 = vector.broadcast %cst_43 : f32 to vector<2x8x1xf32>
    %372 = arith.divf %370, %371 : vector<2x8x1xf32>
    %373 = vector.broadcast %372 : vector<2x8x1xf32> to vector<2x8x128xf32>
    %374 = arith.subf %368, %373 : vector<2x8x128xf32>
    %375 = arith.mulf %374, %374 : vector<2x8x128xf32>
    %cst_44 = arith.constant dense<0.000000e+00> : vector<2x8xf32>
    %376 = vector.multi_reduction <add>, %375, %cst_44 [2] : vector<2x8x128xf32> to vector<2x8xf32>
    %377 = vector.shape_cast %376 : vector<2x8xf32> to vector<2x8x1xf32>
    %cst_45 = arith.constant 1.280000e+02 : f32
    %378 = vector.broadcast %cst_45 : f32 to vector<2x8x1xf32>
    %379 = arith.divf %377, %378 : vector<2x8x1xf32>
    %380 = vector.broadcast %372 : vector<2x8x1xf32> to vector<2x8x128xf32>
    %381 = arith.subf %368, %380 : vector<2x8x128xf32>
    %cst_46 = arith.constant 9.99999974E-6 : f32
    %382 = vector.broadcast %cst_46 : f32 to vector<2x8x1xf32>
    %383 = arith.addf %379, %382 : vector<2x8x1xf32>
    %384 = math.rsqrt %383 : vector<2x8x1xf32>
    %385 = vector.broadcast %384 : vector<2x8x1xf32> to vector<2x8x128xf32>
    %386 = arith.mulf %381, %385 : vector<2x8x128xf32>
    %387 = vector.shape_cast %227 : vector<1x128xf32> to vector<1x1x128xf32>
    %388 = vector.broadcast %387 : vector<1x1x128xf32> to vector<2x8x128xf32>
    %389 = arith.mulf %386, %388 : vector<2x8x128xf32>
    %390 = vector.shape_cast %228 : vector<1x128xf32> to vector<1x1x128xf32>
    %391 = vector.broadcast %390 : vector<1x1x128xf32> to vector<2x8x128xf32>
    %392 = arith.addf %389, %391 : vector<2x8x128xf32>
    %393 = vector.shape_cast %392 : vector<2x8x128xf32> to vector<16x128xf32>
    %394 = arith.truncf %393 : vector<16x128xf32> to vector<16x128xbf16>
    %cst_47 = arith.constant dense<0.000000e+00> : vector<16x256xf32>
    %395 = tpu.matmul %394, %225, %cst_47 {dimension_numbers = #tpu.dot_dimension_numbers<[1], [0], [0], [1], [0, 0, 1, 1], [], []>} : vector<16x128xbf16>, vector<128x256xbf16>, vector<16x256xf32> -> vector<16x256xf32>
    %396 = vector.extract_strided_slice %395 {offsets = [0, 0], sizes = [16, 128], strides = [1, 1]} : vector<16x256xf32> to vector<16x128xf32>
    %397 = vector.broadcast %231 : vector<1x128xf32> to vector<16x128xf32>
    %398 = arith.addf %396, %397 : vector<16x128xf32>
    %399 = arith.negf %398 : vector<16x128xf32>
    %400 = math.exp %399 : vector<16x128xf32>
    %cst_48 = arith.constant 1.000000e+00 : f32
    %401 = vector.broadcast %cst_48 : f32 to vector<16x128xf32>
    %402 = arith.addf %401, %400 : vector<16x128xf32>
    %403 = arith.divf %401, %402 : vector<16x128xf32>
    %404 = vector.extract_strided_slice %395 {offsets = [0, 128], sizes = [16, 128], strides = [1, 1]} : vector<16x256xf32> to vector<16x128xf32>
    %405 = vector.broadcast %232 : vector<1x128xf32> to vector<16x128xf32>
    %406 = arith.addf %404, %405 : vector<16x128xf32>
    %407 = arith.mulf %403, %406 : vector<16x128xf32>
    %cst_49 = arith.constant dense<0.000000e+00> : vector<16xf32>
    %408 = vector.multi_reduction <add>, %407, %cst_49 [1] : vector<16x128xf32> to vector<16xf32>
    %409 = vector.shape_cast %408 : vector<16xf32> to vector<16x1xf32>
    %cst_50 = arith.constant 1.280000e+02 : f32
    %410 = vector.broadcast %cst_50 : f32 to vector<16x1xf32>
    %411 = arith.divf %409, %410 : vector<16x1xf32>
    %412 = vector.broadcast %411 : vector<16x1xf32> to vector<16x128xf32>
    %413 = arith.subf %407, %412 : vector<16x128xf32>
    %414 = arith.mulf %413, %413 : vector<16x128xf32>
    %cst_51 = arith.constant dense<0.000000e+00> : vector<16xf32>
    %415 = vector.multi_reduction <add>, %414, %cst_51 [1] : vector<16x128xf32> to vector<16xf32>
    %416 = vector.shape_cast %415 : vector<16xf32> to vector<16x1xf32>
    %cst_52 = arith.constant 1.280000e+02 : f32
    %417 = vector.broadcast %cst_52 : f32 to vector<16x1xf32>
    %418 = arith.divf %416, %417 : vector<16x1xf32>
    %419 = vector.broadcast %411 : vector<16x1xf32> to vector<16x128xf32>
    %420 = arith.subf %407, %419 : vector<16x128xf32>
    %cst_53 = arith.constant 9.99999974E-6 : f32
    %421 = vector.broadcast %cst_53 : f32 to vector<16x1xf32>
    %422 = arith.addf %418, %421 : vector<16x1xf32>
    %423 = math.rsqrt %422 : vector<16x1xf32>
    %424 = vector.broadcast %423 : vector<16x1xf32> to vector<16x128xf32>
    %425 = arith.mulf %420, %424 : vector<16x128xf32>
    %426 = vector.broadcast %229 : vector<1x128xf32> to vector<16x128xf32>
    %427 = arith.mulf %425, %426 : vector<16x128xf32>
    %428 = vector.broadcast %230 : vector<1x128xf32> to vector<16x128xf32>
    %429 = arith.addf %427, %428 : vector<16x128xf32>
    %430 = vector.shape_cast %429 : vector<16x128xf32> to vector<2x8x128xf32>
    %431 = arith.addf %221, %430 : vector<2x8x128xf32>
    %cst_54 = arith.constant dense<0.000000e+00> : vector<2x128xf32>
    %432 = vector.multi_reduction <add>, %431, %cst_54 [1] : vector<2x8x128xf32> to vector<2x128xf32>
    %cst_55 = arith.constant 8.000000e+00 : f32
    %433 = vector.broadcast %cst_55 : f32 to vector<2x128xf32>
    %434 = arith.divf %432, %433 : vector<2x128xf32>
    %c0_56 = arith.constant 0 : index
    %c0_57 = arith.constant 0 : index
    %435 = vector.load %arg5[%c0_56, %c0_57] : memref<2x128xf32, #tpu.memory_space<vmem>>, vector<2x128xf32>
    tpu.vector_store %arg5[%c0_56, %c0_57], %434 {strides = array<i32>} : memref<2x128xf32, #tpu.memory_space<vmem>>, vector<2x128xf32>,
    return
  }
  func.func @transform_0(%arg0: i32) -> (i32, i32) {
    %c0_i32 = arith.constant 0 : i32
    %c0_i32_0 = arith.constant 0 : i32
    %c0_i32_1 = arith.constant 0 : i32
    return %c0_i32, %c0_i32_0 : i32, i32
  }
  func.func @transform_1(%arg0: i32) -> (i32, i32) {
    %c0_i32 = arith.constant 0 : i32
    %c0_i32_0 = arith.constant 0 : i32
    %c0_i32_1 = arith.constant 0 : i32
    return %c0_i32, %c0_i32_0 : i32, i32
  }
  func.func @transform_2(%arg0: i32) -> (i32, i32, i32) {
    %c0_i32 = arith.constant 0 : i32
    %c0_i32_0 = arith.constant 0 : i32
    %c0_i32_1 = arith.constant 0 : i32
    %c0_i32_2 = arith.constant 0 : i32
    return %c0_i32, %c0_i32_0, %c0_i32_1 : i32, i32, i32
  }
  func.func @transform_3(%arg0: i32) -> (i32, i32, i32) {
    %c0_i32 = arith.constant 0 : i32
    %c0_i32_0 = arith.constant 0 : i32
    %c0_i32_1 = arith.constant 0 : i32
    %c0_i32_2 = arith.constant 0 : i32
    return %c0_i32, %c0_i32_0, %c0_i32_1 : i32, i32, i32
  }
  func.func @transform_4(%arg0: i32) -> (i32, i32) {
    %c0_i32 = arith.constant 0 : i32
    %c0_i32_0 = arith.constant 0 : i32
    %c0_i32_1 = arith.constant 0 : i32
    return %c0_i32, %c0_i32_0 : i32, i32
  }
}

module attributes {stable_mosaic.version = 11 : i64} {
  func.func @_decoder_kernel(%arg0: i32, %arg1: memref<7xi32, #tpu.memory_space<smem>>, %arg2: memref<1x2x8xf32, #tpu.memory_space<vmem>>, %arg3: memref<2x128xf32, #tpu.memory_space<vmem>>, %arg4: memref<8x128xf32, #tpu.memory_space<vmem>>, %arg5: memref<2x8x128xf32, #tpu.memory_space<vmem>>, %arg6: memref<2x128x256xbf16, #tpu.memory_space<vmem>>, %arg7: memref<128x128xbf16, #tpu.memory_space<vmem>>, %arg8: memref<1x128xf32, #tpu.memory_space<vmem>>, %arg9: memref<1x2x128xf32, #tpu.memory_space<vmem>>, %arg10: memref<2x8xf32, #tpu.memory_space<vmem>>, %arg11: memref<2x2x128xf32, #tpu.memory_space<vmem>>) attributes {dimension_semantics = [#tpu.dimension_semantics<arbitrary>], iteration_bounds = array<i64: 7>, scalar_prefetch = 1 : i64, scratch_operands = 2 : i64, tpu.core_type = #tpu.core_type<tc>, window_params = [{transform_indices = @transform_0, window_bounds = array<i64: 1, 2, 8>}, {pipeline_mode = #tpu.pipeline_mode<synchronous>, transform_indices = @transform_1, window_bounds = array<i64: 2, 128>}, {pipeline_mode = #tpu.pipeline_mode<synchronous>, transform_indices = @transform_2, window_bounds = array<i64: 8, 128>}, {pipeline_mode = #tpu.pipeline_mode<synchronous>, transform_indices = @transform_3, window_bounds = array<i64: 2, 8, 128>}, {pipeline_mode = #tpu.pipeline_mode<synchronous>, transform_indices = @transform_4, window_bounds = array<i64: 2, 128, 256>}, {pipeline_mode = #tpu.pipeline_mode<synchronous>, transform_indices = @transform_5, window_bounds = array<i64: 128, 128>}, {pipeline_mode = #tpu.pipeline_mode<synchronous>, transform_indices = @transform_6, window_bounds = array<i64: 1, 128>}, {transform_indices = @transform_7, window_bounds = array<i64: 1, 2, 128>}]} {
    %c0_i32 = arith.constant 0 : i32
    %0 = arith.cmpi eq, %arg0, %c0_i32 : i32
    %1 = arith.extui %0 : i1 to i32
    %c0_i32_0 = arith.constant 0 : i32
    %2 = arith.cmpi ne, %1, %c0_i32_0 : i32
    scf.if %2 {
      %273 = tpu.iota {dimensions = array<i32: 1>} : vector<2x8xi32>
      %274 = arith.sitofp %273 : vector<2x8xi32> to vector<2x8xf32>
      %cst_79 = arith.constant 1.000000e+00 : f32
      %275 = vector.broadcast %cst_79 : f32 to vector<2x8xf32>
      %276 = arith.cmpf oeq, %274, %275 : vector<2x8xf32>
      %cst_80 = arith.constant 1.000000e+00 : f32
      %cst_81 = arith.constant 0.000000e+00 : f32
      %277 = vector.broadcast %cst_80 : f32 to vector<2x8xf32>
      %278 = vector.broadcast %cst_81 : f32 to vector<2x8xf32>
      %279 = arith.select %276, %277, %278 : vector<2x8xi1>, vector<2x8xf32>
      %c0_82 = arith.constant 0 : index
      %c0_83 = arith.constant 0 : index
      %280 = vector.load %arg10[%c0_82, %c0_83] : memref<2x8xf32, #tpu.memory_space<vmem>>, vector<2x8xf32>
      tpu.vector_store %arg10[%c0_82, %c0_83], %279 {strides = array<i32>} : memref<2x8xf32, #tpu.memory_space<vmem>>, vector<2x8xf32>,
      %c0_84 = arith.constant 0 : index
      %c0_85 = arith.constant 0 : index
      %281 = vector.load %arg3[%c0_84, %c0_85] : memref<2x128xf32, #tpu.memory_space<vmem>>, vector<2x128xf32>
      %c0_86 = arith.constant 0 : index
      %c0_87 = arith.constant 0 : index
      %c0_88 = arith.constant 0 : index
      %282 = vector.load %arg5[%c0_86, %c0_87, %c0_88] : memref<2x8x128xf32, #tpu.memory_space<vmem>>, vector<1x8x128xf32>
      %283 = vector.shape_cast %282 : vector<1x8x128xf32> to vector<8x128xf32>
      %284 = vector.extract_strided_slice %283 {offsets = [1, 0], sizes = [1, 128], strides = [1, 1]} : vector<8x128xf32> to vector<1x128xf32>
      %285 = vector.broadcast %284 : vector<1x128xf32> to vector<2x128xf32>
      %286 = arith.mulf %281, %285 : vector<2x128xf32>
      %287 = arith.negf %286 : vector<2x128xf32>
      %288 = math.exp %287 : vector<2x128xf32>
      %cst_89 = arith.constant 1.000000e+00 : f32
      %289 = vector.broadcast %cst_89 : f32 to vector<2x128xf32>
      %290 = arith.addf %289, %288 : vector<2x128xf32>
      %291 = arith.divf %289, %290 : vector<2x128xf32>
      %292 = arith.mulf %291, %281 : vector<2x128xf32>
      %c0_90 = arith.constant 0 : index
      %c0_91 = arith.constant 0 : index
      %c0_92 = arith.constant 0 : index
      %293 = vector.load %arg11[%c0_90, %c0_91, %c0_92] : memref<2x2x128xf32, #tpu.memory_space<vmem>>, vector<1x2x128xf32>
      %294 = vector.shape_cast %293 : vector<1x2x128xf32> to vector<2x128xf32>
      %295 = vector.shape_cast %292 : vector<2x128xf32> to vector<1x2x128xf32>
      tpu.vector_store %arg11[%c0_90, %c0_91, %c0_92], %295 {strides = array<i32>} : memref<2x2x128xf32, #tpu.memory_space<vmem>>, vector<1x2x128xf32>,
      %c1_93 = arith.constant 1 : index
      %c0_94 = arith.constant 0 : index
      %c0_95 = arith.constant 0 : index
      %296 = vector.load %arg5[%c1_93, %c0_94, %c0_95] : memref<2x8x128xf32, #tpu.memory_space<vmem>>, vector<1x8x128xf32>
      %297 = vector.shape_cast %296 : vector<1x8x128xf32> to vector<8x128xf32>
      %298 = vector.extract_strided_slice %297 {offsets = [1, 0], sizes = [1, 128], strides = [1, 1]} : vector<8x128xf32> to vector<1x128xf32>
      %299 = vector.broadcast %298 : vector<1x128xf32> to vector<2x128xf32>
      %300 = arith.mulf %281, %299 : vector<2x128xf32>
      %301 = arith.negf %300 : vector<2x128xf32>
      %302 = math.exp %301 : vector<2x128xf32>
      %cst_96 = arith.constant 1.000000e+00 : f32
      %303 = vector.broadcast %cst_96 : f32 to vector<2x128xf32>
      %304 = arith.addf %303, %302 : vector<2x128xf32>
      %305 = arith.divf %303, %304 : vector<2x128xf32>
      %306 = arith.mulf %305, %281 : vector<2x128xf32>
      %c1_97 = arith.constant 1 : index
      %c0_98 = arith.constant 0 : index
      %c0_99 = arith.constant 0 : index
      %307 = vector.load %arg11[%c1_97, %c0_98, %c0_99] : memref<2x2x128xf32, #tpu.memory_space<vmem>>, vector<1x2x128xf32>
      %308 = vector.shape_cast %307 : vector<1x2x128xf32> to vector<2x128xf32>
      %309 = vector.shape_cast %306 : vector<2x128xf32> to vector<1x2x128xf32>
      tpu.vector_store %arg11[%c1_97, %c0_98, %c0_99], %309 {strides = array<i32>} : memref<2x2x128xf32, #tpu.memory_space<vmem>>, vector<1x2x128xf32>,
    } else {
    }
    %c0 = arith.constant 0 : index
    %c0_1 = arith.constant 0 : index
    %3 = vector.load %arg10[%c0, %c0_1] : memref<2x8xf32, #tpu.memory_space<vmem>>, vector<2x8xf32>
    %c0_2 = arith.constant 0 : index
    %c0_3 = arith.constant 0 : index
    %4 = vector.load %arg4[%c0_2, %c0_3] : memref<8x128xf32, #tpu.memory_space<vmem>>, vector<8x128xf32>
    %cst = arith.constant dense<0.000000e+00> : vector<2x128xf32>
    %5 = tpu.matmul %3, %4, %cst {dimension_numbers = #tpu.dot_dimension_numbers<[1], [0], [0], [1], [0, 0, 1, 1], [], []>} : vector<2x8xf32>, vector<8x128xf32>, vector<2x128xf32> -> vector<2x128xf32>
    %6 = vector.shape_cast %5 : vector<2x128xf32> to vector<2x1x128xf32>
    %c0_4 = arith.constant 0 : index
    %c0_5 = arith.constant 0 : index
    %c0_6 = arith.constant 0 : index
    %7 = vector.load %arg11[%c0_4, %c0_5, %c0_6] : memref<2x2x128xf32, #tpu.memory_space<vmem>>, vector<1x2x128xf32>
    %8 = vector.shape_cast %7 : vector<1x2x128xf32> to vector<2x128xf32>
    %c0_7 = arith.constant 0 : index
    %c0_8 = arith.constant 0 : index
    %c0_9 = arith.constant 0 : index
    %9 = vector.load %arg5[%c0_7, %c0_8, %c0_9] : memref<2x8x128xf32, #tpu.memory_space<vmem>>, vector<1x8x128xf32>
    %10 = vector.shape_cast %9 : vector<1x8x128xf32> to vector<8x128xf32>
    %c0_10 = arith.constant 0 : index
    %c0_11 = arith.constant 0 : index
    %c0_12 = arith.constant 0 : index
    %11 = vector.load %arg6[%c0_10, %c0_11, %c0_12] : memref<2x128x256xbf16, #tpu.memory_space<vmem>>, vector<1x128x256xbf16>
    %12 = vector.shape_cast %11 : vector<1x128x256xbf16> to vector<128x256xbf16>
    %13 = vector.extract_strided_slice %10 {offsets = [0, 0], sizes = [1, 128], strides = [1, 1]} : vector<8x128xf32> to vector<1x128xf32>
    %14 = vector.extract_strided_slice %10 {offsets = [2, 0], sizes = [1, 128], strides = [1, 1]} : vector<8x128xf32> to vector<1x128xf32>
    %15 = vector.extract_strided_slice %10 {offsets = [3, 0], sizes = [1, 128], strides = [1, 1]} : vector<8x128xf32> to vector<1x128xf32>
    %16 = vector.extract_strided_slice %10 {offsets = [4, 0], sizes = [1, 128], strides = [1, 1]} : vector<8x128xf32> to vector<1x128xf32>
    %17 = vector.extract_strided_slice %10 {offsets = [5, 0], sizes = [1, 128], strides = [1, 1]} : vector<8x128xf32> to vector<1x128xf32>
    %18 = vector.extract_strided_slice %10 {offsets = [6, 0], sizes = [1, 128], strides = [1, 1]} : vector<8x128xf32> to vector<1x128xf32>
    %19 = vector.extract_strided_slice %10 {offsets = [7, 0], sizes = [1, 128], strides = [1, 1]} : vector<8x128xf32> to vector<1x128xf32>
    %20 = vector.shape_cast %13 : vector<1x128xf32> to vector<1x1x128xf32>
    %21 = vector.broadcast %20 : vector<1x1x128xf32> to vector<2x1x128xf32>
    %22 = arith.mulf %6, %21 : vector<2x1x128xf32>
    %23 = arith.negf %22 : vector<2x1x128xf32>
    %24 = math.exp %23 : vector<2x1x128xf32>
    %cst_13 = arith.constant 1.000000e+00 : f32
    %25 = vector.broadcast %cst_13 : f32 to vector<2x1x128xf32>
    %26 = arith.addf %25, %24 : vector<2x1x128xf32>
    %27 = arith.divf %25, %26 : vector<2x1x128xf32>
    %28 = math.exp %6 : vector<2x1x128xf32>
    %29 = arith.mulf %28, %6 : vector<2x1x128xf32>
    %30 = vector.shape_cast %8 : vector<2x128xf32> to vector<2x1x128xf32>
    %31 = arith.addf %29, %30 : vector<2x1x128xf32>
    %cst_14 = arith.constant dense<0.000000e+00> : vector<2x1xf32>
    %32 = vector.multi_reduction <add>, %27, %cst_14 [2] : vector<2x1x128xf32> to vector<2x1xf32>
    %33 = vector.shape_cast %32 : vector<2x1xf32> to vector<2x1x1xf32>
    %cst_15 = arith.constant 1.280000e+02 : f32
    %34 = vector.broadcast %cst_15 : f32 to vector<2x1x1xf32>
    %35 = arith.divf %33, %34 : vector<2x1x1xf32>
    %cst_16 = arith.constant dense<0.000000e+00> : vector<2x1xf32>
    %36 = vector.multi_reduction <add>, %28, %cst_16 [2] : vector<2x1x128xf32> to vector<2x1xf32>
    %37 = vector.shape_cast %36 : vector<2x1xf32> to vector<2x1x1xf32>
    %cst_17 = arith.constant 0.000000e+00 : f32
    %38 = vector.broadcast %cst_17 : f32 to vector<2x1xf32>
    %cst_18 = arith.constant 0.000000e+00 : f32
    %39 = vector.broadcast %cst_18 : f32 to vector<2x128xf32>
    %40 = vector.shape_cast %35 : vector<2x1x1xf32> to vector<2x1xf32>
    %41 = arith.mulf %40, %38 : vector<2x1xf32>
    %42 = vector.shape_cast %37 : vector<2x1x1xf32> to vector<2x1xf32>
    %43 = arith.addf %41, %42 : vector<2x1xf32>
    %44 = vector.shape_cast %27 : vector<2x1x128xf32> to vector<2x128xf32>
    %45 = arith.mulf %44, %39 : vector<2x128xf32>
    %46 = vector.shape_cast %31 : vector<2x1x128xf32> to vector<2x128xf32>
    %47 = arith.addf %45, %46 : vector<2x128xf32>
    %48 = vector.shape_cast %43 : vector<2x1xf32> to vector<2x1x1xf32>
    %49 = vector.shape_cast %47 : vector<2x128xf32> to vector<2x1x128xf32>
    %cst_19 = arith.constant 9.99999993E-9 : f32
    %50 = vector.broadcast %cst_19 : f32 to vector<2x1x1xf32>
    %51 = arith.addf %48, %50 : vector<2x1x1xf32>
    %52 = vector.broadcast %51 : vector<2x1x1xf32> to vector<2x1x128xf32>
    %53 = arith.divf %49, %52 : vector<2x1x128xf32>
    %cst_20 = arith.constant dense<0.000000e+00> : vector<2x1xf32>
    %54 = vector.multi_reduction <add>, %53, %cst_20 [2] : vector<2x1x128xf32> to vector<2x1xf32>
    %55 = vector.shape_cast %54 : vector<2x1xf32> to vector<2x1x1xf32>
    %cst_21 = arith.constant 1.280000e+02 : f32
    %56 = vector.broadcast %cst_21 : f32 to vector<2x1x1xf32>
    %57 = arith.divf %55, %56 : vector<2x1x1xf32>
    %58 = vector.broadcast %57 : vector<2x1x1xf32> to vector<2x1x128xf32>
    %59 = arith.subf %53, %58 : vector<2x1x128xf32>
    %60 = arith.mulf %59, %59 : vector<2x1x128xf32>
    %cst_22 = arith.constant dense<0.000000e+00> : vector<2x1xf32>
    %61 = vector.multi_reduction <add>, %60, %cst_22 [2] : vector<2x1x128xf32> to vector<2x1xf32>
    %62 = vector.shape_cast %61 : vector<2x1xf32> to vector<2x1x1xf32>
    %cst_23 = arith.constant 1.280000e+02 : f32
    %63 = vector.broadcast %cst_23 : f32 to vector<2x1x1xf32>
    %64 = arith.divf %62, %63 : vector<2x1x1xf32>
    %65 = vector.broadcast %57 : vector<2x1x1xf32> to vector<2x1x128xf32>
    %66 = arith.subf %53, %65 : vector<2x1x128xf32>
    %cst_24 = arith.constant 9.99999974E-6 : f32
    %67 = vector.broadcast %cst_24 : f32 to vector<2x1x1xf32>
    %68 = arith.addf %64, %67 : vector<2x1x1xf32>
    %69 = math.rsqrt %68 : vector<2x1x1xf32>
    %70 = vector.broadcast %69 : vector<2x1x1xf32> to vector<2x1x128xf32>
    %71 = arith.mulf %66, %70 : vector<2x1x128xf32>
    %72 = vector.shape_cast %14 : vector<1x128xf32> to vector<1x1x128xf32>
    %73 = vector.broadcast %72 : vector<1x1x128xf32> to vector<2x1x128xf32>
    %74 = arith.mulf %71, %73 : vector<2x1x128xf32>
    %75 = vector.shape_cast %15 : vector<1x128xf32> to vector<1x1x128xf32>
    %76 = vector.broadcast %75 : vector<1x1x128xf32> to vector<2x1x128xf32>
    %77 = arith.addf %74, %76 : vector<2x1x128xf32>
    %78 = vector.shape_cast %77 : vector<2x1x128xf32> to vector<2x128xf32>
    %79 = arith.truncf %78 : vector<2x128xf32> to vector<2x128xbf16>
    %cst_25 = arith.constant dense<0.000000e+00> : vector<2x256xf32>
    %80 = tpu.matmul %79, %12, %cst_25 {dimension_numbers = #tpu.dot_dimension_numbers<[1], [0], [0], [1], [0, 0, 1, 1], [], []>} : vector<2x128xbf16>, vector<128x256xbf16>, vector<2x256xf32> -> vector<2x256xf32>
    %81 = vector.extract_strided_slice %80 {offsets = [0, 0], sizes = [2, 128], strides = [1, 1]} : vector<2x256xf32> to vector<2x128xf32>
    %82 = vector.broadcast %18 : vector<1x128xf32> to vector<2x128xf32>
    %83 = arith.addf %81, %82 : vector<2x128xf32>
    %84 = arith.negf %83 : vector<2x128xf32>
    %85 = math.exp %84 : vector<2x128xf32>
    %cst_26 = arith.constant 1.000000e+00 : f32
    %86 = vector.broadcast %cst_26 : f32 to vector<2x128xf32>
    %87 = arith.addf %86, %85 : vector<2x128xf32>
    %88 = arith.divf %86, %87 : vector<2x128xf32>
    %89 = vector.extract_strided_slice %80 {offsets = [0, 128], sizes = [2, 128], strides = [1, 1]} : vector<2x256xf32> to vector<2x128xf32>
    %90 = vector.broadcast %19 : vector<1x128xf32> to vector<2x128xf32>
    %91 = arith.addf %89, %90 : vector<2x128xf32>
    %92 = arith.mulf %88, %91 : vector<2x128xf32>
    %cst_27 = arith.constant dense<0.000000e+00> : vector<2xf32>
    %93 = vector.multi_reduction <add>, %92, %cst_27 [1] : vector<2x128xf32> to vector<2xf32>
    %94 = vector.shape_cast %93 : vector<2xf32> to vector<2x1xf32>
    %cst_28 = arith.constant 1.280000e+02 : f32
    %95 = vector.broadcast %cst_28 : f32 to vector<2x1xf32>
    %96 = arith.divf %94, %95 : vector<2x1xf32>
    %97 = vector.broadcast %96 : vector<2x1xf32> to vector<2x128xf32>
    %98 = arith.subf %92, %97 : vector<2x128xf32>
    %99 = arith.mulf %98, %98 : vector<2x128xf32>
    %cst_29 = arith.constant dense<0.000000e+00> : vector<2xf32>
    %100 = vector.multi_reduction <add>, %99, %cst_29 [1] : vector<2x128xf32> to vector<2xf32>
    %101 = vector.shape_cast %100 : vector<2xf32> to vector<2x1xf32>
    %cst_30 = arith.constant 1.280000e+02 : f32
    %102 = vector.broadcast %cst_30 : f32 to vector<2x1xf32>
    %103 = arith.divf %101, %102 : vector<2x1xf32>
    %104 = vector.broadcast %96 : vector<2x1xf32> to vector<2x128xf32>
    %105 = arith.subf %92, %104 : vector<2x128xf32>
    %cst_31 = arith.constant 9.99999974E-6 : f32
    %106 = vector.broadcast %cst_31 : f32 to vector<2x1xf32>
    %107 = arith.addf %103, %106 : vector<2x1xf32>
    %108 = math.rsqrt %107 : vector<2x1xf32>
    %109 = vector.broadcast %108 : vector<2x1xf32> to vector<2x128xf32>
    %110 = arith.mulf %105, %109 : vector<2x128xf32>
    %111 = vector.broadcast %16 : vector<1x128xf32> to vector<2x128xf32>
    %112 = arith.mulf %110, %111 : vector<2x128xf32>
    %113 = vector.broadcast %17 : vector<1x128xf32> to vector<2x128xf32>
    %114 = arith.addf %112, %113 : vector<2x128xf32>
    %115 = vector.shape_cast %114 : vector<2x128xf32> to vector<2x1x128xf32>
    %116 = arith.addf %6, %115 : vector<2x1x128xf32>
    %c1 = arith.constant 1 : index
    %c0_32 = arith.constant 0 : index
    %c0_33 = arith.constant 0 : index
    %117 = vector.load %arg11[%c1, %c0_32, %c0_33] : memref<2x2x128xf32, #tpu.memory_space<vmem>>, vector<1x2x128xf32>
    %118 = vector.shape_cast %117 : vector<1x2x128xf32> to vector<2x128xf32>
    %c1_34 = arith.constant 1 : index
    %c0_35 = arith.constant 0 : index
    %c0_36 = arith.constant 0 : index
    %119 = vector.load %arg5[%c1_34, %c0_35, %c0_36] : memref<2x8x128xf32, #tpu.memory_space<vmem>>, vector<1x8x128xf32>
    %120 = vector.shape_cast %119 : vector<1x8x128xf32> to vector<8x128xf32>
    %c1_37 = arith.constant 1 : index
    %c0_38 = arith.constant 0 : index
    %c0_39 = arith.constant 0 : index
    %121 = vector.load %arg6[%c1_37, %c0_38, %c0_39] : memref<2x128x256xbf16, #tpu.memory_space<vmem>>, vector<1x128x256xbf16>
    %122 = vector.shape_cast %121 : vector<1x128x256xbf16> to vector<128x256xbf16>
    %123 = vector.extract_strided_slice %120 {offsets = [0, 0], sizes = [1, 128], strides = [1, 1]} : vector<8x128xf32> to vector<1x128xf32>
    %124 = vector.extract_strided_slice %120 {offsets = [2, 0], sizes = [1, 128], strides = [1, 1]} : vector<8x128xf32> to vector<1x128xf32>
    %125 = vector.extract_strided_slice %120 {offsets = [3, 0], sizes = [1, 128], strides = [1, 1]} : vector<8x128xf32> to vector<1x128xf32>
    %126 = vector.extract_strided_slice %120 {offsets = [4, 0], sizes = [1, 128], strides = [1, 1]} : vector<8x128xf32> to vector<1x128xf32>
    %127 = vector.extract_strided_slice %120 {offsets = [5, 0], sizes = [1, 128], strides = [1, 1]} : vector<8x128xf32> to vector<1x128xf32>
    %128 = vector.extract_strided_slice %120 {offsets = [6, 0], sizes = [1, 128], strides = [1, 1]} : vector<8x128xf32> to vector<1x128xf32>
    %129 = vector.extract_strided_slice %120 {offsets = [7, 0], sizes = [1, 128], strides = [1, 1]} : vector<8x128xf32> to vector<1x128xf32>
    %130 = vector.shape_cast %123 : vector<1x128xf32> to vector<1x1x128xf32>
    %131 = vector.broadcast %130 : vector<1x1x128xf32> to vector<2x1x128xf32>
    %132 = arith.mulf %116, %131 : vector<2x1x128xf32>
    %133 = arith.negf %132 : vector<2x1x128xf32>
    %134 = math.exp %133 : vector<2x1x128xf32>
    %cst_40 = arith.constant 1.000000e+00 : f32
    %135 = vector.broadcast %cst_40 : f32 to vector<2x1x128xf32>
    %136 = arith.addf %135, %134 : vector<2x1x128xf32>
    %137 = arith.divf %135, %136 : vector<2x1x128xf32>
    %138 = math.exp %116 : vector<2x1x128xf32>
    %139 = arith.mulf %138, %116 : vector<2x1x128xf32>
    %140 = vector.shape_cast %118 : vector<2x128xf32> to vector<2x1x128xf32>
    %141 = arith.addf %139, %140 : vector<2x1x128xf32>
    %cst_41 = arith.constant dense<0.000000e+00> : vector<2x1xf32>
    %142 = vector.multi_reduction <add>, %137, %cst_41 [2] : vector<2x1x128xf32> to vector<2x1xf32>
    %143 = vector.shape_cast %142 : vector<2x1xf32> to vector<2x1x1xf32>
    %cst_42 = arith.constant 1.280000e+02 : f32
    %144 = vector.broadcast %cst_42 : f32 to vector<2x1x1xf32>
    %145 = arith.divf %143, %144 : vector<2x1x1xf32>
    %cst_43 = arith.constant dense<0.000000e+00> : vector<2x1xf32>
    %146 = vector.multi_reduction <add>, %138, %cst_43 [2] : vector<2x1x128xf32> to vector<2x1xf32>
    %147 = vector.shape_cast %146 : vector<2x1xf32> to vector<2x1x1xf32>
    %cst_44 = arith.constant 0.000000e+00 : f32
    %148 = vector.broadcast %cst_44 : f32 to vector<2x1xf32>
    %cst_45 = arith.constant 0.000000e+00 : f32
    %149 = vector.broadcast %cst_45 : f32 to vector<2x128xf32>
    %150 = vector.shape_cast %145 : vector<2x1x1xf32> to vector<2x1xf32>
    %151 = arith.mulf %150, %148 : vector<2x1xf32>
    %152 = vector.shape_cast %147 : vector<2x1x1xf32> to vector<2x1xf32>
    %153 = arith.addf %151, %152 : vector<2x1xf32>
    %154 = vector.shape_cast %137 : vector<2x1x128xf32> to vector<2x128xf32>
    %155 = arith.mulf %154, %149 : vector<2x128xf32>
    %156 = vector.shape_cast %141 : vector<2x1x128xf32> to vector<2x128xf32>
    %157 = arith.addf %155, %156 : vector<2x128xf32>
    %158 = vector.shape_cast %153 : vector<2x1xf32> to vector<2x1x1xf32>
    %159 = vector.shape_cast %157 : vector<2x128xf32> to vector<2x1x128xf32>
    %cst_46 = arith.constant 9.99999993E-9 : f32
    %160 = vector.broadcast %cst_46 : f32 to vector<2x1x1xf32>
    %161 = arith.addf %158, %160 : vector<2x1x1xf32>
    %162 = vector.broadcast %161 : vector<2x1x1xf32> to vector<2x1x128xf32>
    %163 = arith.divf %159, %162 : vector<2x1x128xf32>
    %cst_47 = arith.constant dense<0.000000e+00> : vector<2x1xf32>
    %164 = vector.multi_reduction <add>, %163, %cst_47 [2] : vector<2x1x128xf32> to vector<2x1xf32>
    %165 = vector.shape_cast %164 : vector<2x1xf32> to vector<2x1x1xf32>
    %cst_48 = arith.constant 1.280000e+02 : f32
    %166 = vector.broadcast %cst_48 : f32 to vector<2x1x1xf32>
    %167 = arith.divf %165, %166 : vector<2x1x1xf32>
    %168 = vector.broadcast %167 : vector<2x1x1xf32> to vector<2x1x128xf32>
    %169 = arith.subf %163, %168 : vector<2x1x128xf32>
    %170 = arith.mulf %169, %169 : vector<2x1x128xf32>
    %cst_49 = arith.constant dense<0.000000e+00> : vector<2x1xf32>
    %171 = vector.multi_reduction <add>, %170, %cst_49 [2] : vector<2x1x128xf32> to vector<2x1xf32>
    %172 = vector.shape_cast %171 : vector<2x1xf32> to vector<2x1x1xf32>
    %cst_50 = arith.constant 1.280000e+02 : f32
    %173 = vector.broadcast %cst_50 : f32 to vector<2x1x1xf32>
    %174 = arith.divf %172, %173 : vector<2x1x1xf32>
    %175 = vector.broadcast %167 : vector<2x1x1xf32> to vector<2x1x128xf32>
    %176 = arith.subf %163, %175 : vector<2x1x128xf32>
    %cst_51 = arith.constant 9.99999974E-6 : f32
    %177 = vector.broadcast %cst_51 : f32 to vector<2x1x1xf32>
    %178 = arith.addf %174, %177 : vector<2x1x1xf32>
    %179 = math.rsqrt %178 : vector<2x1x1xf32>
    %180 = vector.broadcast %179 : vector<2x1x1xf32> to vector<2x1x128xf32>
    %181 = arith.mulf %176, %180 : vector<2x1x128xf32>
    %182 = vector.shape_cast %124 : vector<1x128xf32> to vector<1x1x128xf32>
    %183 = vector.broadcast %182 : vector<1x1x128xf32> to vector<2x1x128xf32>
    %184 = arith.mulf %181, %183 : vector<2x1x128xf32>
    %185 = vector.shape_cast %125 : vector<1x128xf32> to vector<1x1x128xf32>
    %186 = vector.broadcast %185 : vector<1x1x128xf32> to vector<2x1x128xf32>
    %187 = arith.addf %184, %186 : vector<2x1x128xf32>
    %188 = vector.shape_cast %187 : vector<2x1x128xf32> to vector<2x128xf32>
    %189 = arith.truncf %188 : vector<2x128xf32> to vector<2x128xbf16>
    %cst_52 = arith.constant dense<0.000000e+00> : vector<2x256xf32>
    %190 = tpu.matmul %189, %122, %cst_52 {dimension_numbers = #tpu.dot_dimension_numbers<[1], [0], [0], [1], [0, 0, 1, 1], [], []>} : vector<2x128xbf16>, vector<128x256xbf16>, vector<2x256xf32> -> vector<2x256xf32>
    %191 = vector.extract_strided_slice %190 {offsets = [0, 0], sizes = [2, 128], strides = [1, 1]} : vector<2x256xf32> to vector<2x128xf32>
    %192 = vector.broadcast %128 : vector<1x128xf32> to vector<2x128xf32>
    %193 = arith.addf %191, %192 : vector<2x128xf32>
    %194 = arith.negf %193 : vector<2x128xf32>
    %195 = math.exp %194 : vector<2x128xf32>
    %cst_53 = arith.constant 1.000000e+00 : f32
    %196 = vector.broadcast %cst_53 : f32 to vector<2x128xf32>
    %197 = arith.addf %196, %195 : vector<2x128xf32>
    %198 = arith.divf %196, %197 : vector<2x128xf32>
    %199 = vector.extract_strided_slice %190 {offsets = [0, 128], sizes = [2, 128], strides = [1, 1]} : vector<2x256xf32> to vector<2x128xf32>
    %200 = vector.broadcast %129 : vector<1x128xf32> to vector<2x128xf32>
    %201 = arith.addf %199, %200 : vector<2x128xf32>
    %202 = arith.mulf %198, %201 : vector<2x128xf32>
    %cst_54 = arith.constant dense<0.000000e+00> : vector<2xf32>
    %203 = vector.multi_reduction <add>, %202, %cst_54 [1] : vector<2x128xf32> to vector<2xf32>
    %204 = vector.shape_cast %203 : vector<2xf32> to vector<2x1xf32>
    %cst_55 = arith.constant 1.280000e+02 : f32
    %205 = vector.broadcast %cst_55 : f32 to vector<2x1xf32>
    %206 = arith.divf %204, %205 : vector<2x1xf32>
    %207 = vector.broadcast %206 : vector<2x1xf32> to vector<2x128xf32>
    %208 = arith.subf %202, %207 : vector<2x128xf32>
    %209 = arith.mulf %208, %208 : vector<2x128xf32>
    %cst_56 = arith.constant dense<0.000000e+00> : vector<2xf32>
    %210 = vector.multi_reduction <add>, %209, %cst_56 [1] : vector<2x128xf32> to vector<2xf32>
    %211 = vector.shape_cast %210 : vector<2xf32> to vector<2x1xf32>
    %cst_57 = arith.constant 1.280000e+02 : f32
    %212 = vector.broadcast %cst_57 : f32 to vector<2x1xf32>
    %213 = arith.divf %211, %212 : vector<2x1xf32>
    %214 = vector.broadcast %206 : vector<2x1xf32> to vector<2x128xf32>
    %215 = arith.subf %202, %214 : vector<2x128xf32>
    %cst_58 = arith.constant 9.99999974E-6 : f32
    %216 = vector.broadcast %cst_58 : f32 to vector<2x1xf32>
    %217 = arith.addf %213, %216 : vector<2x1xf32>
    %218 = math.rsqrt %217 : vector<2x1xf32>
    %219 = vector.broadcast %218 : vector<2x1xf32> to vector<2x128xf32>
    %220 = arith.mulf %215, %219 : vector<2x128xf32>
    %221 = vector.broadcast %126 : vector<1x128xf32> to vector<2x128xf32>
    %222 = arith.mulf %220, %221 : vector<2x128xf32>
    %223 = vector.broadcast %127 : vector<1x128xf32> to vector<2x128xf32>
    %224 = arith.addf %222, %223 : vector<2x128xf32>
    %225 = vector.shape_cast %224 : vector<2x128xf32> to vector<2x1x128xf32>
    %226 = arith.addf %116, %225 : vector<2x1x128xf32>
    %227 = vector.shape_cast %226 : vector<2x1x128xf32> to vector<2x128xf32>
    %228 = arith.truncf %227 : vector<2x128xf32> to vector<2x128xbf16>
    %c0_59 = arith.constant 0 : index
    %c0_60 = arith.constant 0 : index
    %229 = vector.load %arg7[%c0_59, %c0_60] : memref<128x128xbf16, #tpu.memory_space<vmem>>, vector<128x128xbf16>
    %cst_61 = arith.constant dense<0.000000e+00> : vector<2x128xf32>
    %230 = tpu.matmul %228, %229, %cst_61 {dimension_numbers = #tpu.dot_dimension_numbers<[1], [0], [0], [1], [0, 0, 1, 1], [], []>} : vector<2x128xbf16>, vector<128x128xbf16>, vector<2x128xf32> -> vector<2x128xf32>
    %c0_62 = arith.constant 0 : index
    %c0_63 = arith.constant 0 : index
    %231 = vector.load %arg8[%c0_62, %c0_63] : memref<1x128xf32, #tpu.memory_space<vmem>>, vector<1x128xf32>
    %232 = vector.broadcast %231 : vector<1x128xf32> to vector<2x128xf32>
    %233 = arith.addf %230, %232 : vector<2x128xf32>
    %c0_64 = arith.constant 0 : index
    %c0_65 = arith.constant 0 : index
    %c0_66 = arith.constant 0 : index
    %234 = vector.load %arg9[%c0_64, %c0_65, %c0_66] : memref<1x2x128xf32, #tpu.memory_space<vmem>>, vector<1x2x128xf32>
    %235 = vector.shape_cast %234 : vector<1x2x128xf32> to vector<2x128xf32>
    %236 = vector.shape_cast %233 : vector<2x128xf32> to vector<1x2x128xf32>
    tpu.vector_store %arg9[%c0_64, %c0_65, %c0_66], %236 {strides = array<i32>} : memref<1x2x128xf32, #tpu.memory_space<vmem>>, vector<1x2x128xf32>,
    %237 = tpu.iota {dimensions = array<i32: 1>} : vector<2x128xi32>
    %238 = arith.sitofp %237 : vector<2x128xi32> to vector<2x128xf32>
    %c3_i32 = arith.constant 3 : i32
    %239 = vector.broadcast %c3_i32 : i32 to vector<2x128xi32>
    %240 = arith.cmpi slt, %237, %239 : vector<2x128xi32>
    %cst_67 = arith.constant -1.000000e+30 : f32
    %241 = vector.broadcast %cst_67 : f32 to vector<2x128xf32>
    %242 = arith.select %240, %233, %241 : vector<2x128xi1>, vector<2x128xf32>
    %cst_68 = arith.constant dense<0xFF800000> : vector<2xf32>
    %243 = vector.multi_reduction <maximumf>, %242, %cst_68 [1] : vector<2x128xf32> to vector<2xf32>
    %244 = vector.shape_cast %243 : vector<2xf32> to vector<2x1xf32>
    %245 = vector.broadcast %244 : vector<2x1xf32> to vector<2x128xf32>
    %246 = arith.cmpf oge, %242, %245 : vector<2x128xf32>
    %247 = arith.andi %246, %240 : vector<2x128xi1>
    %cst_69 = arith.constant 1.280000e+02 : f32
    %248 = vector.broadcast %cst_69 : f32 to vector<2x128xf32>
    %249 = arith.select %247, %238, %248 : vector<2x128xi1>, vector<2x128xf32>
    %cst_70 = arith.constant dense<0x7F800000> : vector<2xf32>
    %250 = vector.multi_reduction <minimumf>, %249, %cst_70 [1] : vector<2x128xf32> to vector<2xf32>
    %251 = vector.shape_cast %250 : vector<2xf32> to vector<2x1xf32>
    %252 = tpu.iota {dimensions = array<i32: 1>} : vector<2x8xi32>
    %253 = arith.sitofp %252 : vector<2x8xi32> to vector<2x8xf32>
    %254 = vector.broadcast %251 : vector<2x1xf32> to vector<2x8xf32>
    %255 = arith.cmpf oeq, %253, %254 : vector<2x8xf32>
    %cst_71 = arith.constant 1.000000e+00 : f32
    %cst_72 = arith.constant 0.000000e+00 : f32
    %256 = vector.broadcast %cst_71 : f32 to vector<2x8xf32>
    %257 = vector.broadcast %cst_72 : f32 to vector<2x8xf32>
    %258 = arith.select %255, %256, %257 : vector<2x8xi1>, vector<2x8xf32>
    %259 = arith.index_cast %arg0 : i32 to index
    %260 = memref.load %arg1[%259] : memref<7xi32, #tpu.memory_space<smem>>
    %c1_i32 = arith.constant 1 : i32
    %261 = arith.cmpi eq, %260, %c1_i32 : i32
    %262 = arith.extui %261 : i1 to i32
    %263 = arith.sitofp %262 : i32 to f32
    %c0_73 = arith.constant 0 : index
    %c0_74 = arith.constant 0 : index
    %c0_75 = arith.constant 0 : index
    %264 = vector.load %arg2[%c0_73, %c0_74, %c0_75] : memref<1x2x8xf32, #tpu.memory_space<vmem>>, vector<1x2x8xf32>
    %265 = vector.shape_cast %264 : vector<1x2x8xf32> to vector<2x8xf32>
    %266 = vector.broadcast %263 : f32 to vector<2x8xf32>
    %267 = arith.mulf %266, %265 : vector<2x8xf32>
    %cst_76 = arith.constant 1.000000e+00 : f32
    %268 = arith.subf %cst_76, %263 : f32
    %269 = vector.broadcast %268 : f32 to vector<2x8xf32>
    %270 = arith.mulf %269, %258 : vector<2x8xf32>
    %271 = arith.addf %267, %270 : vector<2x8xf32>
    %c0_77 = arith.constant 0 : index
    %c0_78 = arith.constant 0 : index
    %272 = vector.load %arg10[%c0_77, %c0_78] : memref<2x8xf32, #tpu.memory_space<vmem>>, vector<2x8xf32>
    tpu.vector_store %arg10[%c0_77, %c0_78], %271 {strides = array<i32>} : memref<2x8xf32, #tpu.memory_space<vmem>>, vector<2x8xf32>,
    return
  }
  func.func @transform_0(%arg0: i32, %arg1: memref<7xi32, #tpu.memory_space<smem>>) -> (i32, i32, i32) {
    %c0_i32 = arith.constant 0 : i32
    %c0_i32_0 = arith.constant 0 : i32
    %c0_i32_1 = arith.constant 0 : i32
    return %arg0, %c0_i32, %c0_i32_0 : i32, i32, i32
  }
  func.func @transform_1(%arg0: i32, %arg1: memref<7xi32, #tpu.memory_space<smem>>) -> (i32, i32) {
    %c0_i32 = arith.constant 0 : i32
    %c0_i32_0 = arith.constant 0 : i32
    %c0_i32_1 = arith.constant 0 : i32
    return %c0_i32, %c0_i32_0 : i32, i32
  }
  func.func @transform_2(%arg0: i32, %arg1: memref<7xi32, #tpu.memory_space<smem>>) -> (i32, i32) {
    %c0_i32 = arith.constant 0 : i32
    %c0_i32_0 = arith.constant 0 : i32
    %c0_i32_1 = arith.constant 0 : i32
    return %c0_i32, %c0_i32_0 : i32, i32
  }
  func.func @transform_3(%arg0: i32, %arg1: memref<7xi32, #tpu.memory_space<smem>>) -> (i32, i32, i32) {
    %c0_i32 = arith.constant 0 : i32
    %c0_i32_0 = arith.constant 0 : i32
    %c0_i32_1 = arith.constant 0 : i32
    %c0_i32_2 = arith.constant 0 : i32
    return %c0_i32, %c0_i32_0, %c0_i32_1 : i32, i32, i32
  }
  func.func @transform_4(%arg0: i32, %arg1: memref<7xi32, #tpu.memory_space<smem>>) -> (i32, i32, i32) {
    %c0_i32 = arith.constant 0 : i32
    %c0_i32_0 = arith.constant 0 : i32
    %c0_i32_1 = arith.constant 0 : i32
    %c0_i32_2 = arith.constant 0 : i32
    return %c0_i32, %c0_i32_0, %c0_i32_1 : i32, i32, i32
  }
  func.func @transform_5(%arg0: i32, %arg1: memref<7xi32, #tpu.memory_space<smem>>) -> (i32, i32) {
    %c0_i32 = arith.constant 0 : i32
    %c0_i32_0 = arith.constant 0 : i32
    %c0_i32_1 = arith.constant 0 : i32
    return %c0_i32, %c0_i32_0 : i32, i32
  }
  func.func @transform_6(%arg0: i32, %arg1: memref<7xi32, #tpu.memory_space<smem>>) -> (i32, i32) {
    %c0_i32 = arith.constant 0 : i32
    %c0_i32_0 = arith.constant 0 : i32
    %c0_i32_1 = arith.constant 0 : i32
    return %c0_i32, %c0_i32_0 : i32, i32
  }
  func.func @transform_7(%arg0: i32, %arg1: memref<7xi32, #tpu.memory_space<smem>>) -> (i32, i32, i32) {
    %c0_i32 = arith.constant 0 : i32
    %c0_i32_0 = arith.constant 0 : i32
    %c0_i32_1 = arith.constant 0 : i32
    return %arg0, %c0_i32, %c0_i32_0 : i32, i32, i32
  }
}

</mosaic_0001>

<bundles_post_ra>
// kernel: _seq2seq_jit.2
= control target key start
LH: loop header
LB: loop body
LE: loop exit
PB: predicated region body
PF: predicated region fallthrough
CT: control target
= control target key end

     0   :  { %9 = vsyncpa [#allocation3], 0  ;;  %s1637_s0 = inlined_call_operand.vmem [shape: s32[16,1], index: 0, kind: input, shape index: {}]   ;;  %s1638_s1 = inlined_call_operand.hbm [shape: f32[8,128], index: 1, kind: input, shape index: {}]   ;;  %s1639_s2 = inlined_call_operand.hbm [shape: f32[2,8,128], index: 2, kind: input, shape index: {}]   ;;  %s1640_s3 = inlined_call_operand.hbm [shape: bf16[2,128,256], index: 3, kind: input, shape index: {}]   ;;  %s1641_s4 = inlined_call_operand.vmem [shape: f32[2,128], index: 4, kind: output, shape index: {}]  }
   0x1   :  { %10 = vsyncpa [#allocation5], 0  ;;  %s1365_s15 = smov [#allocation4]   ;;  %s1295_s19 = scalar_lea.hbm %s1639_s2, 256 }
   0x2   :  { %s28_s16 = sshll.u32 %s1365_s15, 4  ;;  %p1296_p0 = scmp.ne.s32.totalorder %s1639_s2, %s1295_s19  ;;  %s29_s16 = int_to_ptr.vmem [resolvable:$true] %s28_s16 }
   0x3   :  { %p1299_p1 = scmp.lt.u32.totalorder %s1295_s19, %s1639_s2 }
   0x5   :  { %p1301_p2 = pnand %p1299_p1, %p1296_p0 }
   0x7   :  { %1304 = shalt.err (!%p1301_p2)
}
   0x8   :  { %s1305_s24 = scalar_lea.vmem %s29_s16, 256  ;;  %p1310_p4 = scmp.lt.s32.totalorder %s29_s16, %s29_s16 }
   0x9   :  { %p1306_p3 = scmp.ne.s32.totalorder %s29_s16, %s1305_s24  ;;  %p1311_p5 = scmp.lt.s32.totalorder %s1305_s24, %s1305_s24 }
   0xb   :  { %p1312_p6 = por %p1311_p5, %p1310_p4 }
   0xd   :  { %p1313_p7 = pnand %p1312_p6, %p1306_p3 }
   0xf   :  { %1316 = shalt.err (!%p1313_p7)
}
  0x10   :  { %s1366_s25 = smov 128   ;;  %s1367_s26 = smov 8  }
  0x11   :  { %34 = dma.hbm_to_vmem [thread:$0]  %s1639_s2, 256, %s29_s16, [#allocation5], %s1366_s25, %s1366_s25, %s1367_s26  }
  0x12   :  { %s1368_s29 = smov [#allocation2]   ;;  %s1369_s5 = smov [#allocation6]  }
  0x13   :  { %s19_s30 = sshll.u32 %s1368_s29, 4  ;;  %s40_s6 = sshll.u32 %s1369_s5, 4  ;;  %s20_s30 = int_to_ptr.vmem [resolvable:$true] %s19_s30  ;;  %s41_s6 = int_to_ptr.vmem [resolvable:$true] %s40_s6 }
  0x14   :  { %s1317_s9 = scalar_lea.hbm %s1638_s1, 128 }
  0x15   :  { %p1318_p8 = scmp.ne.s32.totalorder %s1638_s1, %s1317_s9  ;;  %p1321_p9 = scmp.lt.u32.totalorder %s1317_s9, %s1638_s1 }
  0x17   :  { %p1323_p10 = pnand %p1321_p9, %p1318_p8 }
  0x19   :  { %1326 = shalt.err (!%p1323_p10)
}
  0x1a   :  { %s1327_s2 = scalar_lea.vmem %s20_s30, 128  ;;  %p1332_p12 = scmp.lt.s32.totalorder %s20_s30, %s20_s30 }
  0x1b   :  { %p1328_p11 = scmp.ne.s32.totalorder %s20_s30, %s1327_s2  ;;  %p1333_p13 = scmp.lt.s32.totalorder %s1327_s2, %s1327_s2 }
  0x1d   :  { %p1334_p0 = por %p1333_p13, %p1332_p12 }
  0x1f   :  { %p1335_p1 = pnand %p1334_p0, %p1328_p11 }
  0x21   :  { %1338 = shalt.err (!%p1335_p1)
}
  0x22   :  { %22 = dma.hbm_to_vmem [thread:$0]  %s1638_s1, 128, %s20_s30, [#allocation3]  }
  0x23   :  { %s1339_s18 = scalar_lea.hbm %s1640_s3, 4096 }
  0x24   :  { %p1340_p2 = scmp.ne.s32.totalorder %s1640_s3, %s1339_s18  ;;  %p1343_p3 = scmp.lt.u32.totalorder %s1339_s18, %s1640_s3 }
  0x26   :  { %p1345_p4 = pnand %p1343_p3, %p1340_p2 }
  0x28   :  { %1348 = shalt.err (!%p1345_p4)
}
  0x29   :  { %s1349_s23 = scalar_lea.vmem %s41_s6, 4096  ;;  %p1354_p6 = scmp.lt.s32.totalorder %s41_s6, %s41_s6 }
  0x2a   :  { %p1350_p5 = scmp.ne.s32.totalorder %s41_s6, %s1349_s23  ;;  %p1355_p7 = scmp.lt.s32.totalorder %s1349_s23, %s1349_s23 }
  0x2c   :  { %p1356_p8 = por %p1355_p7, %p1354_p6 }
  0x2e   :  { %p1357_p9 = pnand %p1356_p8, %p1350_p5 }
  0x30   :  { %1360 = shalt.err (!%p1357_p9)
}
  0x31   :  { %46 = dma.hbm_to_vmem [thread:$0]  %s1640_s3, 4096, %s41_s6, [#allocation5], %s1366_s25, %s1366_s25, %s1367_s26  }
  0x32   :  { %1361 = dma.done.wait [#allocation3], 128  }
  0x33   :  { %1362 = vsyncadd [#allocation3], 4294967168 }
  0x34   :  { %1363 = dma.done.wait [#allocation5], 4352  }
  0x35   :  { %1364 = vsyncadd [#allocation5], 4294962944  ;;  %v1370_v0 = vmov 0   ;;  %v57_v1 = vld [vmem:[%s1637_s0] sm:$0xff]  ;;  %v58_v2 = vld [vmem:[%s1637_s0 + $0x8] sm:$0xff]  ;;  %v61_v6 = vlaneseq  ;;  %vm79_vm0 = vcmask 64512  }
  0x36   :  { %1181 = vset.pattern.permute.xlu0 %v1370_v0  ;;  %1182 = vset.pattern.permute.xlu1 %v1370_v0  ;;  %v59_v3 = vcvt.s32.f32 %v57_v1  ;;  %v60_v4 = vcvt.s32.f32 %v58_v2  ;;  %v78_v5 = vld [vmem:[#allocation2] sm:$0xff]  ;;  %v1371_v10 = vmov 0.0   ;;  %v1448_v16 = vld [vmem:[#allocation4] sm:$0xff]  ;;  %vm361_vm3 = vcmask 1040384  }
  0x37   :  { %559 = vmatprep.mubr.bf16.mxu1 %v1370_v0  ;;  %1169 = vmatprep.subr.mxu0 %v78_v5  ;;  %v62_v7 = vand.u32 127, %v61_v6  ;;  %v1445_v14 = vshrl.u32 %v61_v6, 7  ;;  %vm364_vm4 = vcmask 1041408   ;;  %vm367_vm5 = vcmask 1042432  }
  0x38   :  { %66 = vperm.xlu0 %1181, %v59_v3   ;;  %1170 = vmatpush3.msra.mxu0 %v78_v5  ;;  %vm370_vm6 = vcmask 1043456   ;;  %vm373_vm7 = vcmask 1044480   ;;  %vm376_vm8 = vcmask 1045504   ;;  %vm379_vm9 = vcmask 1046528  }
  0x39   :  { %v63_v8 = vcvt.s32.f32 %v62_v7  ;;  %v180_v15 = vsub.s32 0, %v1445_v14  ;;  %vm1114_vm10 = vcmask 1041409  }
  0x3b   :  { %v181_v17 = vrot.slane %v1448_v16, %v180_v15 }
  0x3c   :  { %71 = vperm.xlu0 %1181, %v60_v4  }
  0xb7   :  { %v67_v9 = vpop.permute.xlu0 %66 }
  0xb8   :  { %vm74_vm1 = vcmp.eq.f32.partialorder %v63_v8, %v67_v9 }
  0xb9   :  { %v76_v11 = vsel %vm74_vm1, 1.0, %v1371_v10 }
  0xba   :  { %1171 = vmatprep.mubr.msk.f32.mxu0 %vm79_vm0, %v76_v11 }
  0xbb   :  { %v72_v12 = vpop.permute.xlu0 %71 }
  0xbc   :  { %vm75_vm2 = vcmp.eq.f32.partialorder %v63_v8, %v72_v12 }
  0xbd   :  { %v77_v13 = vsel %vm75_vm2, 1.0, %v1371_v10 }
  0xbe   :  { %1172 = vmatmul.mubr.msk.f32.vlgmr.msra.gmra.mrb[0].mxu0 %vm79_vm0, %v77_v13 }
  0xbf   :  { %1024 = vmatprep.mubr.bf16.mxu0 %v1370_v0 }
 0x191   :  { %v1453_v18 = vpop.f32.mrb[0].mxu0 }
 0x192   :  { %v183_v19 = vmul.f32 %v1453_v18, %v181_v17  ;;  %v198_v20 = vmul.f32 1.442695, %v1453_v18  ;;  %v1457_v21 = vpop.f32.mrb[1].mxu0 }
 0x193   :  { %v182_v22 = vmul.f32 %v181_v17, %v1457_v21  ;;  %v196_v23 = vmul.f32 1.442695, %v1457_v21 }
 0x194   :  { %v1127_v24 = vmul.f32 -1.442695, %v183_v19  ;;  %1231 = vpow2.f32 %v198_v20 }
 0x195   :  { %v1126_v25 = vmul.f32 -1.442695, %v182_v22  ;;  %1233 = vpow2.f32 %v196_v23 }
 0x196   :  { %1235 = vpow2.f32 %v1127_v24 }
 0x197   :  { %1237 = vpow2.f32 %v1126_v25 }
 0x19e   :  { %v1232_v26 = vpop.eup %1231 }
 0x19f   :  { %v1234_v27 = vpop.eup %1233  ;;  %v1462_v28 = vmul.f32 %v1232_v26, %v1453_v18 }
 0x1a0   :  { %v1236_v29 = vpop.eup %1235  ;;  %v1465_v30 = vmul.f32 %v1234_v27, %v1457_v21  ;;  %209 = vadd.xlane.f32.xlu0 %v1234_v27 }
 0x1a1   :  { %v1238_v31 = vpop.eup %1237  ;;  %v191_v32 = vadd.f32 1.0, %v1236_v29 }
 0x1a2   :  { %v190_v33 = vadd.f32 1.0, %v1238_v31 }
 0x1a3   :  { %1239 = vrcp.f32 %v191_v32 }
 0x1a4   :  { %1241 = vrcp.f32 %v190_v33 }
 0x1ad   :  { %v1467_v34 = vpop.eup %1239 }
 0x1ae   :  { %v1469_v35 = vpop.eup %1241  ;;  %204 = vadd.xlane.f32.xlu1 %v1467_v34  ;;  %v218_v36 = vmul.f32 0.0, %v1467_v34 }
 0x1af   :  { %v217_v37 = vmul.f32 0.0, %v1469_v35 }
 0x1b0   :  { %v220_v38 = vadd.f32 %v218_v36, %v1462_v28 }
 0x1b1   :  { %v219_v39 = vadd.f32 %v217_v37, %v1465_v30 }
 0x1b2   :  { %202 = vadd.xlane.f32.xlu1 %v1469_v35  ;;  %v234_v40 = vrot.slane %v220_v38, 7 }
 0x1b3   :  { %v233_v41 = vrot.slane %v219_v39, 7 }
 0x1b4   :  { %v238_v42 = vmul.f32 %v1467_v34, %v234_v40 }
 0x1b5   :  { %v237_v43 = vmul.f32 %v1469_v35, %v233_v41 }
 0x1b6   :  { %211 = vadd.xlane.f32.xlu1 %v1232_v26  ;;  %v240_v44 = vadd.f32 %v238_v42, %v1462_v28 }
 0x1b7   :  { %v239_v45 = vadd.f32 %v237_v43, %v1465_v30 }
 0x1b8   :  { %v254_v46 = vrot.slane %v240_v44, 7  ;;  %v383_v47 = vsel %vm361_vm3, %v220_v38, %v240_v44 }
 0x1b9   :  { %v253_v48 = vrot.slane %v239_v45, 7  ;;  %v382_v49 = vsel %vm361_vm3, %v219_v39, %v239_v45 }
 0x1ba   :  { %v258_v50 = vmul.f32 %v1467_v34, %v254_v46 }
 0x1bb   :  { %v257_v51 = vmul.f32 %v1469_v35, %v253_v48 }
 0x1bc   :  { %v260_v52 = vadd.f32 %v258_v50, %v1462_v28 }
 0x1bd   :  { %v259_v53 = vadd.f32 %v257_v51, %v1465_v30 }
 0x1be   :  { %v274_v54 = vrot.slane %v260_v52, 7  ;;  %v385_v55 = vsel %vm364_vm4, %v383_v47, %v260_v52 }
 0x1bf   :  { %v273_v56 = vrot.slane %v259_v53, 7  ;;  %v384_v57 = vsel %vm364_vm4, %v382_v49, %v259_v53 }
 0x1c0   :  { %v278_v58 = vmul.f32 %v1467_v34, %v274_v54 }
 0x1c1   :  { %v277_v59 = vmul.f32 %v1469_v35, %v273_v56 }
 0x1c2   :  { %v280_v60 = vadd.f32 %v278_v58, %v1462_v28 }
 0x1c3   :  { %v279_v61 = vadd.f32 %v277_v59, %v1465_v30 }
 0x1c4   :  { %v294_v62 = vrot.slane %v280_v60, 7  ;;  %v387_v63 = vsel %vm367_vm5, %v385_v55, %v280_v60 }
 0x1c5   :  { %v293_v0 = vrot.slane %v279_v61, 7  ;;  %v386_v1 = vsel %vm367_vm5, %v384_v57, %v279_v61 }
 0x1c6   :  { %v298_v2 = vmul.f32 %v1467_v34, %v294_v62 }
 0x1c7   :  { %v297_v3 = vmul.f32 %v1469_v35, %v293_v0 }
 0x1c8   :  { %v300_v4 = vadd.f32 %v298_v2, %v1462_v28 }
 0x1c9   :  { %v299_v5 = vadd.f32 %v297_v3, %v1465_v30 }
 0x1ca   :  { %v314_v6 = vrot.slane %v300_v4, 7  ;;  %v389_v7 = vsel %vm370_vm6, %v387_v63, %v300_v4 }
 0x1cb   :  { %v313_v8 = vrot.slane %v299_v5, 7  ;;  %v388_v9 = vsel %vm370_vm6, %v386_v1, %v299_v5 }
 0x1cc   :  { %v318_v10 = vmul.f32 %v1467_v34, %v314_v6 }
 0x1cd   :  { %v317_v11 = vmul.f32 %v1469_v35, %v313_v8 }
 0x1ce   :  { %v320_v12 = vadd.f32 %v318_v10, %v1462_v28 }
 0x1cf   :  { %v319_v13 = vadd.f32 %v317_v11, %v1465_v30 }
 0x1d0   :  { %v334_v17 = vrot.slane %v320_v12, 7  ;;  %v391_v19 = vsel %vm373_vm7, %v389_v7, %v320_v12 }
 0x1d1   :  { %v333_v20 = vrot.slane %v319_v13, 7  ;;  %v390_v22 = vsel %vm373_vm7, %v388_v9, %v319_v13 }
 0x1d2   :  { %v338_v23 = vmul.f32 %v1467_v34, %v334_v17 }
 0x1d3   :  { %v337_v24 = vmul.f32 %v1469_v35, %v333_v20 }
 0x1d4   :  { %v340_v25 = vadd.f32 %v338_v23, %v1462_v28 }
 0x1d5   :  { %v339_v26 = vadd.f32 %v337_v24, %v1465_v30 }
 0x1d6   :  { %v354_v27 = vrot.slane %v340_v25, 7  ;;  %v393_v29 = vsel %vm376_vm8, %v391_v19, %v340_v25 }
 0x1d7   :  { %v353_v31 = vrot.slane %v339_v26, 7  ;;  %v392_v32 = vsel %vm376_vm8, %v390_v22, %v339_v26 }
 0x1d8   :  { %v358_v33 = vmul.f32 %v1467_v34, %v354_v27 }
 0x1d9   :  { %v357_v36 = vmul.f32 %v1469_v35, %v353_v31 }
 0x1da   :  { %v360_v37 = vadd.f32 %v358_v33, %v1462_v28 }
 0x1db   :  { %v359_v38 = vadd.f32 %v357_v36, %v1465_v30 }
 0x1dc   :  { %v1518_v39 = vsel %vm379_vm9, %v393_v29, %v360_v37 }
 0x1dd   :  { %v1521_v40 = vsel %vm379_vm9, %v392_v32, %v359_v38 }
 0x22d   :  { %v210_v34 = vpop.xlane.xlu0 %209 }
 0x23b   :  { %v205_v41 = vpop.xlane.xlu1 %204 }
 0x23c   :  { %v208_v42 = vmul.f32 0.0078125, %v205_v41 }
 0x23e   :  { %v214_v45 = vmul.f32 0.0, %v208_v42 }
 0x23f   :  { %v203_v43 = vpop.xlane.xlu1 %202 }
 0x240   :  { %v207_v44 = vmul.f32 0.0078125, %v203_v43 }
 0x242   :  { %v213_v46 = vmul.f32 0.0, %v207_v44 }
 0x243   :  { %v212_v47 = vpop.xlane.xlu1 %211 }
 0x244   :  { %v216_v48 = vadd.f32 %v214_v45, %v212_v47  ;;  %v215_v35 = vadd.f32 %v213_v46, %v210_v34 }
 0x246   :  { %v224_v49 = vrot.slane %v216_v48, 7  ;;  %v223_v28 = vrot.slane %v215_v35, 7 }
 0x248   :  { %v228_v50 = vmul.f32 %v224_v49, %v208_v42  ;;  %v227_v30 = vmul.f32 %v223_v28, %v207_v44 }
 0x24a   :  { %v230_v51 = vadd.f32 %v228_v50, %v212_v47  ;;  %v229_v52 = vadd.f32 %v227_v30, %v210_v34 }
 0x24c   :  { %v244_v53 = vrot.slane %v230_v51, 7  ;;  %v243_v54 = vrot.slane %v229_v52, 7  ;;  %v362_v25 = vsel %vm361_vm3, %v215_v35, %v229_v52  ;;  %v363_v33 = vsel %vm361_vm3, %v216_v48, %v230_v51 }
 0x24e   :  { %v248_v55 = vmul.f32 %v244_v53, %v208_v42  ;;  %v247_v56 = vmul.f32 %v243_v54, %v207_v44  ;;  %v1183_v54 = vld [vmem:[#allocation6 + $0x4] ss:$8 sps:$4 sm:$0xff]  }
 0x24f   :  { %527 = vmatprep.subr.bf16.mxu1 %v1183_v54 }
 0x250   :  { %v250_v57 = vadd.f32 %v248_v55, %v212_v47  ;;  %v249_v58 = vadd.f32 %v247_v56, %v210_v34  ;;  %v1185_v55 = vld [vmem:[#allocation6] ss:$8 sps:$4 sm:$0xff]   ;;  %v1186_v56 = vld [vmem:[#allocation6 + $0x14] ss:$8 sps:$4 sm:$0xff]  }
 0x251   :  { %528 = vmatpush1.bf16.msra.mxu1 %v1185_v55 }
 0x252   :  { %v263_v59 = vrot.slane %v249_v58, 7  ;;  %v264_v60 = vrot.slane %v250_v57, 7  ;;  %v365_v27 = vsel %vm364_vm4, %v362_v25, %v249_v58  ;;  %v366_v37 = vsel %vm364_vm4, %v363_v33, %v250_v57  ;;  %529 = vmatprep.subr.bf16.mxu1 %v1186_v56 }
 0x254   :  { %v267_v61 = vmul.f32 %v263_v59, %v207_v44  ;;  %v268_v62 = vmul.f32 %v264_v60, %v208_v42 }
 0x256   :  { %v269_v63 = vadd.f32 %v267_v61, %v210_v34  ;;  %v270_v0 = vadd.f32 %v268_v62, %v212_v47 }
 0x258   :  { %v283_v1 = vrot.slane %v269_v63, 7  ;;  %v284_v2 = vrot.slane %v270_v0, 7  ;;  %v368_v31 = vsel %vm367_vm5, %v365_v27, %v269_v63  ;;  %v369_v45 = vsel %vm367_vm5, %v366_v37, %v270_v0  ;;  %v1188_v0 = vld [vmem:[#allocation6 + $0x10] ss:$8 sps:$4 sm:$0xff]  }
 0x259   :  { %530 = vmatpush1.bf16.msra.mxu1 %v1188_v0  ;;  %v442_v27 = vsub.s32 3, %v1445_v14 }
 0x25a   :  { %v287_v3 = vmul.f32 %v283_v1, %v207_v44  ;;  %v288_v4 = vmul.f32 %v284_v2, %v208_v42  ;;  %v1191_v1 = vld [vmem:[#allocation6 + $0x20] ss:$8 sps:$4 sm:$0xff]   ;;  %v1192_v2 = vld [vmem:[#allocation6 + $0x34] ss:$8 sps:$4 sm:$0xff]  }
 0x25b   :  { %v443_v33 = vrot.slane %v1448_v16, %v442_v27 }
 0x25c   :  { %v289_v5 = vadd.f32 %v287_v3, %v210_v34  ;;  %v290_v6 = vadd.f32 %v288_v4, %v212_v47  ;;  %v1194_v3 = vld [vmem:[#allocation6 + $0x30] ss:$8 sps:$4 sm:$0xff]   ;;  %v1195_v4 = vld [vmem:[#allocation6 + $0x44] ss:$8 sps:$4 sm:$0xff]  }
 0x25e   :  { %v303_v7 = vrot.slane %v289_v5, 7  ;;  %v304_v8 = vrot.slane %v290_v6, 7  ;;  %v371_v36 = vsel %vm370_vm6, %v368_v31, %v289_v5  ;;  %v372_v35 = vsel %vm370_vm6, %v369_v45, %v290_v6  ;;  %v1197_v5 = vld [vmem:[#allocation6 + $0x40] ss:$8 sps:$4 sm:$0xff]   ;;  %v1198_v6 = vld [vmem:[#allocation6 + $0x54] ss:$8 sps:$4 sm:$0xff]  }
 0x260   :  { %v307_v9 = vmul.f32 %v303_v7, %v207_v44  ;;  %v308_v10 = vmul.f32 %v304_v8, %v208_v42  ;;  %v1200_v7 = vld [vmem:[#allocation6 + $0x50] ss:$8 sps:$4 sm:$0xff]   ;;  %v1201_v8 = vld [vmem:[#allocation6 + $0x64] ss:$8 sps:$4 sm:$0xff]  }
 0x262   :  { %v309_v11 = vadd.f32 %v307_v9, %v210_v34  ;;  %v310_v12 = vadd.f32 %v308_v10, %v212_v47  ;;  %v1203_v9 = vld [vmem:[#allocation6 + $0x60] ss:$8 sps:$4 sm:$0xff]   ;;  %v1204_v10 = vld [vmem:[#allocation6 + $0x74] ss:$8 sps:$4 sm:$0xff]  }
 0x264   :  { %v323_v13 = vrot.slane %v309_v11, 7  ;;  %v324_v17 = vrot.slane %v310_v12, 7  ;;  %v374_v41 = vsel %vm373_vm7, %v371_v36, %v309_v11  ;;  %v1206_v11 = vld [vmem:[#allocation6 + $0x70] ss:$8 sps:$4 sm:$0xff]  }
 0x266   :  { %v327_v19 = vmul.f32 %v323_v13, %v207_v44  ;;  %v328_v20 = vmul.f32 %v324_v17, %v208_v42 }
 0x268   :  { %v329_v22 = vadd.f32 %v327_v19, %v210_v34  ;;  %v330_v23 = vadd.f32 %v328_v20, %v212_v47 }
 0x26a   :  { %v343_v24 = vrot.slane %v329_v22, 7  ;;  %v344_v26 = vrot.slane %v330_v23, 7  ;;  %v377_v46 = vsel %vm376_vm8, %v374_v41, %v329_v22 }
 0x26c   :  { %v347_v29 = vmul.f32 %v343_v24, %v207_v44  ;;  %v348_v32 = vmul.f32 %v344_v26, %v208_v42  ;;  %v375_v42 = vsel %vm373_vm7, %v372_v35, %v310_v12 }
 0x26d   :  { %v378_v48 = vsel %vm376_vm8, %v375_v42, %v330_v23  ;;  %v436_v23 = vsub.s32 2, %v1445_v14 }
 0x26e   :  { %v349_v38 = vadd.f32 %v347_v29, %v210_v34  ;;  %v350_v43 = vadd.f32 %v348_v32, %v212_v47 }
 0x26f   :  { %v437_v26 = vrot.slane %v1448_v16, %v436_v23 }
 0x270   :  { %v380_v44 = vsel %vm379_vm9, %v377_v46, %v349_v38  ;;  %v381_v28 = vsel %vm379_vm9, %v378_v48, %v350_v43  ;;  %v572_v43 = vsub.s32 6, %v1445_v14 }
 0x271   :  { %v396_v49 = vadd.f32 1e-08, %v380_v44  ;;  %v397_v34 = vadd.f32 1e-08, %v381_v28 }
 0x272   :  { %v573_v45 = vrot.slane %v1448_v16, %v572_v43 }
 0x273   :  { %400 = vperm.xlu1 %1182, %v396_v49  }
 0x277   :  { %405 = vperm.xlu1 %1182, %v397_v34  }
 0x2f2   :  { %v401_v50 = vpop.permute.xlu1 %400 }
 0x2f3   :  { %1243 = vrcp.f32 %v401_v50 }
 0x2f6   :  { %v406_v47 = vpop.permute.xlu1 %405 }
 0x2f7   :  { %1245 = vrcp.f32 %v406_v47 }
 0x2fd   :  { %v1244_v30 = vpop.eup %1243 }
 0x2fe   :  { %v409_v51 = vmul.f32 %v1244_v30, %v1521_v40 }
 0x300   :  { %412 = vadd.xlane.f32.xlu1 %v409_v51 }
 0x301   :  { %v1246_v52 = vpop.eup %1245 }
 0x302   :  { %v411_v53 = vmul.f32 %v1246_v52, %v1518_v39  ;;  %v1189_v39 = vld [vmem:[#allocation6 + $0x24] ss:$8 sps:$4 sm:$0xff]   ;;  %v590_v52 = vsub.s32 7, %v1445_v14 }
 0x303   :  { %531 = vmatprep.subr.bf16.mxu1 %v1189_v39 }
 0x304   :  { %414 = vadd.xlane.f32.xlu0 %v411_v53  ;;  %532 = vmatpush1.bf16.msra.mxu1 %v1191_v1 }
 0x305   :  { %533 = vmatprep.subr.bf16.mxu1 %v1192_v2 }
 0x308   :  { %534 = vmatpush1.bf16.msra.mxu1 %v1194_v3 }
 0x309   :  { %535 = vmatprep.subr.bf16.mxu1 %v1195_v4 }
 0x30c   :  { %536 = vmatpush1.bf16.msra.mxu1 %v1197_v5 }
 0x30d   :  { %537 = vmatprep.subr.bf16.mxu1 %v1198_v6 }
 0x310   :  { %538 = vmatpush1.bf16.msra.mxu1 %v1200_v7 }
 0x311   :  { %539 = vmatprep.subr.bf16.mxu1 %v1201_v8  ;;  %v620_v8 = vsub.s32 4, %v1445_v14 }
 0x314   :  { %540 = vmatpush1.bf16.msra.mxu1 %v1203_v9  ;;  %v626_v9 = vsub.s32 5, %v1445_v14 }
 0x315   :  { %541 = vmatprep.subr.bf16.mxu1 %v1204_v10  ;;  %v621_v10 = vrot.slane %v1448_v16, %v620_v8 }
 0x318   :  { %542 = vmatpush1.bf16.msra.mxu1 %v1206_v11 }
 0x38d   :  { %v413_v57 = vpop.xlane.xlu1 %412 }
 0x38e   :  { %v416_v58 = vmul.f32 0.0078125, %v413_v57 }
 0x390   :  { %v418_v59 = vsub.f32 %v409_v51, %v416_v58 }
 0x391   :  { %v415_v60 = vpop.xlane.xlu0 %414 }
 0x392   :  { %v417_v61 = vmul.f32 0.0078125, %v415_v60  ;;  %v420_v62 = vmul.f32 %v418_v59, %v418_v59 }
 0x394   :  { %v419_v63 = vsub.f32 %v411_v53, %v417_v61  ;;  %422 = vadd.xlane.f32.xlu0 %v420_v62  ;;  %v591_v53 = vrot.slane %v1448_v16, %v590_v52 }
 0x396   :  { %v421_v40 = vmul.f32 %v419_v63, %v419_v63 }
 0x398   :  { %424 = vadd.xlane.f32.xlu0 %v421_v40 }
 0x421   :  { %v423_v12 = vpop.xlane.xlu0 %422 }
 0x422   :  { %v426_v13 = vmul.f32 0.0078125, %v423_v12  ;;  %v627_v12 = vrot.slane %v1448_v16, %v626_v9 }
 0x424   :  { %v428_v17 = vadd.f32 1e-05, %v426_v13 }
 0x425   :  { %v425_v19 = vpop.xlane.xlu0 %424 }
 0x426   :  { %1247 = vrsqrt.f32 %v428_v17  ;;  %v427_v20 = vmul.f32 0.0078125, %v425_v19  ;;  %v1563_v17 = vld [vmem:[#allocation4 + $0x8] sm:$0xff] }
 0x428   :  { %v429_v22 = vadd.f32 1e-05, %v427_v20 }
 0x42a   :  { %1249 = vrsqrt.f32 %v429_v22  ;;  %v654_v22 = vrot.slane %v1563_v17, %v180_v15 }
 0x430   :  { %v1248_v24 = vpop.eup %1247 }
 0x431   :  { %v432_v25 = vmul.f32 %v1248_v24, %v418_v59 }
 0x433   :  { %v438_v32 = vmul.f32 %v437_v26, %v432_v25 }
 0x434   :  { %v1250_v29 = vpop.eup %1249 }
 0x435   :  { %v433_v31 = vmul.f32 %v1250_v29, %v419_v63  ;;  %v444_v37 = vadd.f32 %v443_v33, %v438_v32 }
 0x437   :  { %v439_v36 = vmul.f32 %v437_v26, %v433_v31 }
 0x439   :  { %v445_v38 = vadd.f32 %v443_v33, %v439_v36 }
 0x43b   :  { %v446_v41 = vpack.c.bf16 %v445_v38, %v444_v37 }
 0x43d   :  { %560 = vmatmul.mubr.bf16.vlgmr.msra.gmra.mrb[0].mxu1 %v446_v41 }
 0x510   :  { %v561_v46 = vpop.f32.mrb[0].mxu1 }
 0x511   :  { %v574_v35 = vadd.f32 %v573_v45, %v561_v46  ;;  %v563_v44 = vpop.f32.mrb[1].mxu1 }
 0x512   :  { %v565_v42 = vpop.f32.mrb[2].mxu1  ;;  %v592_v54 = vadd.f32 %v591_v53, %v563_v44 }
 0x513   :  { %v1144_v49 = vmul.f32 -1.442695, %v574_v35  ;;  %v575_v48 = vadd.f32 %v573_v45, %v565_v42  ;;  %v567_v28 = vpop.f32.mrb[3].mxu1 }
 0x514   :  { %v593_v56 = vadd.f32 %v591_v53, %v567_v28 }
 0x515   :  { %1251 = vpow2.f32 %v1144_v49  ;;  %v1145_v34 = vmul.f32 -1.442695, %v575_v48 }
 0x517   :  { %1253 = vpow2.f32 %v1145_v34 }
 0x51f   :  { %v1252_v50 = vpop.eup %1251 }
 0x520   :  { %v582_v47 = vadd.f32 1.0, %v1252_v50 }
 0x521   :  { %v1254_v30 = vpop.eup %1253 }
 0x522   :  { %1255 = vrcp.f32 %v582_v47  ;;  %v583_v51 = vadd.f32 1.0, %v1254_v30 }
 0x524   :  { %1257 = vrcp.f32 %v583_v51 }
 0x52c   :  { %v1256_v55 = vpop.eup %1255 }
 0x52d   :  { %v594_v57 = vmul.f32 %v1256_v55, %v592_v54 }
 0x52e   :  { %v1258_v58 = vpop.eup %1257 }
 0x52f   :  { %596 = vadd.xlane.f32.xlu0 %v594_v57  ;;  %v595_v59 = vmul.f32 %v1258_v58, %v593_v56 }
 0x533   :  { %598 = vadd.xlane.f32.xlu0 %v595_v59 }
 0x5bc   :  { %v597_v60 = vpop.xlane.xlu0 %596 }
 0x5bd   :  { %v600_v61 = vmul.f32 0.0078125, %v597_v60 }
 0x5bf   :  { %v602_v62 = vsub.f32 %v594_v57, %v600_v61 }
 0x5c0   :  { %v599_v63 = vpop.xlane.xlu0 %598 }
 0x5c1   :  { %v601_v40 = vmul.f32 0.0078125, %v599_v63  ;;  %v604_v0 = vmul.f32 %v602_v62, %v602_v62 }
 0x5c3   :  { %v603_v39 = vsub.f32 %v595_v59, %v601_v40  ;;  %606 = vadd.xlane.f32.xlu0 %v604_v0 }
 0x5c5   :  { %v605_v1 = vmul.f32 %v603_v39, %v603_v39 }
 0x5c7   :  { %608 = vadd.xlane.f32.xlu0 %v605_v1 }
 0x650   :  { %v607_v2 = vpop.xlane.xlu0 %606 }
 0x651   :  { %v610_v3 = vmul.f32 0.0078125, %v607_v2 }
 0x653   :  { %v612_v4 = vadd.f32 1e-05, %v610_v3 }
 0x654   :  { %v609_v5 = vpop.xlane.xlu0 %608 }
 0x655   :  { %1259 = vrsqrt.f32 %v612_v4  ;;  %v611_v6 = vmul.f32 0.0078125, %v609_v5 }
 0x657   :  { %v613_v7 = vadd.f32 1e-05, %v611_v6 }
 0x659   :  { %1261 = vrsqrt.f32 %v613_v7 }
 0x65f   :  { %v1260_v11 = vpop.eup %1259 }
 0x660   :  { %v616_v13 = vmul.f32 %v1260_v11, %v602_v62 }
 0x662   :  { %v622_v19 = vmul.f32 %v621_v10, %v616_v13 }
 0x663   :  { %v1262_v20 = vpop.eup %1261 }
 0x664   :  { %v628_v24 = vadd.f32 %v627_v12, %v622_v19  ;;  %v617_v25 = vmul.f32 %v1262_v20, %v603_v39 }
 0x666   :  { %v1569_v26 = vadd.f32 %v628_v24, %v1457_v21  ;;  %v623_v29 = vmul.f32 %v621_v10, %v617_v25 }
 0x668   :  { %v655_v31 = vmul.f32 %v654_v22, %v1569_v26  ;;  %v629_v32 = vadd.f32 %v627_v12, %v623_v29  ;;  %v669_v15 = vmul.f32 1.442695, %v1569_v26 }
 0x66a   :  { %v1146_v33 = vmul.f32 -1.442695, %v655_v31  ;;  %v1573_v16 = vadd.f32 %v1453_v18, %v629_v32 }
 0x66c   :  { %1263 = vpow2.f32 %v1146_v33  ;;  %v656_v36 = vmul.f32 %v654_v22, %v1573_v16  ;;  %v671_v21 = vmul.f32 1.442695, %v1573_v16 }
 0x66e   :  { %v1147_v37 = vmul.f32 -1.442695, %v656_v36 }
 0x670   :  { %1265 = vpow2.f32 %v1147_v37 }
 0x671   :  { %1267 = vpow2.f32 %v669_v15 }
 0x676   :  { %v1264_v38 = vpop.eup %1263 }
 0x677   :  { %v663_v41 = vadd.f32 1.0, %v1264_v38 }
 0x679   :  { %1269 = vrcp.f32 %v663_v41 }
 0x67a   :  { %v1266_v45 = vpop.eup %1265  ;;  %1271 = vpow2.f32 %v671_v21 }
 0x67b   :  { %v664_v46 = vadd.f32 1.0, %v1266_v45  ;;  %v1268_v35 = vpop.eup %1267 }
 0x67c   :  { %v673_v44 = vmul.f32 %v1268_v35, %v1569_v26 }
 0x67d   :  { %1273 = vrcp.f32 %v664_v46 }
 0x683   :  { %v1270_v18 = vpop.eup %1269 }
 0x684   :  { %675 = vadd.xlane.f32.xlu0 %v1270_v18  ;;  %v689_v42 = vmul.f32 0.0, %v1270_v18  ;;  %v1272_v49 = vpop.eup %1271 }
 0x685   :  { %v674_v34 = vmul.f32 %v1272_v49, %v1573_v16 }
 0x686   :  { %v691_v48 = vadd.f32 %v689_v42, %v673_v44 }
 0x687   :  { %v1274_v28 = vpop.eup %1273 }
 0x688   :  { %681 = vadd.xlane.f32.xlu0 %v1268_v35  ;;  %677 = vadd.xlane.f32.xlu1 %v1274_v28  ;;  %v705_v50 = vrot.slane %v691_v48, 7  ;;  %v690_v47 = vmul.f32 0.0, %v1274_v28 }
 0x68a   :  { %v709_v30 = vmul.f32 %v1270_v18, %v705_v50  ;;  %v692_v51 = vadd.f32 %v690_v47, %v674_v34 }
 0x68c   :  { %683 = vadd.xlane.f32.xlu1 %v1272_v49  ;;  %v711_v53 = vadd.f32 %v709_v30, %v673_v44  ;;  %v706_v54 = vrot.slane %v692_v51, 7 }
 0x68e   :  { %v725_v55 = vrot.slane %v711_v53, 7  ;;  %v847_v56 = vsel %vm361_vm3, %v691_v48, %v711_v53  ;;  %v710_v57 = vmul.f32 %v1274_v28, %v706_v54 }
 0x690   :  { %v729_v58 = vmul.f32 %v1270_v18, %v725_v55  ;;  %v712_v59 = vadd.f32 %v710_v57, %v674_v34 }
 0x692   :  { %v731_v60 = vadd.f32 %v729_v58, %v673_v44  ;;  %v726_v61 = vrot.slane %v712_v59, 7  ;;  %v848_v62 = vsel %vm361_vm3, %v692_v51, %v712_v59 }
 0x694   :  { %v745_v63 = vrot.slane %v731_v60, 7  ;;  %v849_v40 = vsel %vm364_vm4, %v847_v56, %v731_v60  ;;  %v730_v0 = vmul.f32 %v1274_v28, %v726_v61 }
 0x696   :  { %v749_v39 = vmul.f32 %v1270_v18, %v745_v63  ;;  %v732_v1 = vadd.f32 %v730_v0, %v674_v34 }
 0x698   :  { %v751_v2 = vadd.f32 %v749_v39, %v673_v44  ;;  %v746_v3 = vrot.slane %v732_v1, 7  ;;  %v850_v4 = vsel %vm364_vm4, %v848_v62, %v732_v1 }
 0x69a   :  { %v765_v5 = vrot.slane %v751_v2, 7  ;;  %v851_v6 = vsel %vm367_vm5, %v849_v40, %v751_v2  ;;  %v750_v7 = vmul.f32 %v1274_v28, %v746_v3 }
 0x69c   :  { %v769_v10 = vmul.f32 %v1270_v18, %v765_v5  ;;  %v752_v11 = vadd.f32 %v750_v7, %v674_v34 }
 0x69e   :  { %v771_v12 = vadd.f32 %v769_v10, %v673_v44  ;;  %v766_v13 = vrot.slane %v752_v11, 7  ;;  %v852_v19 = vsel %vm367_vm5, %v850_v4, %v752_v11 }
 0x6a0   :  { %v785_v20 = vrot.slane %v771_v12, 7  ;;  %v853_v22 = vsel %vm370_vm6, %v851_v6, %v771_v12  ;;  %v770_v24 = vmul.f32 %v1274_v28, %v766_v13 }
 0x6a2   :  { %v789_v25 = vmul.f32 %v1270_v18, %v785_v20  ;;  %v772_v29 = vadd.f32 %v770_v24, %v674_v34 }
 0x6a4   :  { %v791_v31 = vadd.f32 %v789_v25, %v673_v44  ;;  %v786_v32 = vrot.slane %v772_v29, 7  ;;  %v854_v33 = vsel %vm370_vm6, %v852_v19, %v772_v29 }
 0x6a6   :  { %v805_v36 = vrot.slane %v791_v31, 7  ;;  %v855_v37 = vsel %vm373_vm7, %v853_v22, %v791_v31  ;;  %v790_v15 = vmul.f32 %v1274_v28, %v786_v32 }
 0x6a8   :  { %v809_v38 = vmul.f32 %v1270_v18, %v805_v36  ;;  %v792_v41 = vadd.f32 %v790_v15, %v674_v34 }
 0x6aa   :  { %v811_v21 = vadd.f32 %v809_v38, %v673_v44  ;;  %v806_v45 = vrot.slane %v792_v41, 7  ;;  %v856_v46 = vsel %vm373_vm7, %v854_v33, %v792_v41 }
 0x6ac   :  { %v825_v35 = vrot.slane %v811_v21, 7  ;;  %v857_v42 = vsel %vm376_vm8, %v855_v37, %v811_v21  ;;  %v810_v49 = vmul.f32 %v1274_v28, %v806_v45 }
 0x6ae   :  { %v829_v48 = vmul.f32 %v1270_v18, %v825_v35  ;;  %v812_v50 = vadd.f32 %v810_v49, %v674_v34 }
 0x6b0   :  { %v831_v47 = vadd.f32 %v829_v48, %v673_v44  ;;  %v826_v30 = vrot.slane %v812_v50, 7  ;;  %v858_v51 = vsel %vm376_vm8, %v856_v46, %v812_v50 }
 0x6b2   :  { %v1593_v53 = vsel %vm379_vm9, %v857_v42, %v831_v47  ;;  %v830_v54 = vmul.f32 %v1274_v28, %v826_v30 }
 0x6b4   :  { %v832_v55 = vadd.f32 %v830_v54, %v674_v34 }
 0x6b6   :  { %v1596_v56 = vsel %vm379_vm9, %v858_v51, %v832_v55 }
 0x711   :  { %v676_v57 = vpop.xlane.xlu0 %675 }
 0x712   :  { %v679_v58 = vmul.f32 0.0078125, %v676_v57 }
 0x714   :  { %v685_v59 = vmul.f32 0.0, %v679_v58 }
 0x715   :  { %v678_v60 = vpop.xlane.xlu1 %677  ;;  %v682_v61 = vpop.xlane.xlu0 %681 }
 0x716   :  { %v680_v62 = vmul.f32 0.0078125, %v678_v60  ;;  %v687_v18 = vadd.f32 %v685_v59, %v682_v61 }
 0x718   :  { %v695_v63 = vrot.slane %v687_v18, 7  ;;  %v686_v44 = vmul.f32 0.0, %v680_v62 }
 0x719   :  { %v684_v40 = vpop.xlane.xlu1 %683 }
 0x71a   :  { %v699_v0 = vmul.f32 %v695_v63, %v679_v58  ;;  %v688_v39 = vadd.f32 %v686_v44, %v684_v40 }
 0x71c   :  { %v701_v1 = vadd.f32 %v699_v0, %v682_v61  ;;  %v696_v2 = vrot.slane %v688_v39, 7 }
 0x71e   :  { %v715_v3 = vrot.slane %v701_v1, 7  ;;  %v700_v28 = vmul.f32 %v696_v2, %v680_v62  ;;  %v833_v48 = vsel %vm361_vm3, %v687_v18, %v701_v1 }
 0x720   :  { %v719_v34 = vmul.f32 %v715_v3, %v679_v58  ;;  %v702_v4 = vadd.f32 %v700_v28, %v684_v40 }
 0x722   :  { %v721_v5 = vadd.f32 %v719_v34, %v682_v61  ;;  %v716_v6 = vrot.slane %v702_v4, 7  ;;  %v834_v63 = vsel %vm361_vm3, %v688_v39, %v702_v4 }
 0x724   :  { %v720_v7 = vmul.f32 %v716_v6, %v680_v62  ;;  %v735_v10 = vrot.slane %v721_v5, 7  ;;  %v835_v47 = vsel %vm364_vm4, %v833_v48, %v721_v5 }
 0x726   :  { %v722_v11 = vadd.f32 %v720_v7, %v684_v40  ;;  %v739_v12 = vmul.f32 %v735_v10, %v679_v58 }
 0x728   :  { %v741_v13 = vadd.f32 %v739_v12, %v682_v61  ;;  %v736_v19 = vrot.slane %v722_v11, 7  ;;  %v836_v0 = vsel %vm364_vm4, %v834_v63, %v722_v11  ;;  %v1207_v11 = vld [vmem:[#allocation6 + $0x80] ss:$8 sps:$4 sm:$0xff]   ;;  %v1209_v12 = vld [vmem:[#allocation6 + $0x84] ss:$8 sps:$4 sm:$0xff]  }
 0x729   :  { %992 = vmatprep.subr.bf16.mxu0 %v1209_v12 }
 0x72a   :  { %v755_v20 = vrot.slane %v741_v13, 7  ;;  %v740_v22 = vmul.f32 %v736_v19, %v680_v62  ;;  %v837_v51 = vsel %vm367_vm5, %v835_v47, %v741_v13  ;;  %v1212_v13 = vld [vmem:[#allocation6 + $0x94] ss:$8 sps:$4 sm:$0xff]   ;;  %993 = vmatpush1.bf16.msra.mxu0 %v1207_v11  ;;  %v1210_v19 = vld [vmem:[#allocation6 + $0x90] ss:$8 sps:$4 sm:$0xff]  }
 0x72b   :  { %994 = vmatprep.subr.bf16.mxu0 %v1212_v13 }
 0x72c   :  { %v759_v24 = vmul.f32 %v755_v20, %v679_v58  ;;  %v742_v25 = vadd.f32 %v740_v22, %v684_v40 }
 0x72e   :  { %v761_v29 = vadd.f32 %v759_v24, %v682_v61  ;;  %v756_v31 = vrot.slane %v742_v25, 7  ;;  %995 = vmatpush1.bf16.msra.mxu0 %v1210_v19 }
 0x730   :  { %v775_v32 = vrot.slane %v761_v29, 7  ;;  %v760_v33 = vmul.f32 %v756_v31, %v680_v62  ;;  %v839_v55 = vsel %vm370_vm6, %v837_v51, %v761_v29 }
 0x732   :  { %v779_v36 = vmul.f32 %v775_v32, %v679_v58  ;;  %v762_v37 = vadd.f32 %v760_v33, %v684_v40  ;;  %v1213_v33 = vld [vmem:[#allocation6 + $0xa0] ss:$8 sps:$4 sm:$0xff]  }
 0x734   :  { %v781_v15 = vadd.f32 %v779_v36, %v682_v61  ;;  %v776_v38 = vrot.slane %v762_v37, 7  ;;  %v1218_v36 = vld [vmem:[#allocation6 + $0xb4] ss:$8 sps:$4 sm:$0xff]  }
 0x736   :  { %v795_v41 = vrot.slane %v781_v15, 7  ;;  %v780_v21 = vmul.f32 %v776_v38, %v680_v62  ;;  %v841_v59 = vsel %vm373_vm7, %v839_v55, %v781_v15  ;;  %v1221_v15 = vld [vmem:[#allocation6 + $0xc4] ss:$8 sps:$4 sm:$0xff]   ;;  %v1219_v38 = vld [vmem:[#allocation6 + $0xc0] ss:$8 sps:$4 sm:$0xff]  }
 0x738   :  { %v799_v45 = vmul.f32 %v795_v41, %v679_v58  ;;  %v782_v46 = vadd.f32 %v780_v21, %v684_v40  ;;  %v1224_v41 = vld [vmem:[#allocation6 + $0xd4] ss:$8 sps:$4 sm:$0xff]   ;;  %v1222_v21 = vld [vmem:[#allocation6 + $0xd0] ss:$8 sps:$4 sm:$0xff]  }
 0x73a   :  { %v801_v35 = vadd.f32 %v799_v45, %v682_v61  ;;  %v796_v42 = vrot.slane %v782_v46, 7  ;;  %v1227_v45 = vld [vmem:[#allocation6 + $0xe4] ss:$8 sps:$4 sm:$0xff]  }
 0x73c   :  { %v815_v49 = vrot.slane %v801_v35, 7  ;;  %v800_v50 = vmul.f32 %v796_v42, %v680_v62  ;;  %v843_v44 = vsel %vm376_vm8, %v841_v59, %v801_v35  ;;  %v1230_v35 = vld [vmem:[#allocation6 + $0xf4] ss:$8 sps:$4 sm:$0xff]   ;;  %v1228_v42 = vld [vmem:[#allocation6 + $0xf0] ss:$8 sps:$4 sm:$0xff]  }
 0x73e   :  { %v819_v30 = vmul.f32 %v815_v49, %v679_v58  ;;  %v802_v54 = vadd.f32 %v800_v50, %v684_v40  ;;  %v838_v58 = vsel %vm367_vm5, %v836_v0, %v742_v25 }
 0x73f   :  { %v840_v3 = vsel %vm370_vm6, %v838_v58, %v762_v37  ;;  %v1216_v37 = vld [vmem:[#allocation6 + $0xb0] ss:$8 sps:$4 sm:$0xff]  }
 0x740   :  { %v821_v57 = vadd.f32 %v819_v30, %v682_v61  ;;  %v816_v60 = vrot.slane %v802_v54, 7  ;;  %v842_v61 = vsel %vm373_vm7, %v840_v3, %v782_v46  ;;  %v1225_v46 = vld [vmem:[#allocation6 + $0xe0] ss:$8 sps:$4 sm:$0xff]  }
 0x741   :  { %v844_v34 = vsel %vm376_vm8, %v842_v61, %v802_v54 }
 0x742   :  { %v845_v18 = vsel %vm379_vm9, %v843_v44, %v821_v57  ;;  %v820_v1 = vmul.f32 %v816_v60, %v680_v62  ;;  %v902_v57 = vrot.slane %v1563_v17, %v436_v23  ;;  %v908_v44 = vrot.slane %v1563_v17, %v442_v27 }
 0x743   :  { %v861_v2 = vadd.f32 1e-08, %v845_v18 }
 0x744   :  { %v822_v28 = vadd.f32 %v820_v1, %v684_v40 }
 0x745   :  { %865 = vperm.xlu0 %1181, %v861_v2   ;;  %v1038_v2 = vrot.slane %v1563_v17, %v572_v43  ;;  %v1056_v43 = vrot.slane %v1563_v17, %v590_v52 }
 0x746   :  { %v846_v39 = vsel %vm379_vm9, %v844_v34, %v822_v28 }
 0x747   :  { %v862_v4 = vadd.f32 1e-08, %v846_v39 }
 0x749   :  { %870 = vperm.xlu1 %1182, %v862_v4  }
 0x7c4   :  { %v866_v5 = vpop.permute.xlu0 %865 }
 0x7c5   :  { %1275 = vrcp.f32 %v866_v5 }
 0x7c8   :  { %v871_v6 = vpop.permute.xlu1 %870 }
 0x7c9   :  { %1277 = vrcp.f32 %v871_v6 }
 0x7cf   :  { %v1276_v62 = vpop.eup %1275 }
 0x7d0   :  { %v874_v7 = vmul.f32 %v1276_v62, %v1593_v53 }
 0x7d2   :  { %877 = vadd.xlane.f32.xlu1 %v874_v7 }
 0x7d3   :  { %v1278_v10 = vpop.eup %1277 }
 0x7d4   :  { %v876_v40 = vmul.f32 %v1278_v10, %v1596_v56  ;;  %v1215_v56 = vld [vmem:[#allocation6 + $0xa4] ss:$8 sps:$4 sm:$0xff]  }
 0x7d5   :  { %996 = vmatprep.subr.bf16.mxu0 %v1215_v56 }
 0x7d6   :  { %879 = vadd.xlane.f32.xlu0 %v876_v40  ;;  %997 = vmatpush1.bf16.msra.mxu0 %v1213_v33 }
 0x7d7   :  { %998 = vmatprep.subr.bf16.mxu0 %v1218_v36 }
 0x7da   :  { %999 = vmatpush1.bf16.msra.mxu0 %v1216_v37 }
 0x7db   :  { %1000 = vmatprep.subr.bf16.mxu0 %v1221_v15 }
 0x7de   :  { %1001 = vmatpush1.bf16.msra.mxu0 %v1219_v38  ;;  %v1086_v38 = vrot.slane %v1563_v17, %v620_v8 }
 0x7df   :  { %1002 = vmatprep.subr.bf16.mxu0 %v1224_v41 }
 0x7e2   :  { %1003 = vmatpush1.bf16.msra.mxu0 %v1222_v21  ;;  %v1092_v21 = vrot.slane %v1563_v17, %v626_v9 }
 0x7e3   :  { %1004 = vmatprep.subr.bf16.mxu0 %v1227_v45 }
 0x7e6   :  { %1005 = vmatpush1.bf16.msra.mxu0 %v1225_v46 }
 0x7e7   :  { %1006 = vmatprep.subr.bf16.mxu0 %v1230_v35 }
 0x7ea   :  { %1007 = vmatpush1.bf16.msra.mxu0 %v1228_v42 }
 0x85f   :  { %v878_v20 = vpop.xlane.xlu1 %877 }
 0x860   :  { %v881_v22 = vmul.f32 0.0078125, %v878_v20 }
 0x862   :  { %v883_v24 = vsub.f32 %v874_v7, %v881_v22 }
 0x863   :  { %v880_v25 = vpop.xlane.xlu0 %879 }
 0x864   :  { %v882_v29 = vmul.f32 0.0078125, %v880_v25  ;;  %v885_v31 = vmul.f32 %v883_v24, %v883_v24 }
 0x866   :  { %v884_v53 = vsub.f32 %v876_v40, %v882_v29  ;;  %887 = vadd.xlane.f32.xlu0 %v885_v31 }
 0x868   :  { %v886_v32 = vmul.f32 %v884_v53, %v884_v53 }
 0x86a   :  { %889 = vadd.xlane.f32.xlu1 %v886_v32 }
 0x8f3   :  { %v888_v49 = vpop.xlane.xlu0 %887 }
 0x8f4   :  { %v891_v48 = vmul.f32 0.0078125, %v888_v49 }
 0x8f6   :  { %v893_v50 = vadd.f32 1e-05, %v891_v48 }
 0x8f7   :  { %v890_v47 = vpop.xlane.xlu1 %889 }
 0x8f8   :  { %1279 = vrsqrt.f32 %v893_v50  ;;  %v892_v30 = vmul.f32 0.0078125, %v890_v47 }
 0x8fa   :  { %v894_v51 = vadd.f32 1e-05, %v892_v30 }
 0x8fc   :  { %1281 = vrsqrt.f32 %v894_v51 }
 0x902   :  { %v1280_v54 = vpop.eup %1279 }
 0x903   :  { %v897_v55 = vmul.f32 %v1280_v54, %v883_v24 }
 0x905   :  { %v903_v63 = vmul.f32 %v902_v57, %v897_v55 }
 0x906   :  { %v1282_v59 = vpop.eup %1281 }
 0x907   :  { %v898_v60 = vmul.f32 %v1282_v59, %v884_v53  ;;  %v909_v18 = vadd.f32 %v908_v44, %v903_v63 }
 0x909   :  { %v904_v0 = vmul.f32 %v902_v57, %v898_v60 }
 0x90b   :  { %v910_v1 = vadd.f32 %v908_v44, %v904_v0 }
 0x90d   :  { %v911_v58 = vpack.c.bf16 %v910_v1, %v909_v18 }
 0x90f   :  { %1025 = vmatmul.mubr.bf16.vlgmr.msra.gmra.mrb[4].mxu0 %v911_v58 }
 0x9e2   :  { %v1026_v3 = vpop.f32.mrb[4].mxu0 }
 0x9e3   :  { %v1039_v28 = vadd.f32 %v1038_v2, %v1026_v3  ;;  %v1028_v61 = vpop.f32.mrb[5].mxu0 }
 0x9e4   :  { %v1030_v23 = vpop.f32.mrb[6].mxu0  ;;  %v1057_v10 = vadd.f32 %v1056_v43, %v1028_v61 }
 0x9e5   :  { %v1164_v34 = vmul.f32 -1.442695, %v1039_v28  ;;  %v1040_v39 = vadd.f32 %v1038_v2, %v1030_v23  ;;  %v1032_v4 = vpop.f32.mrb[7].mxu0 }
 0x9e6   :  { %v1058_v11 = vadd.f32 %v1056_v43, %v1032_v4 }
 0x9e7   :  { %1283 = vpow2.f32 %v1164_v34  ;;  %v1165_v5 = vmul.f32 -1.442695, %v1040_v39 }
 0x9e9   :  { %1285 = vpow2.f32 %v1165_v5 }
 0x9f1   :  { %v1284_v27 = vpop.eup %1283 }
 0x9f2   :  { %v1047_v6 = vadd.f32 1.0, %v1284_v27 }
 0x9f3   :  { %v1286_v62 = vpop.eup %1285 }
 0x9f4   :  { %1287 = vrcp.f32 %v1047_v6  ;;  %v1048_v7 = vadd.f32 1.0, %v1286_v62 }
 0x9f6   :  { %1289 = vrcp.f32 %v1048_v7 }
 0x9fe   :  { %v1288_v40 = vpop.eup %1287 }
 0x9ff   :  { %v1059_v12 = vmul.f32 %v1288_v40, %v1057_v10 }
 0xa00   :  { %v1290_v13 = vpop.eup %1289 }
 0xa01   :  { %1061 = vadd.xlane.f32.xlu0 %v1059_v12  ;;  %v1060_v19 = vmul.f32 %v1290_v13, %v1058_v11 }
 0xa03   :  { %1063 = vadd.xlane.f32.xlu1 %v1060_v19 }
 0xa8e   :  { %v1062_v20 = vpop.xlane.xlu0 %1061 }
 0xa8f   :  { %v1065_v22 = vmul.f32 0.0078125, %v1062_v20 }
 0xa90   :  { %v1064_v24 = vpop.xlane.xlu1 %1063 }
 0xa91   :  { %v1067_v25 = vsub.f32 %v1059_v12, %v1065_v22  ;;  %v1066_v29 = vmul.f32 0.0078125, %v1064_v24 }
 0xa93   :  { %v1068_v31 = vsub.f32 %v1060_v19, %v1066_v29  ;;  %v1069_v53 = vmul.f32 %v1067_v25, %v1067_v25 }
 0xa95   :  { %1071 = vadd.xlane.f32.xlu0 %v1069_v53  ;;  %v1070_v32 = vmul.f32 %v1068_v31, %v1068_v31 }
 0xa97   :  { %1073 = vadd.xlane.f32.xlu1 %v1070_v32 }
 0xb22   :  { %v1072_v56 = vpop.xlane.xlu0 %1071 }
 0xb23   :  { %v1075_v52 = vmul.f32 0.0078125, %v1072_v56 }
 0xb24   :  { %v1074_v33 = vpop.xlane.xlu1 %1073 }
 0xb25   :  { %v1077_v36 = vadd.f32 1e-05, %v1075_v52  ;;  %v1076_v37 = vmul.f32 0.0078125, %v1074_v33 }
 0xb27   :  { %1291 = vrsqrt.f32 %v1077_v36  ;;  %v1078_v15 = vadd.f32 1e-05, %v1076_v37 }
 0xb29   :  { %1293 = vrsqrt.f32 %v1078_v15 }
 0xb31   :  { %v1292_v41 = vpop.eup %1291 }
 0xb32   :  { %v1081_v45 = vmul.f32 %v1292_v41, %v1067_v25 }
 0xb33   :  { %v1294_v46 = vpop.eup %1293 }
 0xb34   :  { %v1087_v35 = vmul.f32 %v1086_v38, %v1081_v45  ;;  %v1082_v42 = vmul.f32 %v1294_v46, %v1068_v31 }
 0xb36   :  { %v1093_v49 = vadd.f32 %v1092_v21, %v1087_v35  ;;  %v1088_v48 = vmul.f32 %v1086_v38, %v1082_v42 }
 0xb38   :  { %v1095_v50 = vadd.f32 %v1093_v49, %v1569_v26  ;;  %v1094_v47 = vadd.f32 %v1092_v21, %v1088_v48 }
 0xb3a   :  { %v1097_v30 = vrot.slane %v1095_v50, 4  ;;  %v1096_v51 = vadd.f32 %v1094_v47, %v1573_v16 }
 0xb3c   :  { %v1098_v54 = vadd.f32 %v1097_v30, %v1095_v50  ;;  %v1103_v55 = vrot.slane %v1096_v51, 4 }
 0xb3e   :  { %v1099_v8 = vrot.slane %v1098_v54, 2  ;;  %v1104_v57 = vadd.f32 %v1103_v55, %v1096_v51 }
 0xb40   :  { %v1100_v59 = vadd.f32 %v1099_v8, %v1098_v54  ;;  %v1105_v14 = vrot.slane %v1104_v57, 2 }
 0xb42   :  { %v1101_v60 = vrot.slane %v1100_v59, 1  ;;  %v1106_v9 = vadd.f32 %v1105_v14, %v1104_v57 }
 0xb44   :  { %v1102_v17 = vadd.f32 %v1101_v60, %v1100_v59  ;;  %v1107_v63 = vrot.slane %v1106_v9, 1 }
 0xb46   :  { %v1108_v44 = vadd.f32 %v1107_v63, %v1106_v9  ;;  %v1110_v0 = vmul.f32 0.125, %v1102_v17 }
 0xb48   :  { %v1111_v18 = vmul.f32 0.125, %v1108_v44 }
 0xb4a   :  { %v1115_v1 = vsel %vm1114_vm10, %v1111_v18, %v1110_v0 }
 0xb4b   :  { %1117 = vst [vmem:[%s1641_s4] sm:$0x3] %v1115_v1 }
 0xb4c   :  { %1122 = vsyncpa [#allocation3], 1 }
 0xb4d   :  { %1123 = vsyncpa [#allocation5], 1 }

// kernel: _seq2seq_jit.3
= control target key start
LH: loop header
LB: loop body
LE: loop exit
PB: predicated region body
PF: predicated region fallthrough
CT: control target
= control target key end

     0   :  { %s1951_s0 = inlined_call_operand.vmem [shape: s32[7], index: 0, kind: input, shape index: {}]   ;;  %s1952_s1 = inlined_call_operand.vmem [shape: f32[7,2,8], index: 1, kind: input, shape index: {}]   ;;  %s1953_s2 = inlined_call_operand.vmem [shape: f32[2,128], index: 2, kind: input, shape index: {}]   ;;  %s1954_s3 = inlined_call_operand.vmem [shape: f32[8,128], index: 3, kind: input, shape index: {}]   ;;  %s1955_s4 = inlined_call_operand.vmem [shape: f32[2,8,128], index: 4, kind: input, shape index: {}]   ;;  %s1956_s5 = inlined_call_operand.vmem [shape: bf16[2,128,256], index: 5, kind: input, shape index: {}]   ;;  %s1957_s6 = inlined_call_operand.vmem [shape: bf16[128,128], index: 6, kind: input, shape index: {}]   ;;  %s1958_s7 = inlined_call_operand.vmem [shape: f32[1,128], index: 7, kind: input, shape index: {}]   ;;  %s1959_s8 = inlined_call_operand.vmem [shape: f32[7,2,128], index: 8, kind: output, shape index: {}]  }
   0x1   :  { %s13_s29 = sshll.u32 %s1951_s0, 4  ;;  %s14_s29 = int_to_ptr.vmem [resolvable:$true] %s13_s29 }
   0x2   :  { %s1578_s30 = scalar_lea.vmem %s14_s29, 16  ;;  %p1583_p1 = scmp.lt.s32.totalorder %s14_s29, %s14_s29 }
   0x3   :  { %p1579_p0 = scmp.ne.s32.totalorder %s14_s29, %s1578_s30  ;;  %p1584_p2 = scmp.lt.s32.totalorder %s1578_s30, %s1578_s30 }
   0x5   :  { %p1585_p3 = por %p1584_p2, %p1583_p1 }
   0x7   :  { %p1586_p4 = pnand %p1585_p3, %p1579_p0 }
   0x9   :  { %1589 = shalt.err (!%p1586_p4)  }
   0xa   :  { %s1600_s9 = smov [#allocation5]  }
   0xb   :  { %16 = dma.vmem_to_smem %s14_s29, 16, %s1600_s9, [#allocation4] }
   0xc   :  { %1594 = dma.done.wait [#allocation4], 16 }
   0xd   :  { %1595 = vsyncadd [#allocation4], 4294967280 }
   0xe   :  { %18 = sfence }
   0xf   :  { %s1654_s10 = smov 0  }
  0x10 LB: > { %s1660_s0 = sadd.s32 4294967295, %s1598_s10   ;;  %p1336_p5 = scmp.ge.s32.totalorder %s1598_s10, 1  ;;  %s1598_s10 = sphi %s1654_s10, %s24_s10  }
  0x11   : > { %p243_p6 = scmp.lt.s32.totalorder %s1598_s10, 8 }
  0x13   : > { %p244_p7 = pnand %p1336_p5, %p243_p6 }
  0x14   : > { %p273_p8 = scmp.lt.s32.totalorder (!%p244_p7), %s1660_s0, 6  ;;  %p1339_p9 = scmp.ne.s32.totalorder (!%p244_p7), %s1660_s0, 0 }
  0x15   : > { %247 = sbr.rel (%p244_p7) target bundleno = 2966 (0xb96), region = 48 }
  0x1c   : > { %s274_s11 = scalar_select %p273_p8, %s1660_s0, 6 }
  0x1d   : > { %285 = sbr.rel (%p1339_p9) target bundleno = 69 (0x45), region = 52  ;;  %v286_v0 = vlaneseq (!%p1339_p9)  ;;  %v294_v3 = vld [vmem:[%s1955_s4] sm:$0xff] (!%p1339_p9)  ;;  %v1341_v4 = vld [vmem:[%s1955_s4 + $0x8] sm:$0xff] (!%p1339_p9)  ;;  %vm291_vm0 = vcmask (!%p1339_p9), 58368   ;;  %v1601_v10 = vmov (!%p1339_p9), 0.0  }
  0x1e   : > { %s1337_s12 = sshll.u32 %s274_s11, 1  ;;  %v293_v7 = vld [vmem:[%s1953_s2] sm:$0x3] (!%p1339_p9) }
  0x1f   : > { %s1669_s15 = scalar_lea.vmem %s1952_s1, %s1337_s12  ;;  %s1674_s18 = scalar_lea.vmem %s1959_s8, %s1337_s12  ;;  %v287_v1 = vand.u32 (!%p1339_p9), 127, %v286_v0  ;;  %v296_v2 = vshrl.u32 (!%p1339_p9), %v286_v0, 7 }
  0x21   : > { %v288_v5 = vcvt.s32.f32 (!%p1339_p9), %v287_v1  ;;  %v297_v6 = vsub.s32 (!%p1339_p9), 1, %v296_v2 }
  0x23   : > { %vm289_vm1 = vcmp.eq.f32.partialorder (!%p1339_p9), %v288_v5, 1.0  ;;  %v298_v8 = vrot.slane (!%p1339_p9), %v294_v3, %v297_v6  ;;  %v313_v9 = vrot.slane (!%p1339_p9), %v1341_v4, %v297_v6 }
  0x24   : > { %v290_v11 = vsel %vm289_vm1, 1.0, %v1601_v10 }
  0x25   : > { %292 = vst.msk [vmem:[#allocation2] sm:$0x3] %vm291_vm0, %v290_v11  ;;  %v299_v12 = vmul.f32 %v298_v8, %v293_v7  ;;  %v314_v13 = vmul.f32 %v313_v9, %v293_v7 }
  0x27   : > { %v1340_v14 = vmul.f32 -1.442695, %v299_v12  ;;  %v1342_v15 = vmul.f32 -1.442695, %v314_v13 }
  0x29   : > { %1462 = vpow2.f32 %v1340_v14 }
  0x2a   : > { %1464 = vpow2.f32 %v1342_v15 }
  0x33   : > { %v1463_v16 = vpop.eup %1462 }
  0x34   : > { %v1465_v17 = vpop.eup %1464  ;;  %v303_v18 = vadd.f32 1.0, %v1463_v16 }
  0x35   : > { %v318_v19 = vadd.f32 1.0, %v1465_v17 }
  0x36   : > { %1466 = vrcp.f32 %v303_v18 }
  0x37   : > { %1468 = vrcp.f32 %v318_v19 }
  0x40   : > { %v1467_v20 = vpop.eup %1466 }
  0x41   : > { %v1469_v21 = vpop.eup %1468  ;;  %v306_v22 = vmul.f32 %v1467_v20, %v293_v7 }
  0x42   : > { %v321_v23 = vmul.f32 %v1469_v21, %v293_v7 }
  0x43   : > { %307 = vst [vmem:[#allocation3] sm:$0x3] %v306_v22 }
  0x44   : > { %323 = vst [vmem:[#allocation3 + $0x2] sm:$0x3] %v321_v23 }
  0x45 PF: > { %v325_v24 = vld [vmem:[%s1954_s3] sm:$0xff]  ;;  %vm326_vm2 = vcmask 64512   ;;  %v1602_v26 = vmov 0.0   ;;  %vm1603_vm3 = vmmov 0   ;;  %v1604_v27 = vmov 1966171168  }
  0x46   : > { %v324_v25 = vld [vmem:[#allocation2] sm:$0x3]  ;;  %1423 = vmatprep.subr.mxu0 %v1602_v26  ;;  %1425 = vmatprep.mubr.msk.f32.mxu0 %vm1603_vm3, %v1602_v26  ;;  %v402_v28 = vunpack.c.l.s4 %v1604_v27  ;;  %v404_v29 = vlaneseq  ;;  %vm490_vm4 = vcmask 1040384   ;;  %vm584_vm5 = vcmask 1041409   ;;  %s1266_s17 = sld [smem:[#allocation5 + %s1660_s0]] }
  0x47   : > { %1424 = vmatpush3.msra.mxu0 %v325_v24  ;;  %v1702_v36 = vld [vmem:[%s1955_s4] sm:$0xff]  ;;  %vm726_vm6 = vcmask 1041408   ;;  %vm1277_vm11 = vcmask 58368  }
  0x48   : > { %1426 = vmatmul.mubr.msk.f32.vlgmr.msra.gmra.mrb[0].mxu0 %vm326_vm2, %v324_v25  ;;  %v403_v30 = vunpack.c.0.s8 %v402_v28  ;;  %v1693_v31 = vshrl.u32 %v404_v29, 7 }
  0x4a   : > { %v1696_v32 = vsub.s32 %v403_v30, %v1693_v31  ;;  %v1346_v53 = vld.sshfl [vmem:[#allocation3] sm:$0x11 pattern:$0x75316420] }
  0x4b   : > { %v471_v55 = vcombine.high %v1346_v53, %v1346_v53 }
  0x4c   : > { %v478_v57 = vrot.slane %v1346_v53, %v1696_v32  ;;  %v1488_v53 = vld [vmem:[%s1956_s5 + $0x64] ss:$8 sps:$4 sm:$0xff]   ;;  %p1267_p10 = scmp.eq.s32.totalorder %s1266_s17, 1 }
  0x4d   : > { %v485_v59 = vrot.slane %v471_v55, %v1696_v32  ;;  %v1605_v55 = vmov 0  }
  0x4e   : > { %700 = vmatprep.mubr.bf16.mxu1 %v1605_v55  ;;  %1052 = vmatprep.mubr.bf16.mxu0 %v1605_v55  ;;  %s1268_s19 = scalar_select %p1267_p10, 1, 0 }
  0x50   : > { %s1269_s20 = scvt.s32.f32 %s1268_s19 }
  0x52   : > { %s1273_s21 = ssub.f32 1.0, %s1269_s20 }
 0x11b   : > { %v396_v33 = vpop.f32.mrb[0].mxu0 }
 0x11c   : > { %v407_v34 = vrot.slane %v396_v33, %v1696_v32  ;;  %v1427_v35 = vpop.f32.mrb[1].mxu0 }
 0x11e   : > { %v408_v37 = vcombine.high %v407_v34, %v407_v34  ;;  %v1705_v38 = vrot.slane %v407_v34, %v1696_v32 }
 0x120   : > { %v1708_v39 = vrot.slane %v408_v37, %v1696_v32  ;;  %v443_v40 = vmul.f32 %v1702_v36, %v1705_v38  ;;  %v457_v44 = vmul.f32 1.442695, %v1705_v38 }
 0x122   : > { %v444_v41 = vmul.f32 %v1702_v36, %v1708_v39  ;;  %v1344_v42 = vmul.f32 -1.442695, %v443_v40  ;;  %v459_v43 = vmul.f32 1.442695, %v1708_v39 }
 0x124   : > { %1526 = vpow2.f32 %v1344_v42  ;;  %v1345_v45 = vmul.f32 -1.442695, %v444_v41  ;;  %v1470_v41 = vld [vmem:[%s1956_s5 + $0x4] ss:$8 sps:$4 sm:$0xff]   ;;  %v1472_v42 = vld [vmem:[%s1956_s5] ss:$8 sps:$4 sm:$0xff]  }
 0x125   : > { %1528 = vpow2.f32 %v459_v43  ;;  %668 = vmatprep.subr.bf16.mxu1 %v1470_v41  ;;  %v1473_v43 = vld [vmem:[%s1956_s5 + $0x14] ss:$8 sps:$4 sm:$0xff]  }
 0x126   : > { %1530 = vpow2.f32 %v1345_v45  ;;  %669 = vmatpush1.bf16.msra.mxu1 %v1472_v42  ;;  %v1476_v45 = vld [vmem:[%s1956_s5 + $0x24] ss:$8 sps:$4 sm:$0xff]  }
 0x127   : > { %1532 = vpow2.f32 %v457_v44  ;;  %v1475_v44 = vld [vmem:[%s1956_s5 + $0x10] ss:$8 sps:$4 sm:$0xff]   ;;  %670 = vmatprep.subr.bf16.mxu1 %v1473_v43 }
 0x12a   : > { %671 = vmatpush1.bf16.msra.mxu1 %v1475_v44 }
 0x12b   : > { %672 = vmatprep.subr.bf16.mxu1 %v1476_v45 }
 0x12e   : > { %v1527_v46 = vpop.eup %1526 }
 0x12f   : > { %v1529_v47 = vpop.eup %1528  ;;  %v451_v48 = vadd.f32 1.0, %v1527_v46  ;;  %v1478_v46 = vld [vmem:[%s1956_s5 + $0x20] ss:$8 sps:$4 sm:$0xff]  }
 0x130   : > { %v1531_v49 = vpop.eup %1530  ;;  %v503_v50 = vsel %vm490_vm4, %v1529_v47, 0.0  ;;  %v462_v58 = vmul.f32 %v1529_v47, %v1708_v39  ;;  %673 = vmatpush1.bf16.msra.mxu1 %v1478_v46  ;;  %v1479_v47 = vld [vmem:[%s1956_s5 + $0x34] ss:$8 sps:$4 sm:$0xff]  }
 0x131   : > { %v1533_v51 = vpop.eup %1532  ;;  %504 = vadd.xlane.f32.xlu1 %v503_v50  ;;  %v452_v52 = vadd.f32 1.0, %v1531_v49  ;;  %1534 = vrcp.f32 %v451_v48  ;;  %v1481_v48 = vld [vmem:[%s1956_s5 + $0x30] ss:$8 sps:$4 sm:$0xff]   ;;  %674 = vmatprep.subr.bf16.mxu1 %v1479_v47  ;;  %v1482_v49 = vld [vmem:[%s1956_s5 + $0x44] ss:$8 sps:$4 sm:$0xff]  }
 0x132   : > { %v500_v54 = vsel %vm490_vm4, %v1533_v51, 0.0  ;;  %v461_v56 = vmul.f32 %v1533_v51, %v1705_v38  ;;  %v489_v1 = vadd.f32 %v485_v59, %v462_v58  ;;  %v1484_v50 = vld [vmem:[%s1956_s5 + $0x40] ss:$8 sps:$4 sm:$0xff]   ;;  %v1485_v51 = vld [vmem:[%s1956_s5 + $0x54] ss:$8 sps:$4 sm:$0xff]  }
 0x133   : > { %1536 = vrcp.f32 %v452_v52  ;;  %v1487_v52 = vld [vmem:[%s1956_s5 + $0x50] ss:$8 sps:$4 sm:$0xff]  }
 0x134   : > { %v488_v61 = vadd.f32 %v478_v57, %v461_v56  ;;  %675 = vmatpush1.bf16.msra.mxu1 %v1481_v48  ;;  %v1491_v56 = vld [vmem:[%s1956_s5 + $0x74] ss:$8 sps:$4 sm:$0xff]   ;;  %v1493_v57 = vld [vmem:[%s1956_s5 + $0x70] ss:$8 sps:$4 sm:$0xff]  }
 0x135   : > { %501 = vadd.xlane.f32.xlu1 %v500_v54  ;;  %676 = vmatprep.subr.bf16.mxu1 %v1482_v49  ;;  %v1490_v54 = vld [vmem:[%s1956_s5 + $0x60] ss:$8 sps:$4 sm:$0xff]  }
 0x138   : > { %677 = vmatpush1.bf16.msra.mxu1 %v1484_v50 }
 0x139   : > { %678 = vmatprep.subr.bf16.mxu1 %v1485_v51 }
 0x13b   : > { %v1535_v60 = vpop.eup %1534 }
 0x13c   : > { %v510_v62 = vmul.f32 0.0, %v1535_v60  ;;  %v491_v5 = vsel %vm490_vm4, %v1535_v60, 0.0  ;;  %679 = vmatpush1.bf16.msra.mxu1 %v1487_v52  ;;  %v742_v52 = vsub.s32 4, %v1693_v31 }
 0x13d   : > { %v1537_v63 = vpop.eup %1536  ;;  %680 = vmatprep.subr.bf16.mxu1 %v1488_v53  ;;  %v747_v53 = vsub.s32 5, %v1693_v31 }
 0x13e   : > { %v494_v0 = vsel %vm490_vm4, %v1537_v63, 0.0  ;;  %v511_v2 = vmul.f32 0.0, %v1537_v63  ;;  %v512_v3 = vadd.f32 %v510_v62, %v488_v61  ;;  %v553_v62 = vrot.slane %v1702_v36, %v1696_v32 }
 0x13f   : > { %495 = vadd.xlane.f32.xlu0 %v494_v0 }
 0x140   : > { %v513_v4 = vadd.f32 %v511_v2, %v489_v1  ;;  %681 = vmatpush1.bf16.msra.mxu1 %v1490_v54  ;;  %v565_v1 = vcombine.high %v553_v62, %v553_v62  ;;  %v560_v2 = vrot.slane %v553_v62, %v1696_v32  ;;  %v743_v54 = vrot.slane %v1702_v36, %v742_v52 }
 0x141   : > { %682 = vmatprep.subr.bf16.mxu1 %v1491_v56  ;;  %v748_v56 = vrot.slane %v1702_v36, %v747_v53 }
 0x143   : > { %492 = vadd.xlane.f32.xlu0 %v491_v5 }
 0x144   : > { %683 = vmatpush1.bf16.msra.mxu1 %v1493_v57 }
 0x145   : > { %1428 = vmatprep.subr.bf16.mxu1 %v1602_v26 }
 0x1be   : > { %v505_v8 = vpop.xlane.xlu1 %504 }
 0x1c2   : > { %v502_v15 = vpop.xlane.xlu1 %501 }
 0x1cc   : > { %v496_v6 = vpop.xlane.xlu0 %495 }
 0x1cd   : > { %v499_v7 = vmul.f32 0.0078125, %v496_v6 }
 0x1cf   : > { %v507_v9 = vmul.f32 0.0, %v499_v7 }
 0x1d0   : > { %v493_v10 = vpop.xlane.xlu0 %492 }
 0x1d1   : > { %v509_v11 = vadd.f32 %v507_v9, %v505_v8  ;;  %v498_v12 = vmul.f32 0.0078125, %v493_v10 }
 0x1d3   : > { %v515_v13 = vadd.f32 1e-08, %v509_v11  ;;  %v506_v14 = vmul.f32 0.0, %v498_v12 }
 0x1d5   : > { %1538 = vrcp.f32 %v515_v13  ;;  %v508_v16 = vadd.f32 %v506_v14, %v502_v15 }
 0x1d7   : > { %v514_v17 = vadd.f32 1e-08, %v508_v16 }
 0x1d9   : > { %1540 = vrcp.f32 %v514_v17 }
 0x1df   : > { %v1539_v18 = vpop.eup %1538 }
 0x1e0   : > { %v519_v19 = vmul.f32 %v1539_v18, %v513_v4  ;;  %v561_v4 = vcombine.high %v560_v2, %v560_v2 }
 0x1e2   : > { %v523_v20 = vsel %vm490_vm4, %v519_v19, 0.0 }
 0x1e3   : > { %v1541_v21 = vpop.eup %1540  ;;  %524 = vadd.xlane.f32.xlu0 %v523_v20 }
 0x1e4   : > { %v517_v22 = vmul.f32 %v1541_v21, %v512_v3  ;;  %v572_v3 = vrot.slane %v565_v1, %v1696_v32  ;;  %v711_v21 = vsub.s32 6, %v1693_v31 }
 0x1e6   : > { %v520_v23 = vsel %vm490_vm4, %v517_v22, 0.0  ;;  %v573_v7 = vcombine.high %v572_v3, %v572_v3 }
 0x1e7   : > { %521 = vadd.xlane.f32.xlu1 %v520_v23 }
 0x270   : > { %v525_v24 = vpop.xlane.xlu0 %524 }
 0x271   : > { %v527_v25 = vmul.f32 0.0078125, %v525_v24 }
 0x273   : > { %v529_v27 = vsub.f32 %v519_v19, %v527_v25 }
 0x274   : > { %v522_v28 = vpop.xlane.xlu1 %521 }
 0x275   : > { %v526_v30 = vmul.f32 0.0078125, %v522_v28  ;;  %v531_v33 = vmul.f32 %v529_v27, %v529_v27 }
 0x277   : > { %v528_v34 = vsub.f32 %v517_v22, %v526_v30  ;;  %v535_v35 = vsel %vm490_vm4, %v531_v33, 0.0  ;;  %v712_v22 = vrot.slane %v1702_v36, %v711_v21 }
 0x278   : > { %536 = vadd.xlane.f32.xlu0 %v535_v35  ;;  %v722_v35 = vsub.s32 7, %v1693_v31 }
 0x279   : > { %v530_v37 = vmul.f32 %v528_v34, %v528_v34 }
 0x27b   : > { %v532_v40 = vsel %vm490_vm4, %v530_v37, 0.0  ;;  %v723_v37 = vrot.slane %v1702_v36, %v722_v35 }
 0x27c   : > { %533 = vadd.xlane.f32.xlu1 %v532_v40 }
 0x305   : > { %v537_v58 = vpop.xlane.xlu0 %536 }
 0x306   : > { %v539_v59 = vmul.f32 0.0078125, %v537_v58 }
 0x308   : > { %v541_v60 = vadd.f32 1e-05, %v539_v59 }
 0x309   : > { %v534_v61 = vpop.xlane.xlu1 %533 }
 0x30a   : > { %1542 = vrsqrt.f32 %v541_v60  ;;  %v538_v63 = vmul.f32 0.0078125, %v534_v61 }
 0x30c   : > { %v540_v0 = vadd.f32 1e-05, %v538_v63  ;;  %v1807_v63 = vld [vmem:[%s1955_s4 + $0x8] sm:$0xff] }
 0x30e   : > { %1544 = vrsqrt.f32 %v540_v0 }
 0x314   : > { %v1543_v5 = vpop.eup %1542 }
 0x315   : > { %v545_v6 = vmul.f32 %v1543_v5, %v529_v27 }
 0x317   : > { %v564_v8 = vmul.f32 %v561_v4, %v545_v6 }
 0x318   : > { %v1545_v9 = vpop.eup %1544 }
 0x319   : > { %v544_v10 = vmul.f32 %v1545_v9, %v528_v34  ;;  %v576_v11 = vadd.f32 %v573_v7, %v564_v8 }
 0x31b   : > { %v563_v12 = vmul.f32 %v561_v4, %v544_v10  ;;  %v578_v13 = vpack.c.bf16 %v576_v11, %v576_v11 }
 0x31d   : > { %v575_v14 = vadd.f32 %v573_v7, %v563_v12  ;;  %v582_v15 = vunpack.c.l.b16 %v578_v13 }
 0x31f   : > { %v577_v16 = vpack.c.bf16 %v575_v14, %v575_v14  ;;  %v583_v18 = vrot.slane %v582_v15, 7 }
 0x321   : > { %v581_v17 = vunpack.c.l.b16 %v577_v16 }
 0x323   : > { %v585_v19 = vsel %vm584_vm5, %v583_v18, %v581_v17 }
 0x324   : > { %v586_v20 = vpack.c.b16 %v585_v19, %v585_v19 }
 0x326   : > { %701 = vmatmul.mubr.bf16.vlgmr.msra.gmra.mrb[0].mxu1 %v586_v20 }
 0x327   : > { %1444 = vmatprep.mubr.msk.bf16.mxu1 %vm1603_vm3, %v1602_v26 }
 0x3f9   : > { %v702_v23 = vpop.f32.mrb[0].mxu1 }
 0x3fa   : > { %v713_v24 = vadd.f32 %v712_v22, %v702_v23  ;;  %v704_v25 = vpop.f32.mrb[1].mxu1 }
 0x3fb   : > { %v706_v27 = vpop.f32.mrb[2].mxu1  ;;  %v724_v40 = vadd.f32 %v723_v37, %v704_v25 }
 0x3fc   : > { %v1363_v28 = vmul.f32 -1.442695, %v713_v24  ;;  %v707_v30 = vpop.f32.mrb[3].mxu1 }
 0x3fe   : > { %1546 = vpow2.f32 %v1363_v28 }
 0x408   : > { %v1547_v33 = vpop.eup %1546 }
 0x409   : > { %v717_v34 = vadd.f32 1.0, %v1547_v33 }
 0x40b   : > { %1548 = vrcp.f32 %v717_v34 }
 0x415   : > { %v1549_v41 = vpop.eup %1548 }
 0x416   : > { %v725_v42 = vmul.f32 %v1549_v41, %v724_v40 }
 0x418   : > { %v727_v43 = vsel %vm726_vm6, %v725_v42, 0.0 }
 0x419   : > { %728 = vadd.xlane.f32.xlu0 %v727_v43 }
 0x4a6   : > { %v729_v44 = vpop.xlane.xlu0 %728 }
 0x4a7   : > { %v730_v45 = vmul.f32 0.0078125, %v729_v44 }
 0x4a9   : > { %v731_v46 = vsub.f32 %v725_v42, %v730_v45 }
 0x4ab   : > { %v732_v47 = vmul.f32 %v731_v46, %v731_v46 }
 0x4ad   : > { %v733_v48 = vsel %vm726_vm6, %v732_v47, 0.0 }
 0x4ae   : > { %734 = vadd.xlane.f32.xlu1 %v733_v48 }
 0x53b   : > { %v735_v49 = vpop.xlane.xlu1 %734 }
 0x53c   : > { %v736_v50 = vmul.f32 0.0078125, %v735_v49 }
 0x53e   : > { %v737_v51 = vadd.f32 1e-05, %v736_v50 }
 0x540   : > { %1550 = vrsqrt.f32 %v737_v51 }
 0x54a   : > { %v1551_v55 = vpop.eup %1550 }
 0x54b   : > { %v739_v57 = vmul.f32 %v1551_v55, %v731_v46 }
 0x54d   : > { %v744_v58 = vmul.f32 %v743_v54, %v739_v57 }
 0x54f   : > { %v749_v59 = vadd.f32 %v748_v56, %v744_v58 }
 0x551   : > { %v757_v60 = vrot.slane %v749_v59, %v1696_v32 }
 0x553   : > { %v758_v61 = vcombine.high %v757_v60, %v757_v60  ;;  %v765_v62 = vrot.slane %v757_v60, %v1696_v32 }
 0x555   : > { %v772_v0 = vrot.slane %v758_v61, %v1696_v32  ;;  %v1811_v1 = vadd.f32 %v765_v62, %v1705_v38 }
 0x557   : > { %v798_v36 = vmul.f32 %v1807_v63, %v1811_v1  ;;  %v1816_v2 = vadd.f32 %v772_v0, %v1708_v39  ;;  %v812_v6 = vmul.f32 1.442695, %v1811_v1  ;;  %v1383_v39 = vld.sshfl [vmem:[#allocation3 + $0x2] sm:$0x11 pattern:$0x75316420] }
 0x558   : > { %v826_v12 = vcombine.high %v1383_v39, %v1383_v39  ;;  %v833_v15 = vrot.slane %v1383_v39, %v1696_v32  ;;  %v1500_v39 = vld [vmem:[%s1956_s5 + $0xa0] ss:$8 sps:$4 sm:$0xff]  }
 0x559   : > { %v1381_v3 = vmul.f32 -1.442695, %v798_v36  ;;  %v799_v4 = vmul.f32 %v1807_v63, %v1816_v2  ;;  %v814_v7 = vmul.f32 1.442695, %v1816_v2 }
 0x55a   : > { %v840_v17 = vrot.slane %v826_v12, %v1696_v32  ;;  %v1503_v12 = vld [vmem:[%s1956_s5 + $0xb0] ss:$8 sps:$4 sm:$0xff]  }
 0x55b   : > { %1552 = vpow2.f32 %v1381_v3  ;;  %v1382_v5 = vmul.f32 -1.442695, %v799_v4 }
 0x55d   : > { %1554 = vpow2.f32 %v1382_v5 }
 0x55e   : > { %1556 = vpow2.f32 %v812_v6 }
 0x55f   : > { %1558 = vpow2.f32 %v814_v7  ;;  %v1496_v7 = vld [vmem:[%s1956_s5 + $0x84] ss:$8 sps:$4 sm:$0xff]  }
 0x560   : > { %1020 = vmatprep.subr.bf16.mxu0 %v1496_v7 }
 0x565   : > { %v1553_v38 = vpop.eup %1552 }
 0x566   : > { %v806_v8 = vadd.f32 1.0, %v1553_v38  ;;  %v1494_v38 = vld [vmem:[%s1956_s5 + $0x80] ss:$8 sps:$4 sm:$0xff]  }
 0x567   : > { %v1555_v9 = vpop.eup %1554  ;;  %1021 = vmatpush1.bf16.msra.mxu0 %v1494_v38 }
 0x568   : > { %1560 = vrcp.f32 %v806_v8  ;;  %v807_v10 = vadd.f32 1.0, %v1555_v9  ;;  %v1557_v11 = vpop.eup %1556  ;;  %v1499_v8 = vld [vmem:[%s1956_s5 + $0x94] ss:$8 sps:$4 sm:$0xff]   ;;  %v1497_v9 = vld [vmem:[%s1956_s5 + $0x90] ss:$8 sps:$4 sm:$0xff]  }
 0x569   : > { %v1559_v13 = vpop.eup %1558  ;;  %v816_v14 = vmul.f32 %v1557_v11, %v1811_v1  ;;  %v853_v30 = vsel %vm490_vm4, %v1557_v11, 0.0  ;;  %1022 = vmatprep.subr.bf16.mxu0 %v1499_v8  ;;  %v1505_v11 = vld [vmem:[%s1956_s5 + $0xb4] ss:$8 sps:$4 sm:$0xff]  }
 0x56a   : > { %1562 = vrcp.f32 %v807_v10  ;;  %v817_v16 = vmul.f32 %v1559_v13, %v1816_v2  ;;  %v856_v34 = vsel %vm490_vm4, %v1559_v13, 0.0  ;;  %v1502_v10 = vld [vmem:[%s1956_s5 + $0xa4] ss:$8 sps:$4 sm:$0xff]  }
 0x56b   : > { %v843_v20 = vadd.f32 %v833_v15, %v816_v14  ;;  %1023 = vmatpush1.bf16.msra.mxu0 %v1497_v9  ;;  %v1508_v13 = vld [vmem:[%s1956_s5 + $0xc4] ss:$8 sps:$4 sm:$0xff]   ;;  %v1506_v14 = vld [vmem:[%s1956_s5 + $0xc0] ss:$8 sps:$4 sm:$0xff]   ;;  %v1509_v15 = vld [vmem:[%s1956_s5 + $0xd0] ss:$8 sps:$4 sm:$0xff]  }
 0x56c   : > { %v844_v27 = vadd.f32 %v840_v17, %v817_v16  ;;  %1024 = vmatprep.subr.bf16.mxu0 %v1502_v10  ;;  %v1511_v16 = vld [vmem:[%s1956_s5 + $0xd4] ss:$8 sps:$4 sm:$0xff]   ;;  %v1514_v17 = vld [vmem:[%s1956_s5 + $0xe4] ss:$8 sps:$4 sm:$0xff]  }
 0x56f   : > { %1025 = vmatpush1.bf16.msra.mxu0 %v1500_v39 }
 0x570   : > { %1026 = vmatprep.subr.bf16.mxu0 %v1505_v11 }
 0x572   : > { %v1561_v18 = vpop.eup %1560 }
 0x573   : > { %v845_v19 = vsel %vm490_vm4, %v1561_v18, 0.0  ;;  %v863_v22 = vmul.f32 0.0, %v1561_v18  ;;  %1027 = vmatpush1.bf16.msra.mxu0 %v1503_v12  ;;  %v1512_v18 = vld [vmem:[%s1956_s5 + $0xe0] ss:$8 sps:$4 sm:$0xff]  }
 0x574   : > { %v1563_v23 = vpop.eup %1562  ;;  %846 = vadd.xlane.f32.xlu1 %v845_v19  ;;  %1028 = vmatprep.subr.bf16.mxu0 %v1508_v13  ;;  %v1517_v19 = vld [vmem:[%s1956_s5 + $0xf4] ss:$8 sps:$4 sm:$0xff]   ;;  %v1518_v13 = vld [vmem:[%s1957_s6] sm:$0xff]  }
 0x575   : > { %v848_v24 = vsel %vm490_vm4, %v1563_v23, 0.0  ;;  %v865_v25 = vadd.f32 %v863_v22, %v843_v20  ;;  %v864_v28 = vmul.f32 0.0, %v1563_v23  ;;  %v1515_v20 = vld [vmem:[%s1956_s5 + $0xf0] ss:$8 sps:$4 sm:$0xff]   ;;  %1429 = vmatpush3.bf16.msra.mxu1 %v1518_v13 }
 0x576   : > { %849 = vadd.xlane.f32.xlu0 %v848_v24  ;;  %1430 = vmatprep.subr.bf16.mxu1 %v1602_v26 }
 0x577   : > { %v866_v33 = vadd.f32 %v864_v28, %v844_v27  ;;  %1029 = vmatpush1.bf16.msra.mxu0 %v1506_v14  ;;  %v906_v28 = vrot.slane %v1807_v63, %v1696_v32  ;;  %v1520_v14 = vld [vmem:[%s1957_s6 + $0x10] sm:$0xff]  }
 0x578   : > { %854 = vadd.xlane.f32.xlu1 %v853_v30  ;;  %1030 = vmatprep.subr.bf16.mxu0 %v1511_v16  ;;  %v1522_v16 = vld [vmem:[%s1957_s6 + $0x20] sm:$0xff]  }
 0x57a   : > { %857 = vadd.xlane.f32.xlu0 %v856_v34  ;;  %v913_v34 = vrot.slane %v906_v28, %v1696_v32 }
 0x57b   : > { %1031 = vmatpush1.bf16.msra.mxu0 %v1509_v15  ;;  %v1521_v15 = vld [vmem:[%s1957_s6 + $0x18] sm:$0xff]  }
 0x57c   : > { %1032 = vmatprep.subr.bf16.mxu0 %v1514_v17  ;;  %v1523_v17 = vld [vmem:[%s1957_s6 + $0x28] sm:$0xff]  }
 0x57f   : > { %1033 = vmatpush1.bf16.msra.mxu0 %v1512_v18  ;;  %v1524_v18 = vld [vmem:[%s1957_s6 + $0x30] sm:$0xff]  }
 0x580   : > { %1034 = vmatprep.subr.bf16.mxu0 %v1517_v19  ;;  %v1525_v19 = vld [vmem:[%s1957_s6 + $0x38] sm:$0xff]  }
 0x583   : > { %1035 = vmatpush1.bf16.msra.mxu0 %v1515_v20 }
 0x601   : > { %v847_v37 = vpop.xlane.xlu1 %846 }
 0x602   : > { %v851_v40 = vmul.f32 0.0078125, %v847_v37 }
 0x603   : > { %v850_v41 = vpop.xlane.xlu0 %849 }
 0x604   : > { %v859_v42 = vmul.f32 0.0, %v851_v40  ;;  %v852_v43 = vmul.f32 0.0078125, %v850_v41  ;;  %v914_v40 = vcombine.high %v913_v34, %v913_v34 }
 0x605   : > { %v855_v44 = vpop.xlane.xlu1 %854 }
 0x606   : > { %v860_v45 = vmul.f32 0.0, %v852_v43  ;;  %v861_v46 = vadd.f32 %v859_v42, %v855_v44 }
 0x607   : > { %v858_v47 = vpop.xlane.xlu0 %857 }
 0x608   : > { %v867_v48 = vadd.f32 1e-08, %v861_v46  ;;  %v862_v49 = vadd.f32 %v860_v45, %v858_v47 }
 0x60a   : > { %1564 = vrcp.f32 %v867_v48  ;;  %v868_v50 = vadd.f32 1e-08, %v862_v49 }
 0x60c   : > { %1566 = vrcp.f32 %v868_v50 }
 0x614   : > { %v1565_v51 = vpop.eup %1564 }
 0x615   : > { %v870_v54 = vmul.f32 %v1565_v51, %v865_v25 }
 0x616   : > { %v1567_v55 = vpop.eup %1566 }
 0x617   : > { %v873_v56 = vsel %vm490_vm4, %v870_v54, 0.0  ;;  %v872_v57 = vmul.f32 %v1567_v55, %v866_v33  ;;  %v918_v33 = vcombine.high %v906_v28, %v906_v28 }
 0x618   : > { %874 = vadd.xlane.f32.xlu1 %v873_v56 }
 0x619   : > { %v876_v58 = vsel %vm490_vm4, %v872_v57, 0.0  ;;  %v925_v37 = vrot.slane %v918_v33, %v1696_v32 }
 0x61a   : > { %877 = vadd.xlane.f32.xlu0 %v876_v58 }
 0x61b   : > { %v926_v43 = vcombine.high %v925_v37, %v925_v37 }
 0x6a5   : > { %v875_v59 = vpop.xlane.xlu1 %874 }
 0x6a6   : > { %v879_v60 = vmul.f32 0.0078125, %v875_v59  ;;  %v1064_v59 = vrot.slane %v1807_v63, %v711_v21 }
 0x6a7   : > { %v878_v61 = vpop.xlane.xlu0 %877 }
 0x6a8   : > { %v881_v62 = vsub.f32 %v870_v54, %v879_v60  ;;  %v880_v0 = vmul.f32 0.0078125, %v878_v61 }
 0x6aa   : > { %v882_v36 = vsub.f32 %v872_v57, %v880_v0  ;;  %v883_v3 = vmul.f32 %v881_v62, %v881_v62 }
 0x6ac   : > { %v885_v4 = vsel %vm490_vm4, %v883_v3, 0.0  ;;  %v884_v5 = vmul.f32 %v882_v36, %v882_v36 }
 0x6ad   : > { %886 = vadd.xlane.f32.xlu1 %v885_v4 }
 0x6ae   : > { %v888_v6 = vsel %vm490_vm4, %v884_v5, 0.0 }
 0x6af   : > { %889 = vadd.xlane.f32.xlu0 %v888_v6  ;;  %v1075_v6 = vrot.slane %v1807_v63, %v722_v35  ;;  %v1519_v35 = vld [vmem:[%s1957_s6 + $0x8] sm:$0xff]  }
 0x6b0   : > { %1431 = vmatpush3.bf16.msra.mxu1 %v1519_v35 }
 0x6b1   : > { %1432 = vmatprep.subr.bf16.mxu1 %v1602_v26 }
 0x6b4   : > { %1433 = vmatpush3.bf16.msra.mxu1 %v1520_v14 }
 0x6b5   : > { %1434 = vmatprep.subr.bf16.mxu1 %v1602_v26 }
 0x6b8   : > { %1435 = vmatpush3.bf16.msra.mxu1 %v1521_v15 }
 0x6b9   : > { %1436 = vmatprep.subr.bf16.mxu1 %v1602_v26 }
 0x6bc   : > { %1437 = vmatpush3.bf16.msra.mxu1 %v1522_v16 }
 0x6bd   : > { %1438 = vmatprep.subr.bf16.mxu1 %v1602_v26 }
 0x6c0   : > { %1439 = vmatpush3.bf16.msra.mxu1 %v1523_v17 }
 0x6c1   : > { %1440 = vmatprep.subr.bf16.mxu1 %v1602_v26 }
 0x6c4   : > { %1441 = vmatpush3.bf16.msra.mxu1 %v1524_v18 }
 0x6c5   : > { %1442 = vmatprep.subr.bf16.mxu1 %v1602_v26 }
 0x6c8   : > { %1443 = vmatpush3.bf16.msra.mxu1 %v1525_v19 }
 0x73a   : > { %v887_v22 = vpop.xlane.xlu1 %886 }
 0x73b   : > { %v891_v23 = vmul.f32 0.0078125, %v887_v22 }
 0x73c   : > { %v890_v24 = vpop.xlane.xlu0 %889 }
 0x73d   : > { %v893_v25 = vadd.f32 1e-05, %v891_v23  ;;  %v892_v27 = vmul.f32 0.0078125, %v890_v24  ;;  %v1094_v24 = vrot.slane %v1807_v63, %v742_v52 }
 0x73f   : > { %1568 = vrsqrt.f32 %v893_v25  ;;  %v894_v30 = vadd.f32 1e-05, %v892_v27  ;;  %v1099_v27 = vrot.slane %v1807_v63, %v747_v53 }
 0x741   : > { %1570 = vrsqrt.f32 %v894_v30 }
 0x749   : > { %v1569_v41 = vpop.eup %1568 }
 0x74a   : > { %v897_v42 = vmul.f32 %v1569_v41, %v881_v62 }
 0x74b   : > { %v1571_v44 = vpop.eup %1570 }
 0x74c   : > { %v916_v45 = vmul.f32 %v914_v40, %v897_v42  ;;  %v898_v46 = vmul.f32 %v1571_v44, %v882_v36 }
 0x74e   : > { %v917_v47 = vmul.f32 %v914_v40, %v898_v46  ;;  %v928_v48 = vadd.f32 %v926_v43, %v916_v45 }
 0x750   : > { %v929_v49 = vadd.f32 %v926_v43, %v917_v47  ;;  %v930_v50 = vpack.c.bf16 %v928_v48, %v928_v48  ;;  %v1251_v47 = vand.u32 127, %v404_v29 }
 0x752   : > { %v931_v51 = vpack.c.bf16 %v929_v49, %v929_v49  ;;  %v934_v55 = vunpack.c.l.b16 %v930_v50  ;;  %vm1253_vm7 = vcmp.lt.s32.totalorder %v1251_v47, 3 }
 0x754   : > { %v935_v54 = vunpack.c.l.b16 %v931_v51 }
 0x756   : > { %v936_v56 = vrot.slane %v935_v54, 7 }
 0x758   : > { %v937_v57 = vsel %vm584_vm5, %v936_v56, %v934_v55  ;;  %v1252_v55 = vcvt.s32.f32 %v1251_v47 }
 0x759   : > { %v938_v58 = vpack.c.b16 %v937_v57, %v937_v57 }
 0x75b   : > { %1053 = vmatmul.mubr.bf16.vlgmr.msra.gmra.mrb[4].mxu0 %v938_v58  ;;  %v1270_v58 = vld [vmem:[%s1669_s15] sm:$0x3] }
 0x82e   : > { %v1054_v60 = vpop.f32.mrb[4].mxu0 }
 0x82f   : > { %v1065_v61 = vadd.f32 %v1064_v59, %v1054_v60  ;;  %v1056_v62 = vpop.f32.mrb[5].mxu0  ;;  %v1271_v59 = vstv %s1269_s20  ;;  %v1274_v60 = vstv %s1273_s21 }
 0x830   : > { %v1058_v0 = vpop.f32.mrb[6].mxu0  ;;  %v1076_v7 = vadd.f32 %v1075_v6, %v1056_v62  ;;  %v1272_v62 = vmul.f32 %v1271_v59, %v1270_v58 }
 0x831   : > { %v1400_v36 = vmul.f32 -1.442695, %v1065_v61  ;;  %v1059_v3 = vpop.f32.mrb[7].mxu0 }
 0x833   : > { %1572 = vpow2.f32 %v1400_v36 }
 0x83d   : > { %v1573_v4 = vpop.eup %1572 }
 0x83e   : > { %v1069_v5 = vadd.f32 1.0, %v1573_v4 }
 0x840   : > { %1574 = vrcp.f32 %v1069_v5 }
 0x84a   : > { %v1575_v38 = vpop.eup %1574 }
 0x84b   : > { %v1077_v8 = vmul.f32 %v1575_v38, %v1076_v7 }
 0x84d   : > { %v1078_v9 = vsel %vm726_vm6, %v1077_v8, 0.0 }
 0x84e   : > { %1079 = vadd.xlane.f32.xlu0 %v1078_v9 }
 0x8db   : > { %v1080_v21 = vpop.xlane.xlu0 %1079 }
 0x8dc   : > { %v1081_v10 = vmul.f32 0.0078125, %v1080_v21 }
 0x8de   : > { %v1082_v39 = vsub.f32 %v1077_v8, %v1081_v10 }
 0x8e0   : > { %v1083_v11 = vmul.f32 %v1082_v39, %v1082_v39 }
 0x8e2   : > { %v1084_v12 = vsel %vm726_vm6, %v1083_v11, 0.0 }
 0x8e3   : > { %1085 = vadd.xlane.f32.xlu1 %v1084_v12 }
 0x970   : > { %v1086_v20 = vpop.xlane.xlu1 %1085 }
 0x971   : > { %v1087_v22 = vmul.f32 0.0078125, %v1086_v20 }
 0x973   : > { %v1088_v23 = vadd.f32 1e-05, %v1087_v22 }
 0x975   : > { %1576 = vrsqrt.f32 %v1088_v23 }
 0x97f   : > { %v1577_v25 = vpop.eup %1576 }
 0x980   : > { %v1090_v28 = vmul.f32 %v1577_v25, %v1082_v39 }
 0x982   : > { %v1095_v30 = vmul.f32 %v1094_v24, %v1090_v28 }
 0x984   : > { %v1100_v33 = vadd.f32 %v1099_v27, %v1095_v30 }
 0x986   : > { %v1108_v34 = vrot.slane %v1100_v33, %v1696_v32 }
 0x988   : > { %v1109_v37 = vcombine.high %v1108_v34, %v1108_v34  ;;  %v1116_v40 = vrot.slane %v1108_v34, %v1696_v32 }
 0x98a   : > { %v1123_v41 = vrot.slane %v1109_v37, %v1696_v32  ;;  %v1126_v42 = vadd.f32 %v1116_v40, %v1811_v1  ;;  %v1401_v32 = vld [vmem:[%s1958_s7] ss:$0 sm:$0xff] }
 0x98c   : > { %v1127_v43 = vadd.f32 %v1123_v41, %v1816_v2  ;;  %v1128_v52 = vpack.c.bf16 %v1126_v42, %v1126_v42 }
 0x98e   : > { %v1129_v44 = vpack.c.bf16 %v1127_v43, %v1127_v43  ;;  %v1155_v45 = vunpack.c.l.b16 %v1128_v52 }
 0x990   : > { %v1156_v31 = vunpack.c.l.b16 %v1129_v44 }
 0x992   : > { %v1157_v53 = vrot.slane %v1156_v31, 7 }
 0x994   : > { %v1158_v63 = vsel %vm584_vm5, %v1157_v53, %v1155_v45 }
 0x995   : > { %v1159_v46 = vpack.c.b16 %v1158_v63, %v1158_v63 }
 0x997   : > { %1445 = vmatmul.mubr.bf16.vlgmr.msra.gmra.mrb[4].mxu1 %v1159_v46 }
 0xa6a   : > { %v1243_v48 = vpop.f32.mrb[4].mxu1 }
 0xa6b   : > { %v1244_v1 = vadd.f32 %v1401_v32, %v1243_v48  ;;  %v1446_v2 = vpop.f32.mrb[5].mxu1 }
 0xa6c   : > { %v1246_v49 = vpop.f32.mrb[6].mxu1 }
 0xa6d   : > { %1249 = vst [vmem:[%s1674_s18] sm:$0x3] %v1244_v1  ;;  %v1447_v50 = vpop.f32.mrb[7].mxu1  ;;  %v1254_v51 = vsel %vm1253_vm7, %v1244_v1, -1e+30 }
 0xa6e   : > { %v1255_v54 = vsel %vm726_vm6, %v1254_v51, -inf }
 0xa6f   : > { %1256 = vmax.xlane.f32.xlu0 %v1255_v54 }
 0xafc   : > { %v1257_v56 = vpop.xlane.xlu0 %1256 }
 0xafd   : > { %vm1258_vm8 = vcmp.ge.f32.partialorder %v1254_v51, %v1257_v56 }
 0xafe   : > { %vm1259_vm9 = vmand %vm1258_vm8, %vm1253_vm7 }
 0xaff   : > { %v1260_v29 = vsel %vm1259_vm9, %v1252_v55, 128.0 }
 0xb00   : > { %v1261_v57 = vsel %vm726_vm6, %v1260_v29, inf }
 0xb01   : > { %1262 = vmin.xlane.f32.xlu1 %v1261_v57 }
 0xb8e   : > { %v1263_v61 = vpop.xlane.xlu1 %1262 }
 0xb8f   : > { %vm1264_vm10 = vcmp.eq.f32.partialorder %v1252_v55, %v1263_v61 }
 0xb90   : > { %v1265_v0 = vsel %vm1264_vm10, 1.0, %v1602_v26 }
 0xb91   : > { %v1275_v36 = vmul.f32 %v1274_v60, %v1265_v0 }
 0xb93   : > { %v1276_v3 = vadd.f32 %v1275_v36, %v1272_v62 }
 0xb95   : > { %1278 = vst.msk [vmem:[#allocation2] sm:$0x3] %vm1277_vm11, %v1276_v3 }
 0xb96 PF: > { %s24_s10 = sadd.s32 1, %s1598_s10  }
 0xb97   : > { %p21_p11 = scmp.ge.s32.totalorder %s24_s10, 9  }
 0xb99   :  { %23 = sbr.rel (!%p21_p11) target bundleno = 16 (0x10), region = 87 }

</bundles_post_ra>
